<compile_context>
chip_gen: v5e
topology: v5e:2x2
jax: 0.10.0
libtpu: 0.0.40
codegen_flags: <defaults>
</compile_context>

<pallas_src>
import functools

import jax
import jax.numpy as jnp
from jax.experimental import pallas as pl
from jax.experimental.pallas import tpu as pltpu

IN_DIM = 28 * 28          # 784
K_PAD = 896               # 784 padded up to a multiple of 128
H1, H2, H3 = 512, 1024, 256
OUT_DIM = 10
OUT_PAD = 128             # lane-dense output slab
MAX_TILE_B = 512          # batch-tile cap (VMEM-friendly on v5e/v6e/v7x)


def mlp_kernel(x_ref, w1_ref, b1_ref, w2_ref, b2_ref,
               w3_ref, b3_ref, w4_ref, b4_ref, o_ref):
    # input_layer: Linear(784 -> 512), NO activation (matches PyTorch forward)
    h = jnp.dot(x_ref[...], w1_ref[...], preferred_element_type=jnp.float32)
    h = (h + b1_ref[...]).astype(jnp.bfloat16)

    # hidden_layer1: Linear(512 -> 1024) + ReLU
    h = jnp.dot(h, w2_ref[...], preferred_element_type=jnp.float32)
    h = jnp.maximum(h + b2_ref[...], 0.0).astype(jnp.bfloat16)

    # hidden_layer2: Linear(1024 -> 256) + ReLU
    h = jnp.dot(h, w3_ref[...], preferred_element_type=jnp.float32)
    h = jnp.maximum(h + b3_ref[...], 0.0).astype(jnp.bfloat16)

    # output_layer: Linear(256 -> 10), stored as a 128-lane padded slab
    out = jnp.dot(h, w4_ref[...], preferred_element_type=jnp.float32)
    o_ref[...] = (out + b4_ref[...]).astype(o_ref.dtype)


@jax.jit
def mlp_forward(x, params):
    """x: any shape that flattens to (-1, 784), like PyTorch's .view(-1, 28*28)."""
    (w1, b1), (w2, b2), (w3, b3), (w4, b4) = params

    # --- prepare inputs: flatten, cast to bf16, pad K -> 896, pad batch -> tile ---
    x2d = x.reshape(-1, IN_DIM).astype(jnp.bfloat16)
    B = x2d.shape[0]
    # batch tile: multiple of 8 (sublane), capped at MAX_TILE_B
    tile_b = min(MAX_TILE_B, pl.cdiv(B, 8) * 8)
    b_pad = pl.cdiv(B, tile_b) * tile_b
    x_p = jnp.pad(x2d, ((0, b_pad - B), (0, K_PAD - IN_DIM)))

    # --- prepare params: bf16 weights, K-padded w1, lane-padded final layer ---
    w1_p = jnp.pad(w1.astype(jnp.bfloat16), ((0, K_PAD - IN_DIM), (0, 0)))
    w2_p = w2.astype(jnp.bfloat16)
    w3_p = w3.astype(jnp.bfloat16)
    w4_p = jnp.pad(w4.astype(jnp.bfloat16), ((0, 0), (0, OUT_PAD - OUT_DIM)))
    b1_p = b1.astype(jnp.float32)
    b2_p = b2.astype(jnp.float32)
    b3_p = b3.astype(jnp.float32)
    b4_p = jnp.pad(b4.astype(jnp.float32), ((0, 0), (0, OUT_PAD - OUT_DIM)))

    const = lambda i: (0, 0)  # weights/biases: same block every step -> DMA'd once
    out_padded = pl.pallas_call(
        mlp_kernel,
        out_shape=jax.ShapeDtypeStruct((b_pad, OUT_PAD), jnp.float32),
        grid=(b_pad // tile_b,),
        in_specs=[
            pl.BlockSpec((tile_b, K_PAD), lambda i: (i, 0)),   # x tile
            pl.BlockSpec((K_PAD, H1), const),                  # w1
            pl.BlockSpec((1, H1), const),                      # b1
            pl.BlockSpec((H1, H2), const),                     # w2
            pl.BlockSpec((1, H2), const),                      # b2
            pl.BlockSpec((H2, H3), const),                     # w3
            pl.BlockSpec((1, H3), const),                      # b3
            pl.BlockSpec((H3, OUT_PAD), const),                # w4 (lane-padded)
            pl.BlockSpec((1, OUT_PAD), const),                 # b4 (lane-padded)
        ],
        out_specs=pl.BlockSpec((tile_b, OUT_PAD), lambda i: (i, 0)),
        compiler_params=pltpu.CompilerParams(
            dimension_semantics=("parallel",),
            vmem_limit_bytes=32 << 20,
        ),
    )(x_p, w1_p, b1_p, w2_p, b2_p, w3_p, b3_p, w4_p, b4_p)

    return out_padded[:B, :OUT_DIM]


def init_params(key):
    """Deterministic init matching nn.Linear default (uniform +/- 1/sqrt(fan_in)).
    Weights stored as (in_features, out_features)."""
    dims = [(IN_DIM, H1), (H1, H2), (H2, H3), (H3, OUT_DIM)]
    params = []
    for i, (fan_in, fan_out) in enumerate(dims):
        kw, kb = jax.random.split(jax.random.fold_in(key, i))
        bound = 1.0 / (fan_in ** 0.5)
        w = jax.random.uniform(kw, (fan_in, fan_out), jnp.float32, -bound, bound)
        b = jax.random.uniform(kb, (1, fan_out), jnp.float32, -bound, bound)
        params.append((w, b))
    return params


def reference_forward(x, params):
    """Pure-JAX reference mirroring the kernel's bf16-matmul / f32-accumulate path."""
    (w1, b1), (w2, b2), (w3, b3), (w4, b4) = params
    h = x.reshape(-1, IN_DIM).astype(jnp.bfloat16)
    h = jnp.dot(h, w1.astype(jnp.bfloat16), preferred_element_type=jnp.float32) + b1
    h = h.astype(jnp.bfloat16)
    h = jnp.dot(h, w2.astype(jnp.bfloat16), preferred_element_type=jnp.float32) + b2
    h = jnp.maximum(h, 0.0).astype(jnp.bfloat16)
    h = jnp.dot(h, w3.astype(jnp.bfloat16), preferred_element_type=jnp.float32) + b3
    h = jnp.maximum(h, 0.0).astype(jnp.bfloat16)
    return jnp.dot(h, w4.astype(jnp.bfloat16), preferred_element_type=jnp.float32) + b4


if __name__ == "__main__":
    key = jax.random.PRNGKey(0)
    params = init_params(key)
    # batch of 2 MNIST-like images, NCHW as the PyTorch module would receive
    x = jax.random.normal(jax.random.fold_in(key, 100), (2, 1, 28, 28), jnp.float32)

    out = mlp_forward(x, params)
    out = jax.block_until_ready(out)

    ref = reference_forward(x, params)
    assert out.shape == (2, 10), out.shape
    assert jnp.allclose(out, ref, atol=2e-2, rtol=2e-2), "mismatch vs JAX reference"
    print("KERNEL_OK")
</pallas_src>

<mosaic_0001>
module attributes {stable_mosaic.version = 11 : i64} {
  func.func @mlp_kernel(%arg0: i32, %arg1: memref<8x896xbf16, #tpu.memory_space<vmem>>, %arg2: memref<896x512xbf16, #tpu.memory_space<vmem>>, %arg3: memref<1x512xf32, #tpu.memory_space<vmem>>, %arg4: memref<512x1024xbf16, #tpu.memory_space<vmem>>, %arg5: memref<1x1024xf32, #tpu.memory_space<vmem>>, %arg6: memref<1024x256xbf16, #tpu.memory_space<vmem>>, %arg7: memref<1x256xf32, #tpu.memory_space<vmem>>, %arg8: memref<256x128xbf16, #tpu.memory_space<vmem>>, %arg9: memref<1x128xf32, #tpu.memory_space<vmem>>, %arg10: memref<8x128xf32, #tpu.memory_space<vmem>>) attributes {dimension_semantics = [#tpu.dimension_semantics<parallel>], iteration_bounds = array<i64: 1>, scalar_prefetch = 0 : i64, scratch_operands = 0 : i64, tpu.core_type = #tpu.core_type<tc>, window_params = [{transform_indices = @transform_0, window_bounds = array<i64: 8, 896>}, {pipeline_mode = #tpu.pipeline_mode<synchronous>, transform_indices = @transform_1, window_bounds = array<i64: 896, 512>}, {pipeline_mode = #tpu.pipeline_mode<synchronous>, transform_indices = @transform_2, window_bounds = array<i64: 1, 512>}, {pipeline_mode = #tpu.pipeline_mode<synchronous>, transform_indices = @transform_3, window_bounds = array<i64: 512, 1024>}, {pipeline_mode = #tpu.pipeline_mode<synchronous>, transform_indices = @transform_4, window_bounds = array<i64: 1, 1024>}, {pipeline_mode = #tpu.pipeline_mode<synchronous>, transform_indices = @transform_5, window_bounds = array<i64: 1024, 256>}, {pipeline_mode = #tpu.pipeline_mode<synchronous>, transform_indices = @transform_6, window_bounds = array<i64: 1, 256>}, {pipeline_mode = #tpu.pipeline_mode<synchronous>, transform_indices = @transform_7, window_bounds = array<i64: 256, 128>}, {pipeline_mode = #tpu.pipeline_mode<synchronous>, transform_indices = @transform_8, window_bounds = array<i64: 1, 128>}, {transform_indices = @transform_9, window_bounds = array<i64: 8, 128>}]} {
    %c0 = arith.constant 0 : index
    %c0_0 = arith.constant 0 : index
    %0 = vector.load %arg1[%c0, %c0_0] : memref<8x896xbf16, #tpu.memory_space<vmem>>, vector<8x896xbf16>
    %c0_1 = arith.constant 0 : index
    %c0_2 = arith.constant 0 : index
    %1 = vector.load %arg2[%c0_1, %c0_2] : memref<896x512xbf16, #tpu.memory_space<vmem>>, vector<896x512xbf16>
    %cst = arith.constant dense<0.000000e+00> : vector<8x512xf32>
    %2 = tpu.matmul %0, %1, %cst {dimension_numbers = #tpu.dot_dimension_numbers<[1], [0], [0], [1], [0, 0, 1, 1], [], []>} : vector<8x896xbf16>, vector<896x512xbf16>, vector<8x512xf32> -> vector<8x512xf32>
    %c0_3 = arith.constant 0 : index
    %c0_4 = arith.constant 0 : index
    %3 = vector.load %arg3[%c0_3, %c0_4] : memref<1x512xf32, #tpu.memory_space<vmem>>, vector<1x512xf32>
    %4 = vector.broadcast %3 : vector<1x512xf32> to vector<8x512xf32>
    %5 = arith.addf %2, %4 : vector<8x512xf32>
    %6 = arith.truncf %5 : vector<8x512xf32> to vector<8x512xbf16>
    %c0_5 = arith.constant 0 : index
    %c0_6 = arith.constant 0 : index
    %7 = vector.load %arg4[%c0_5, %c0_6] : memref<512x1024xbf16, #tpu.memory_space<vmem>>, vector<512x1024xbf16>
    %cst_7 = arith.constant dense<0.000000e+00> : vector<8x1024xf32>
    %8 = tpu.matmul %6, %7, %cst_7 {dimension_numbers = #tpu.dot_dimension_numbers<[1], [0], [0], [1], [0, 0, 1, 1], [], []>} : vector<8x512xbf16>, vector<512x1024xbf16>, vector<8x1024xf32> -> vector<8x1024xf32>
    %c0_8 = arith.constant 0 : index
    %c0_9 = arith.constant 0 : index
    %9 = vector.load %arg5[%c0_8, %c0_9] : memref<1x1024xf32, #tpu.memory_space<vmem>>, vector<1x1024xf32>
    %10 = vector.broadcast %9 : vector<1x1024xf32> to vector<8x1024xf32>
    %11 = arith.addf %8, %10 : vector<8x1024xf32>
    %cst_10 = arith.constant 0.000000e+00 : f32
    %12 = vector.broadcast %cst_10 : f32 to vector<8x1024xf32>
    %13 = arith.maximumf %11, %12 : vector<8x1024xf32>
    %14 = arith.truncf %13 : vector<8x1024xf32> to vector<8x1024xbf16>
    %c0_11 = arith.constant 0 : index
    %c0_12 = arith.constant 0 : index
    %15 = vector.load %arg6[%c0_11, %c0_12] : memref<1024x256xbf16, #tpu.memory_space<vmem>>, vector<1024x256xbf16>
    %cst_13 = arith.constant dense<0.000000e+00> : vector<8x256xf32>
    %16 = tpu.matmul %14, %15, %cst_13 {dimension_numbers = #tpu.dot_dimension_numbers<[1], [0], [0], [1], [0, 0, 1, 1], [], []>} : vector<8x1024xbf16>, vector<1024x256xbf16>, vector<8x256xf32> -> vector<8x256xf32>
    %c0_14 = arith.constant 0 : index
    %c0_15 = arith.constant 0 : index
    %17 = vector.load %arg7[%c0_14, %c0_15] : memref<1x256xf32, #tpu.memory_space<vmem>>, vector<1x256xf32>
    %18 = vector.broadcast %17 : vector<1x256xf32> to vector<8x256xf32>
    %19 = arith.addf %16, %18 : vector<8x256xf32>
    %cst_16 = arith.constant 0.000000e+00 : f32
    %20 = vector.broadcast %cst_16 : f32 to vector<8x256xf32>
    %21 = arith.maximumf %19, %20 : vector<8x256xf32>
    %22 = arith.truncf %21 : vector<8x256xf32> to vector<8x256xbf16>
    %c0_17 = arith.constant 0 : index
    %c0_18 = arith.constant 0 : index
    %23 = vector.load %arg8[%c0_17, %c0_18] : memref<256x128xbf16, #tpu.memory_space<vmem>>, vector<256x128xbf16>
    %cst_19 = arith.constant dense<0.000000e+00> : vector<8x128xf32>
    %24 = tpu.matmul %22, %23, %cst_19 {dimension_numbers = #tpu.dot_dimension_numbers<[1], [0], [0], [1], [0, 0, 1, 1], [], []>} : vector<8x256xbf16>, vector<256x128xbf16>, vector<8x128xf32> -> vector<8x128xf32>
    %c0_20 = arith.constant 0 : index
    %c0_21 = arith.constant 0 : index
    %25 = vector.load %arg9[%c0_20, %c0_21] : memref<1x128xf32, #tpu.memory_space<vmem>>, vector<1x128xf32>
    %26 = vector.broadcast %25 : vector<1x128xf32> to vector<8x128xf32>
    %27 = arith.addf %24, %26 : vector<8x128xf32>
    %c0_22 = arith.constant 0 : index
    %c0_23 = arith.constant 0 : index
    %28 = vector.load %arg10[%c0_22, %c0_23] : memref<8x128xf32, #tpu.memory_space<vmem>>, vector<8x128xf32>
    tpu.vector_store %arg10[%c0_22, %c0_23], %27 {strides = array<i32>} : memref<8x128xf32, #tpu.memory_space<vmem>>, vector<8x128xf32>,
    return
  }
  func.func @transform_0(%arg0: i32) -> (i32, i32) {
    %c0_i32 = arith.constant 0 : i32
    %c0_i32_0 = arith.constant 0 : i32
    return %arg0, %c0_i32 : i32, i32
  }
  func.func @transform_1(%arg0: i32) -> (i32, i32) {
    %c0_i32 = arith.constant 0 : i32
    %c0_i32_0 = arith.constant 0 : i32
    %c0_i32_1 = arith.constant 0 : i32
    return %c0_i32, %c0_i32_0 : i32, i32
  }
  func.func @transform_2(%arg0: i32) -> (i32, i32) {
    %c0_i32 = arith.constant 0 : i32
    %c0_i32_0 = arith.constant 0 : i32
    %c0_i32_1 = arith.constant 0 : i32
    return %c0_i32, %c0_i32_0 : i32, i32
  }
  func.func @transform_3(%arg0: i32) -> (i32, i32) {
    %c0_i32 = arith.constant 0 : i32
    %c0_i32_0 = arith.constant 0 : i32
    %c0_i32_1 = arith.constant 0 : i32
    return %c0_i32, %c0_i32_0 : i32, i32
  }
  func.func @transform_4(%arg0: i32) -> (i32, i32) {
    %c0_i32 = arith.constant 0 : i32
    %c0_i32_0 = arith.constant 0 : i32
    %c0_i32_1 = arith.constant 0 : i32
    return %c0_i32, %c0_i32_0 : i32, i32
  }
  func.func @transform_5(%arg0: i32) -> (i32, i32) {
    %c0_i32 = arith.constant 0 : i32
    %c0_i32_0 = arith.constant 0 : i32
    %c0_i32_1 = arith.constant 0 : i32
    return %c0_i32, %c0_i32_0 : i32, i32
  }
  func.func @transform_6(%arg0: i32) -> (i32, i32) {
    %c0_i32 = arith.constant 0 : i32
    %c0_i32_0 = arith.constant 0 : i32
    %c0_i32_1 = arith.constant 0 : i32
    return %c0_i32, %c0_i32_0 : i32, i32
  }
  func.func @transform_7(%arg0: i32) -> (i32, i32) {
    %c0_i32 = arith.constant 0 : i32
    %c0_i32_0 = arith.constant 0 : i32
    %c0_i32_1 = arith.constant 0 : i32
    return %c0_i32, %c0_i32_0 : i32, i32
  }
  func.func @transform_8(%arg0: i32) -> (i32, i32) {
    %c0_i32 = arith.constant 0 : i32
    %c0_i32_0 = arith.constant 0 : i32
    %c0_i32_1 = arith.constant 0 : i32
    return %c0_i32, %c0_i32_0 : i32, i32
  }
  func.func @transform_9(%arg0: i32) -> (i32, i32) {
    %c0_i32 = arith.constant 0 : i32
    %c0_i32_0 = arith.constant 0 : i32
    return %arg0, %c0_i32 : i32, i32
  }
}

</mosaic_0001>

<bundles_post_ra>
// kernel: mlp_forward.1
= control target key start
LH: loop header
LB: loop body
LE: loop exit
PB: predicated region body
PF: predicated region fallthrough
CT: control target
= control target key end

     0   :  { %s12055_s1 = inlined_call_operand.vmem [shape: bf16[896,512], index: 1, kind: input, shape index: {}]   ;;  %s12056_s0 = inlined_call_operand.vmem [shape: bf16[8,896], index: 0, kind: input, shape index: {}]   ;;  %s12057_s3 = inlined_call_operand.vmem [shape: bf16[512,1024], index: 3, kind: input, shape index: {}]   ;;  %s12058_s2 = inlined_call_operand.vmem [shape: f32[1,512], index: 2, kind: input, shape index: {}]   ;;  %s12059_s4 = inlined_call_operand.vmem [shape: f32[1,1024], index: 4, kind: input, shape index: {}]   ;;  %s12060_s5 = inlined_call_operand.vmem [shape: bf16[1024,256], index: 5, kind: input, shape index: {}]   ;;  %s12061_s6 = inlined_call_operand.vmem [shape: f32[1,256], index: 6, kind: input, shape index: {}]   ;;  %s12062_s8 = inlined_call_operand.vmem [shape: f32[1,128], index: 8, kind: input, shape index: {}]   ;;  %s12063_s7 = inlined_call_operand.vmem [shape: bf16[256,128], index: 7, kind: input, shape index: {}]   ;;  %s12064_s9 = inlined_call_operand.vmem [shape: f32[8,128], index: 9, kind: output, shape index: {}]  }
   0x1   :  { %v5032_v0 = vld [vmem:[%s12055_s1 + $0xe0] sm:$0xf]  ;;  %v7444_v1 = vld [vmem:[%s12055_s1 + $0xec] sm:$0xf0] }
   0x2   :  { %v5160_v2 = vld [vmem:[%s12055_s1 + $0x1e0] sm:$0xf]  ;;  %v5033_v3 = vor.u32 %v7444_v1, %v5032_v0  ;;  %v7476_v4 = vld [vmem:[%s12055_s1 + $0x1ec] sm:$0xf0] }
   0x3   :  { %v5288_v5 = vld [vmem:[%s12055_s1 + $0x2e0] sm:$0xf]  ;;  %v7508_v6 = vld [vmem:[%s12055_s1 + $0x2ec] sm:$0xf0]  ;;  %v5161_v7 = vor.u32 %v7476_v4, %v5160_v2 }
   0x4   :  { %v5289_v8 = vor.u32 %v7508_v6, %v5288_v5  ;;  %v5416_v9 = vld [vmem:[%s12055_s1 + $0x3e0] sm:$0xf]  ;;  %v7540_v10 = vld [vmem:[%s12055_s1 + $0x3ec] sm:$0xf0]  ;;  %1415 = vmatpush.bf16.msra.mxu0 %v5033_v3 }
   0x5   :  { %v5016_v11 = vld [vmem:[%s12055_s1 + $0xc0] sm:$0xf]  ;;  %v5417_v12 = vor.u32 %v7540_v10, %v5416_v9  ;;  %v7440_v13 = vld [vmem:[%s12055_s1 + $0xcc] sm:$0xf0]  ;;  %1428 = vmatpush.bf16.msra.mxu1 %v5161_v7 }
   0x6   :  { %v5144_v14 = vld [vmem:[%s12055_s1 + $0x1c0] sm:$0xf]  ;;  %v7472_v15 = vld [vmem:[%s12055_s1 + $0x1cc] sm:$0xf0]  ;;  %1441 = vmatpush.bf16.msra.mxu2 %v5289_v8  ;;  %v5017_v16 = vor.u32 %v7440_v13, %v5016_v11 }
   0x7   :  { %v5145_v17 = vor.u32 %v7472_v15, %v5144_v14  ;;  %v5272_v18 = vld [vmem:[%s12055_s1 + $0x2c0] sm:$0xf]  ;;  %v7504_v19 = vld [vmem:[%s12055_s1 + $0x2cc] sm:$0xf0]  ;;  %1454 = vmatpush.bf16.msra.mxu3 %v5417_v12 }
   0x8   :  { %v5400_v20 = vld [vmem:[%s12055_s1 + $0x3c0] sm:$0xf]  ;;  %v5273_v21 = vor.u32 %v7504_v19, %v5272_v18  ;;  %v7536_v22 = vld [vmem:[%s12055_s1 + $0x3cc] sm:$0xf0]  ;;  %1416 = vmatpush.bf16.msra.mxu0 %v5017_v16 }
   0x9   :  { %v5000_v23 = vld [vmem:[%s12055_s1 + $0xa0] sm:$0xf]  ;;  %v7436_v24 = vld [vmem:[%s12055_s1 + $0xac] sm:$0xf0]  ;;  %v5401_v25 = vor.u32 %v7536_v22, %v5400_v20  ;;  %1429 = vmatpush.bf16.msra.mxu1 %v5145_v17 }
   0xa   :  { %v5128_v26 = vld [vmem:[%s12055_s1 + $0x1a0] sm:$0xf]  ;;  %v7468_v27 = vld [vmem:[%s12055_s1 + $0x1ac] sm:$0xf0]  ;;  %v5001_v29 = vor.u32 %v7436_v24, %v5000_v23  ;;  %1442 = vmatpush.bf16.msra.mxu2 %v5273_v21 }
   0xb   :  { %v5256_v28 = vld [vmem:[%s12055_s1 + $0x2a0] sm:$0xf]  ;;  %v7500_v30 = vld [vmem:[%s12055_s1 + $0x2ac] sm:$0xf0]  ;;  %v5129_v33 = vor.u32 %v7468_v27, %v5128_v26  ;;  %1455 = vmatpush.bf16.msra.mxu3 %v5401_v25 }
   0xc   :  { %v5384_v31 = vld [vmem:[%s12055_s1 + $0x3a0] sm:$0xf]  ;;  %v7532_v32 = vld [vmem:[%s12055_s1 + $0x3ac] sm:$0xf0]  ;;  %v5257_v34 = vor.u32 %v7500_v30, %v5256_v28  ;;  %1417 = vmatpush.bf16.msra.mxu0 %v5001_v29 }
   0xd   :  { %v4984_v35 = vld [vmem:[%s12055_s1 + $0x80] sm:$0xf]  ;;  %v7432_v36 = vld [vmem:[%s12055_s1 + $0x8c] sm:$0xf0]  ;;  %v5385_v38 = vor.u32 %v7532_v32, %v5384_v31  ;;  %1430 = vmatpush.bf16.msra.mxu1 %v5129_v33 }
   0xe   :  { %v5112_v37 = vld [vmem:[%s12055_s1 + $0x180] sm:$0xf]  ;;  %v7464_v39 = vld [vmem:[%s12055_s1 + $0x18c] sm:$0xf0]  ;;  %v4985_v44 = vor.u32 %v7432_v36, %v4984_v35  ;;  %1443 = vmatpush.bf16.msra.mxu2 %v5257_v34 }
   0xf   :  { %v5240_v40 = vld [vmem:[%s12055_s1 + $0x280] sm:$0xf]  ;;  %v7496_v41 = vld [vmem:[%s12055_s1 + $0x28c] sm:$0xf0]  ;;  %v5113_v45 = vor.u32 %v7464_v39, %v5112_v37  ;;  %1456 = vmatpush.bf16.msra.mxu3 %v5385_v38  ;;  %v7442_v37 = vld [vmem:[%s12055_s1 + $0xe4] sm:$0xf] }
  0x10   :  { %v5368_v42 = vld [vmem:[%s12055_s1 + $0x380] sm:$0xf]  ;;  %v7528_v43 = vld [vmem:[%s12055_s1 + $0x38c] sm:$0xf0]  ;;  %v5241_v46 = vor.u32 %v7496_v41, %v5240_v40  ;;  %1418 = vmatpush.bf16.msra.mxu0 %v4985_v44  ;;  %v5034_v38 = vld [vmem:[%s12055_s1 + $0xf0] sm:$0xf0] }
  0x11   :  { %v4968_v47 = vld [vmem:[%s12055_s1 + $0x60] sm:$0xf]  ;;  %v7428_v48 = vld [vmem:[%s12055_s1 + $0x6c] sm:$0xf0]  ;;  %v5369_v50 = vor.u32 %v7528_v43, %v5368_v42  ;;  %1431 = vmatpush.bf16.msra.mxu1 %v5113_v45 }
  0x12   :  { %v5096_v49 = vld [vmem:[%s12055_s1 + $0x160] sm:$0xf]  ;;  %v7460_v51 = vld [vmem:[%s12055_s1 + $0x16c] sm:$0xf0]  ;;  %v4969_v56 = vor.u32 %v7428_v48, %v4968_v47  ;;  %1444 = vmatpush.bf16.msra.mxu2 %v5241_v46  ;;  %v5037_v46 = vor.u32 %v7442_v37, %v5034_v38 }
  0x13   :  { %v5224_v52 = vld [vmem:[%s12055_s1 + $0x260] sm:$0xf]  ;;  %v7492_v53 = vld [vmem:[%s12055_s1 + $0x26c] sm:$0xf0]  ;;  %v5097_v57 = vor.u32 %v7460_v51, %v5096_v49  ;;  %1457 = vmatpush.bf16.msra.mxu3 %v5369_v50  ;;  %v7438_v50 = vld [vmem:[%s12055_s1 + $0xc4] sm:$0xf] }
  0x14   :  { %v5352_v54 = vld [vmem:[%s12055_s1 + $0x360] sm:$0xf]  ;;  %v7524_v55 = vld [vmem:[%s12055_s1 + $0x36c] sm:$0xf0]  ;;  %v5225_v58 = vor.u32 %v7492_v53, %v5224_v52  ;;  %1419 = vmatpush.bf16.msra.mxu0 %v4969_v56  ;;  %v5018_v51 = vld [vmem:[%s12055_s1 + $0xd0] sm:$0xf0] }
  0x15   :  { %v4952_v59 = vld [vmem:[%s12055_s1 + $0x40] sm:$0xf]  ;;  %v7424_v60 = vld [vmem:[%s12055_s1 + $0x4c] sm:$0xf0]  ;;  %v5353_v62 = vor.u32 %v7524_v55, %v5352_v54  ;;  %1432 = vmatpush.bf16.msra.mxu1 %v5097_v57 }
  0x16   :  { %v5080_v61 = vld [vmem:[%s12055_s1 + $0x140] sm:$0xf]  ;;  %v7456_v63 = vld [vmem:[%s12055_s1 + $0x14c] sm:$0xf0]  ;;  %v4953_v4 = vor.u32 %v7424_v60, %v4952_v59  ;;  %1445 = vmatpush.bf16.msra.mxu2 %v5225_v58  ;;  %v5021_v59 = vor.u32 %v7438_v50, %v5018_v51 }
  0x17   :  { %v5208_v0 = vld [vmem:[%s12055_s1 + $0x240] sm:$0xf]  ;;  %v7488_v1 = vld [vmem:[%s12055_s1 + $0x24c] sm:$0xf0]  ;;  %v5081_v5 = vor.u32 %v7456_v63, %v5080_v61  ;;  %1458 = vmatpush.bf16.msra.mxu3 %v5353_v62  ;;  %v7434_v62 = vld [vmem:[%s12055_s1 + $0xa4] sm:$0xf] }
  0x18   :  { %v5336_v2 = vld [vmem:[%s12055_s1 + $0x340] sm:$0xf]  ;;  %v7520_v3 = vld [vmem:[%s12055_s1 + $0x34c] sm:$0xf0]  ;;  %v5209_v6 = vor.u32 %v7488_v1, %v5208_v0  ;;  %1420 = vmatpush.bf16.msra.mxu0 %v4953_v4  ;;  %v5002_v63 = vld [vmem:[%s12055_s1 + $0xb0] sm:$0xf0] }
  0x19   :  { %v4936_v7 = vld [vmem:[%s12055_s1 + $0x20] sm:$0xf]  ;;  %v7420_v8 = vld [vmem:[%s12055_s1 + $0x2c] sm:$0xf0]  ;;  %v5337_v10 = vor.u32 %v7520_v3, %v5336_v2  ;;  %1433 = vmatpush.bf16.msra.mxu1 %v5081_v5  ;;  %v33_v2 = vld [vmem:[%s12056_s0 + $0x8] sm:$0xff] }
  0x1a   :  { %v5064_v9 = vld [vmem:[%s12055_s1 + $0x120] sm:$0xf]  ;;  %v7452_v11 = vld [vmem:[%s12055_s1 + $0x12c] sm:$0xf0]  ;;  %v4937_v16 = vor.u32 %v7420_v8, %v4936_v7  ;;  %1446 = vmatpush.bf16.msra.mxu2 %v5209_v6  ;;  %v276_v8 = vunpack.c.l.b16 %v33_v2 }
  0x1b   :  { %v5192_v12 = vld [vmem:[%s12055_s1 + $0x220] sm:$0xf]  ;;  %v7484_v13 = vld [vmem:[%s12055_s1 + $0x22c] sm:$0xf0]  ;;  %v5065_v19 = vor.u32 %v7452_v11, %v5064_v9  ;;  %1459 = vmatpush.bf16.msra.mxu3 %v5337_v10  ;;  %v277_v10 = vunpack.c.h.b16 %v33_v2  ;;  %v5005_v11 = vor.u32 %v7434_v62, %v5002_v63 }
  0x1c   :  { %v5320_v14 = vld [vmem:[%s12055_s1 + $0x320] sm:$0xf]  ;;  %v7516_v15 = vld [vmem:[%s12055_s1 + $0x32c] sm:$0xf0]  ;;  %v5193_v20 = vor.u32 %v7484_v13, %v5192_v12  ;;  %1421 = vmatpush.bf16.msra.mxu0 %v4937_v16  ;;  %v7430_v16 = vld [vmem:[%s12055_s1 + $0x84] sm:$0xf] }
  0x1d   :  { %v4920_v17 = vld [vmem:[%s12055_s1] sm:$0xf]  ;;  %v7416_v18 = vld [vmem:[%s12055_s1 + $0xc] sm:$0xf0]  ;;  %v5321_v24 = vor.u32 %v7516_v15, %v5320_v14  ;;  %1434 = vmatpush.bf16.msra.mxu1 %v5065_v19 }
  0x1e   :  { %v5048_v21 = vld [vmem:[%s12055_s1 + $0x100] sm:$0xf]  ;;  %v7448_v22 = vld [vmem:[%s12055_s1 + $0x10c] sm:$0xf0]  ;;  %v4921_v31 = vor.u32 %v7416_v18, %v4920_v17  ;;  %1447 = vmatpush.bf16.msra.mxu2 %v5193_v20  ;;  %v4986_v17 = vld [vmem:[%s12055_s1 + $0x90] sm:$0xf0]  ;;  %v8384_v18 = vpack.c.b16 %v276_v8, %v276_v8  ;;  %v8388_v20 = vpack.c.b16 %v277_v10, %v277_v10 }
  0x1f   :  { %v5176_v23 = vld [vmem:[%s12055_s1 + $0x200] sm:$0xf]  ;;  %v7480_v25 = vld [vmem:[%s12055_s1 + $0x20c] sm:$0xf0]  ;;  %v5049_v35 = vor.u32 %v7448_v22, %v5048_v21  ;;  %1460 = vmatpush.bf16.msra.mxu3 %v5321_v24  ;;  %v7474_v8 = vld [vmem:[%s12055_s1 + $0x1e4] sm:$0xf] }
  0x20   :  { %v5304_v26 = vld [vmem:[%s12055_s1 + $0x300] sm:$0xf]  ;;  %v7512_v27 = vld [vmem:[%s12055_s1 + $0x30c] sm:$0xf0]  ;;  %v5177_v36 = vor.u32 %v7480_v25, %v5176_v23  ;;  %1422 = vmatpush.bf16.msra.mxu0 %v4921_v31  ;;  %v7506_v10 = vld [vmem:[%s12055_s1 + $0x2e4] sm:$0xf] }
  0x21   :  { %v5544_v28 = vld [vmem:[%s12055_s1 + $0x4e0] sm:$0xf]  ;;  %v7572_v29 = vld [vmem:[%s12055_s1 + $0x4ec] sm:$0xf0]  ;;  %v5305_v39 = vor.u32 %v7512_v27, %v5304_v26  ;;  %1435 = vmatpush.bf16.msra.mxu1 %v5049_v35 }
  0x22   :  { %v5672_v30 = vld [vmem:[%s12055_s1 + $0x5e0] sm:$0xf]  ;;  %v7604_v32 = vld [vmem:[%s12055_s1 + $0x5ec] sm:$0xf0]  ;;  %v5545_v40 = vor.u32 %v7572_v29, %v5544_v28  ;;  %1448 = vmatpush.bf16.msra.mxu2 %v5177_v36  ;;  %v4989_v28 = vor.u32 %v7430_v16, %v4986_v17 }
  0x23   :  { %v5800_v33 = vld [vmem:[%s12055_s1 + $0x6e0] sm:$0xf]  ;;  %v7636_v34 = vld [vmem:[%s12055_s1 + $0x6ec] sm:$0xf0]  ;;  %v5673_v41 = vor.u32 %v7604_v32, %v5672_v30  ;;  %1461 = vmatpush.bf16.msra.mxu3 %v5305_v39  ;;  %v7426_v32 = vld [vmem:[%s12055_s1 + $0x64] sm:$0xf] }
  0x24   :  { %v5801_v42 = vor.u32 %v7636_v34, %v5800_v33  ;;  %v5528_v43 = vld [vmem:[%s12055_s1 + $0x4c0] sm:$0xf]  ;;  %v7568_v44 = vld [vmem:[%s12055_s1 + $0x4cc] sm:$0xf0]  ;;  %1467 = vmatpush.bf16.msrb.mxu0 %v5545_v40  ;;  %v4970_v33 = vld [vmem:[%s12055_s1 + $0x70] sm:$0xf0] }
  0x25   :  { %v5656_v45 = vld [vmem:[%s12055_s1 + $0x5c0] sm:$0xf]  ;;  %v7600_v47 = vld [vmem:[%s12055_s1 + $0x5cc] sm:$0xf0]  ;;  %v5529_v52 = vor.u32 %v7568_v44, %v5528_v43  ;;  %1480 = vmatpush.bf16.msrb.mxu1 %v5673_v41  ;;  %1449 = vmatmul.bf16.vlgmr.msra.gmra.mxu2 %v8384_v18  ;;  %v4973_v40 = vor.u32 %v7426_v32, %v4970_v33  ;;  %v7422_v44 = vld [vmem:[%s12055_s1 + $0x44] sm:$0xf] }
  0x26   :  { %v5784_v48 = vld [vmem:[%s12055_s1 + $0x6c0] sm:$0xf]  ;;  %v7632_v49 = vld [vmem:[%s12055_s1 + $0x6cc] sm:$0xf0]  ;;  %1493 = vmatpush.bf16.msrb.mxu2 %v5801_v42  ;;  %v5657_v54 = vor.u32 %v7600_v47, %v5656_v45  ;;  %1462 = vmatmul.bf16.vlgmr.msra.gmra.mxu3 %v8388_v20  ;;  %v4954_v45 = vld [vmem:[%s12055_s1 + $0x50] sm:$0xf0] }
  0x27   :  { %v5512_v53 = vld [vmem:[%s12055_s1 + $0x4a0] sm:$0xf]  ;;  %v5785_v55 = vor.u32 %v7632_v49, %v5784_v48  ;;  %v7564_v56 = vld [vmem:[%s12055_s1 + $0x4ac] sm:$0xf0]  ;;  %1506 = vmatpush.bf16.msrb.mxu3 %v5037_v46  ;;  %v7502_v32 = vld [vmem:[%s12055_s1 + $0x2c4] sm:$0xf] }
  0x28   :  { %v5640_v57 = vld [vmem:[%s12055_s1 + $0x5a0] sm:$0xf]  ;;  %v7596_v58 = vld [vmem:[%s12055_s1 + $0x5ac] sm:$0xf0]  ;;  %1468 = vmatpush.bf16.msrb.mxu0 %v5529_v52  ;;  %v5513_v0 = vor.u32 %v7564_v56, %v5512_v53  ;;  %v4957_v52 = vor.u32 %v7422_v44, %v4954_v45  ;;  %v7418_v56 = vld [vmem:[%s12055_s1 + $0x24] sm:$0xf] }
  0x29   :  { %v5768_v60 = vld [vmem:[%s12055_s1 + $0x6a0] sm:$0xf]  ;;  %v7628_v61 = vld [vmem:[%s12055_s1 + $0x6ac] sm:$0xf0]  ;;  %v5641_v1 = vor.u32 %v7596_v58, %v5640_v57  ;;  %1481 = vmatpush.bf16.msrb.mxu1 %v5657_v54  ;;  %v4938_v57 = vld [vmem:[%s12055_s1 + $0x30] sm:$0xf0] }
  0x2a   :  { %v32_v3 = vld [vmem:[%s12056_s0] sm:$0xff]  ;;  %1494 = vmatpush.bf16.msrb.mxu2 %v5785_v55  ;;  %v5769_v4 = vor.u32 %v7628_v61, %v5768_v60  ;;  %v7560_v6 = vld [vmem:[%s12055_s1 + $0x48c] sm:$0xf0] }
  0x2b   :  { %v5496_v5 = vld [vmem:[%s12055_s1 + $0x480] sm:$0xf]  ;;  %v274_v9 = vunpack.c.l.b16 %v32_v3  ;;  %1507 = vmatpush.bf16.msrb.mxu3 %v5021_v59  ;;  %v7592_v12 = vld [vmem:[%s12055_s1 + $0x58c] sm:$0xf0]  ;;  %v275_v15 = vunpack.c.h.b16 %v32_v3  ;;  %v35_v3 = vld [vmem:[%s12056_s0 + $0x18] sm:$0xf] }
  0x2c   :  { %v5624_v7 = vld [vmem:[%s12055_s1 + $0x580] sm:$0xf]  ;;  %v7624_v14 = vld [vmem:[%s12055_s1 + $0x68c] sm:$0xf0]  ;;  %1469 = vmatpush.bf16.msrb.mxu0 %v5513_v0  ;;  %v5497_v21 = vor.u32 %v7560_v6, %v5496_v5  ;;  %v7414_v5 = vld [vmem:[%s12055_s1 + $0x4] sm:$0xf] }
  0x2d   :  { %v5752_v13 = vld [vmem:[%s12055_s1 + $0x680] sm:$0xf]  ;;  %v8386_v19 = vpack.c.b16 %v274_v9, %v274_v9  ;;  %v8390_v22 = vpack.c.b16 %v275_v15, %v275_v15  ;;  %1482 = vmatpush.bf16.msrb.mxu1 %v5641_v1  ;;  %v5625_v23 = vor.u32 %v7592_v12, %v5624_v7  ;;  %v7556_v26 = vld [vmem:[%s12055_s1 + $0x46c] sm:$0xf0]  ;;  %v4922_v6 = vld [vmem:[%s12055_s1 + $0x10] sm:$0xf0]  ;;  %v280_v15 = vunpack.c.l.b16 %v35_v3 }
  0x2e   :  { %1495 = vmatpush.bf16.msrb.mxu2 %v5769_v4  ;;  %v5753_v24 = vor.u32 %v7624_v14, %v5752_v13  ;;  %v5480_v25 = vld [vmem:[%s12055_s1 + $0x460] sm:$0xf]  ;;  %v7588_v29 = vld [vmem:[%s12055_s1 + $0x56c] sm:$0xf0]  ;;  %v4941_v4 = vor.u32 %v7418_v56, %v4938_v57  ;;  %v5162_v9 = vld [vmem:[%s12055_s1 + $0x1f0] sm:$0xf0] }
  0x2f   :  { %v5608_v27 = vld [vmem:[%s12055_s1 + $0x560] sm:$0xf]  ;;  %1508 = vmatpush.bf16.msrb.mxu3 %v5005_v11  ;;  %v7620_v31 = vld [vmem:[%s12055_s1 + $0x66c] sm:$0xf0]  ;;  %1423 = vmatmul.bf16.vlgmr.msra.gmra.mxu0 %v8386_v19  ;;  %v5481_v34 = vor.u32 %v7556_v26, %v5480_v25  ;;  %v5290_v12 = vld [vmem:[%s12055_s1 + $0x2f0] sm:$0xf0]  ;;  %v4925_v26 = vor.u32 %v7414_v5, %v4922_v6 }
  0x30   :  { %v5736_v30 = vld [vmem:[%s12055_s1 + $0x660] sm:$0xf]  ;;  %1470 = vmatpush.bf16.msrb.mxu0 %v5497_v21  ;;  %1436 = vmatmul.bf16.vlgmr.msra.gmra.mxu1 %v8390_v22  ;;  %v5609_v35 = vor.u32 %v7588_v29, %v5608_v27  ;;  %v7552_v38 = vld [vmem:[%s12055_s1 + $0x44c] sm:$0xf0]  ;;  %v7538_v13 = vld [vmem:[%s12055_s1 + $0x3e4] sm:$0xf]  ;;  %v5165_v27 = vor.u32 %v7474_v8, %v5162_v9 }
  0x31   :  { %1483 = vmatpush.bf16.msrb.mxu1 %v5625_v23  ;;  %v5737_v36 = vor.u32 %v7620_v31, %v5736_v30  ;;  %v5464_v37 = vld [vmem:[%s12055_s1 + $0x440] sm:$0xf]  ;;  %v7584_v41 = vld [vmem:[%s12055_s1 + $0x54c] sm:$0xf0]  ;;  %v5418_v14 = vld [vmem:[%s12055_s1 + $0x3f0] sm:$0xf0] }
  0x32   :  { %1496 = vmatpush.bf16.msrb.mxu2 %v5753_v24  ;;  %v5592_v39 = vld [vmem:[%s12055_s1 + $0x540] sm:$0xf]  ;;  %v7616_v43 = vld [vmem:[%s12055_s1 + $0x64c] sm:$0xf0]  ;;  %v5465_v46 = vor.u32 %v7552_v38, %v5464_v37  ;;  %v7570_v21 = vld [vmem:[%s12055_s1 + $0x4e4] sm:$0xf]  ;;  %v5421_v29 = vor.u32 %v7538_v13, %v5418_v14  ;;  %v8540_v37 = vpack.c.b16 %v280_v15, %v280_v15 }
  0x33   :  { %1509 = vmatpush.bf16.msrb.mxu3 %v4989_v28  ;;  %v5720_v42 = vld [vmem:[%s12055_s1 + $0x640] sm:$0xf]  ;;  %v5593_v47 = vor.u32 %v7584_v41, %v5592_v39  ;;  %v7548_v50 = vld [vmem:[%s12055_s1 + $0x42c] sm:$0xf0]  ;;  %v5546_v23 = vld [vmem:[%s12055_s1 + $0x4f0] sm:$0xf0]  ;;  %v5293_v28 = vor.u32 %v7506_v10, %v5290_v12 }
  0x34   :  { %1471 = vmatpush.bf16.msrb.mxu0 %v5481_v34  ;;  %v5721_v48 = vor.u32 %v7616_v43, %v5720_v42  ;;  %v5448_v49 = vld [vmem:[%s12055_s1 + $0x420] sm:$0xf]  ;;  %v7580_v53 = vld [vmem:[%s12055_s1 + $0x52c] sm:$0xf0]  ;;  %v7470_v30 = vld [vmem:[%s12055_s1 + $0x1c4] sm:$0xf]  ;;  %v5549_v33 = vor.u32 %v7570_v21, %v5546_v23 }
  0x35   :  { %1484 = vmatpush.bf16.msrb.mxu1 %v5609_v35  ;;  %v5576_v51 = vld [vmem:[%s12055_s1 + $0x520] sm:$0xf]  ;;  %v7612_v55 = vld [vmem:[%s12055_s1 + $0x62c] sm:$0xf0]  ;;  %v5449_v59 = vor.u32 %v7548_v50, %v5448_v49  ;;  %v5146_v31 = vld [vmem:[%s12055_s1 + $0x1d0] sm:$0xf0] }
  0x36   :  { %1497 = vmatpush.bf16.msrb.mxu2 %v5737_v36  ;;  %v5704_v54 = vld [vmem:[%s12055_s1 + $0x620] sm:$0xf]  ;;  %v7544_v60 = vld [vmem:[%s12055_s1 + $0x40c] sm:$0xf0]  ;;  %v5577_v63 = vor.u32 %v7580_v53, %v5576_v51  ;;  %v5274_v34 = vld [vmem:[%s12055_s1 + $0x2d0] sm:$0xf0]  ;;  %v5149_v42 = vor.u32 %v7470_v30, %v5146_v31 }
  0x37   :  { %1510 = vmatpush.bf16.msrb.mxu3 %v4973_v40  ;;  %v5432_v58 = vld [vmem:[%s12055_s1 + $0x400] sm:$0xf]  ;;  %v7576_v62 = vld [vmem:[%s12055_s1 + $0x50c] sm:$0xf0]  ;;  %v5705_v0 = vor.u32 %v7612_v55, %v5704_v54  ;;  %v7534_v35 = vld [vmem:[%s12055_s1 + $0x3c4] sm:$0xf]  ;;  %v5277_v43 = vor.u32 %v7502_v32, %v5274_v34 }
  0x38   :  { %1472 = vmatpush.bf16.msrb.mxu0 %v5465_v46  ;;  %v5560_v61 = vld [vmem:[%s12055_s1 + $0x500] sm:$0xf]  ;;  %v7608_v2 = vld [vmem:[%s12055_s1 + $0x60c] sm:$0xf0]  ;;  %v5433_v11 = vor.u32 %v7544_v60, %v5432_v58  ;;  %v5402_v36 = vld [vmem:[%s12055_s1 + $0x3d0] sm:$0xf0] }
  0x39   :  { %1485 = vmatpush.bf16.msrb.mxu1 %v5593_v47  ;;  %v5688_v1 = vld [vmem:[%s12055_s1 + $0x600] sm:$0xf]  ;;  %v34_v7 = vld [vmem:[%s12056_s0 + $0x10] sm:$0xff]  ;;  %v5561_v16 = vor.u32 %v7576_v62, %v5560_v61  ;;  %v7566_v38 = vld [vmem:[%s12055_s1 + $0x4c4] sm:$0xf]  ;;  %v5405_v44 = vor.u32 %v7534_v35, %v5402_v36 }
  0x3a   :  { %1498 = vmatpush.bf16.msrb.mxu2 %v5721_v48  ;;  %v5689_v17 = vor.u32 %v7608_v2, %v5688_v1  ;;  %v278_v24 = vunpack.c.l.b16 %v34_v7  ;;  %v279_v25 = vunpack.c.h.b16 %v34_v7  ;;  %v5530_v39 = vld [vmem:[%s12055_s1 + $0x4d0] sm:$0xf0]  ;;  %v7466_v45 = vld [vmem:[%s12055_s1 + $0x1a4] sm:$0xf] }
  0x3b   :  { %1511 = vmatpush.bf16.msrb.mxu3 %v4957_v52  ;;  %v5130_v46 = vld [vmem:[%s12055_s1 + $0x1b0] sm:$0xf0]  ;;  %v7498_v47 = vld [vmem:[%s12055_s1 + $0x2a4] sm:$0xf]  ;;  %v5533_v48 = vor.u32 %v7566_v38, %v5530_v39 }
  0x3c   :  { %1473 = vmatpush.bf16.msrb.mxu0 %v5449_v59  ;;  %v8548_v40 = vpack.c.b16 %v278_v24, %v278_v24  ;;  %v8550_v41 = vpack.c.b16 %v279_v25, %v279_v25  ;;  %v5258_v49 = vld [vmem:[%s12055_s1 + $0x2b0] sm:$0xf0]  ;;  %v7530_v50 = vld [vmem:[%s12055_s1 + $0x3a4] sm:$0xf]  ;;  %v5133_v54 = vor.u32 %v7466_v45, %v5130_v46 }
  0x3d   :  { %1486 = vmatpush.bf16.msrb.mxu1 %v5577_v63  ;;  %v5386_v51 = vld [vmem:[%s12055_s1 + $0x3b0] sm:$0xf0]  ;;  %v7562_v52 = vld [vmem:[%s12055_s1 + $0x4a4] sm:$0xf]  ;;  %v5261_v55 = vor.u32 %v7498_v47, %v5258_v49 }
  0x3e   :  { %1499 = vmatpush.bf16.msrb.mxu2 %v5705_v0  ;;  %v5514_v53 = vld [vmem:[%s12055_s1 + $0x4b0] sm:$0xf0]  ;;  %v5389_v56 = vor.u32 %v7530_v50, %v5386_v51  ;;  %v7462_v57 = vld [vmem:[%s12055_s1 + $0x184] sm:$0xf] }
  0x3f   :  { %1512 = vmatpush.bf16.msrb.mxu3 %v4941_v4  ;;  %v5114_v58 = vld [vmem:[%s12055_s1 + $0x190] sm:$0xf0]  ;;  %v7494_v59 = vld [vmem:[%s12055_s1 + $0x284] sm:$0xf]  ;;  %v5517_v60 = vor.u32 %v7562_v52, %v5514_v53 }
  0x40   :  { %1474 = vmatpush.bf16.msrb.mxu0 %v5433_v11  ;;  %v5242_v61 = vld [vmem:[%s12055_s1 + $0x290] sm:$0xf0]  ;;  %v7526_v62 = vld [vmem:[%s12055_s1 + $0x384] sm:$0xf]  ;;  %v5117_v2 = vor.u32 %v7462_v57, %v5114_v58 }
  0x41   :  { %1487 = vmatpush.bf16.msrb.mxu1 %v5561_v16  ;;  %v5370_v63 = vld [vmem:[%s12055_s1 + $0x390] sm:$0xf0]  ;;  %v7558_v0 = vld [vmem:[%s12055_s1 + $0x484] sm:$0xf]  ;;  %v5245_v3 = vor.u32 %v7494_v59, %v5242_v61 }
  0x42   :  { %1500 = vmatpush.bf16.msrb.mxu2 %v5689_v17  ;;  %v5498_v1 = vld [vmem:[%s12055_s1 + $0x490] sm:$0xf0]  ;;  %v5373_v4 = vor.u32 %v7526_v62, %v5370_v63  ;;  %v7458_v5 = vld [vmem:[%s12055_s1 + $0x164] sm:$0xf]  ;;  %v5040_v62 = vld [vmem:[%s12055_s1 + $0xe8] sm:$0xf] }
  0x43   :  { %1513 = vmatpush.bf16.msrb.mxu3 %v4925_v26  ;;  %1475 = vmatmul.bf16.vlgmr.msrb.gmra.mxu0 %v8548_v40  ;;  %v5098_v6 = vld [vmem:[%s12055_s1 + $0x170] sm:$0xf0]  ;;  %v7490_v7 = vld [vmem:[%s12055_s1 + $0x264] sm:$0xf]  ;;  %v5501_v8 = vor.u32 %v7558_v0, %v5498_v1  ;;  %v7445_v63 = vld [vmem:[%s12055_s1 + $0xf4] sm:$0xf0] }
  0x44   :  { %1519 = vmatpush.bf16.msra.mxu0 %v5165_v27  ;;  %1488 = vmatmul.bf16.vlgmr.msrb.gmra.mxu1 %v8550_v41  ;;  %v5226_v9 = vld [vmem:[%s12055_s1 + $0x270] sm:$0xf0]  ;;  %v7522_v10 = vld [vmem:[%s12055_s1 + $0x364] sm:$0xf]  ;;  %v5101_v14 = vor.u32 %v7458_v5, %v5098_v6 }
  0x45   :  { %1532 = vmatpush.bf16.msra.mxu1 %v5293_v28  ;;  %1501 = vmatmul.bf16.vlgmr.msrb.gmra.mxu2 %v8540_v37  ;;  %v5354_v11 = vld [vmem:[%s12055_s1 + $0x370] sm:$0xf0]  ;;  %v7554_v12 = vld [vmem:[%s12055_s1 + $0x464] sm:$0xf]  ;;  %v5229_v15 = vor.u32 %v7490_v7, %v5226_v9  ;;  %v5041_v7 = vor.u32 %v7445_v63, %v5040_v62 }
  0x46   :  { %1545 = vmatpush.bf16.msra.mxu2 %v5421_v29  ;;  %1514 = vmatmul.bf16.vlgmr.msrb.gmra.mxu3 %v8386_v19  ;;  %v5482_v13 = vld [vmem:[%s12055_s1 + $0x470] sm:$0xf0]  ;;  %v5357_v16 = vor.u32 %v7522_v10, %v5354_v11  ;;  %v7454_v17 = vld [vmem:[%s12055_s1 + $0x144] sm:$0xf] }
  0x47   :  { %1558 = vmatpush.bf16.msra.mxu3 %v5549_v33  ;;  %v5082_v21 = vld [vmem:[%s12055_s1 + $0x150] sm:$0xf0]  ;;  %v7486_v23 = vld [vmem:[%s12055_s1 + $0x244] sm:$0xf]  ;;  %v5485_v24 = vor.u32 %v7554_v12, %v5482_v13  ;;  %v5024_v13 = vld [vmem:[%s12055_s1 + $0xc8] sm:$0xf] }
  0x48   :  { %1520 = vmatpush.bf16.msra.mxu0 %v5149_v42  ;;  %v5210_v25 = vld [vmem:[%s12055_s1 + $0x250] sm:$0xf0]  ;;  %v7518_v26 = vld [vmem:[%s12055_s1 + $0x344] sm:$0xf]  ;;  %v5085_v30 = vor.u32 %v7454_v17, %v5082_v21 }
  0x49   :  { %1533 = vmatpush.bf16.msra.mxu1 %v5277_v43  ;;  %v5338_v27 = vld [vmem:[%s12055_s1 + $0x350] sm:$0xf0]  ;;  %v7550_v28 = vld [vmem:[%s12055_s1 + $0x444] sm:$0xf]  ;;  %v5213_v31 = vor.u32 %v7486_v23, %v5210_v25 }
  0x4a   :  { %1546 = vmatpush.bf16.msra.mxu2 %v5405_v44  ;;  %v5466_v29 = vld [vmem:[%s12055_s1 + $0x450] sm:$0xf0]  ;;  %v5341_v32 = vor.u32 %v7518_v26, %v5338_v27  ;;  %v7450_v33 = vld [vmem:[%s12055_s1 + $0x124] sm:$0xf] }
  0x4b   :  { %1559 = vmatpush.bf16.msra.mxu3 %v5533_v48  ;;  %v5066_v34 = vld [vmem:[%s12055_s1 + $0x130] sm:$0xf0]  ;;  %v7482_v35 = vld [vmem:[%s12055_s1 + $0x224] sm:$0xf]  ;;  %v5469_v36 = vor.u32 %v7550_v28, %v5466_v29  ;;  %v5008_v29 = vld [vmem:[%s12055_s1 + $0xa8] sm:$0xf] }
  0x4c   :  { %1521 = vmatpush.bf16.msra.mxu0 %v5133_v54  ;;  %v5194_v38 = vld [vmem:[%s12055_s1 + $0x230] sm:$0xf0]  ;;  %v7514_v39 = vld [vmem:[%s12055_s1 + $0x324] sm:$0xf]  ;;  %v5069_v45 = vor.u32 %v7450_v33, %v5066_v34 }
  0x4d   :  { %1534 = vmatpush.bf16.msra.mxu1 %v5261_v55  ;;  %v5322_v42 = vld [vmem:[%s12055_s1 + $0x330] sm:$0xf0]  ;;  %v7546_v43 = vld [vmem:[%s12055_s1 + $0x424] sm:$0xf]  ;;  %v5197_v48 = vor.u32 %v7482_v35, %v5194_v38 }
  0x4e   :  { %1547 = vmatpush.bf16.msra.mxu2 %v5389_v56  ;;  %v5450_v44 = vld [vmem:[%s12055_s1 + $0x430] sm:$0xf0]  ;;  %v7446_v46 = vld [vmem:[%s12055_s1 + $0x104] sm:$0xf]  ;;  %v5325_v49 = vor.u32 %v7514_v39, %v5322_v42 }
  0x4f   :  { %1560 = vmatpush.bf16.msra.mxu3 %v5517_v60  ;;  %v5050_v47 = vld [vmem:[%s12055_s1 + $0x110] sm:$0xf0]  ;;  %v7478_v50 = vld [vmem:[%s12055_s1 + $0x204] sm:$0xf]  ;;  %v5453_v53 = vor.u32 %v7546_v43, %v5450_v44  ;;  %v4992_v44 = vld [vmem:[%s12055_s1 + $0x88] sm:$0xf] }
  0x50   :  { %1522 = vmatpush.bf16.msra.mxu0 %v5117_v2  ;;  %v5178_v51 = vld [vmem:[%s12055_s1 + $0x210] sm:$0xf0]  ;;  %v7510_v52 = vld [vmem:[%s12055_s1 + $0x304] sm:$0xf]  ;;  %v5053_v60 = vor.u32 %v7446_v46, %v5050_v47  ;;  %v5168_v2 = vld [vmem:[%s12055_s1 + $0x1e8] sm:$0xf] }
  0x51   :  { %1535 = vmatpush.bf16.msra.mxu1 %v5245_v3  ;;  %v5306_v54 = vld [vmem:[%s12055_s1 + $0x310] sm:$0xf0]  ;;  %v7542_v55 = vld [vmem:[%s12055_s1 + $0x404] sm:$0xf]  ;;  %v5181_v0 = vor.u32 %v7478_v50, %v5178_v51  ;;  %v7477_v3 = vld [vmem:[%s12055_s1 + $0x1f4] sm:$0xf0] }
  0x52   :  { %1548 = vmatpush.bf16.msra.mxu2 %v5373_v4  ;;  %v5434_v56 = vld [vmem:[%s12055_s1 + $0x410] sm:$0xf0]  ;;  %v7602_v57 = vld [vmem:[%s12055_s1 + $0x5e4] sm:$0xf]  ;;  %v5309_v1 = vor.u32 %v7510_v52, %v5306_v54  ;;  %v5169_v11 = vor.u32 %v7477_v3, %v5168_v2  ;;  %v5120_v46 = vld [vmem:[%s12055_s1 + $0x188] sm:$0xf] }
  0x53   :  { %1561 = vmatpush.bf16.msra.mxu3 %v5501_v8  ;;  %v5674_v58 = vld [vmem:[%s12055_s1 + $0x5f0] sm:$0xf0]  ;;  %v7634_v59 = vld [vmem:[%s12055_s1 + $0x6e4] sm:$0xf]  ;;  %v5437_v4 = vor.u32 %v7542_v55, %v5434_v56  ;;  %v7465_v47 = vld [vmem:[%s12055_s1 + $0x194] sm:$0xf0] }
  0x54   :  { %1523 = vmatpush.bf16.msra.mxu0 %v5101_v14  ;;  %v5802_v61 = vld [vmem:[%s12055_s1 + $0x6f0] sm:$0xf0]  ;;  %v5677_v5 = vor.u32 %v7602_v57, %v5674_v58  ;;  %v7598_v8 = vld [vmem:[%s12055_s1 + $0x5c4] sm:$0xf]  ;;  %v7441_v14 = vld [vmem:[%s12055_s1 + $0xd4] sm:$0xf0]  ;;  %v5121_v54 = vor.u32 %v7465_v47, %v5120_v46 }
  0x55   :  { %1536 = vmatpush.bf16.msra.mxu1 %v5229_v15  ;;  %v5805_v6 = vor.u32 %v7634_v59, %v5802_v61  ;;  %v5658_v9 = vld [vmem:[%s12055_s1 + $0x5d0] sm:$0xf0]  ;;  %v7630_v10 = vld [vmem:[%s12055_s1 + $0x6c4] sm:$0xf]  ;;  %v5152_v15 = vld [vmem:[%s12055_s1 + $0x1c8] sm:$0xf]  ;;  %v5025_v23 = vor.u32 %v7441_v14, %v5024_v13 }
  0x56   :  { %1549 = vmatpush.bf16.msra.mxu2 %v5357_v16  ;;  %v5786_v12 = vld [vmem:[%s12055_s1 + $0x6d0] sm:$0xf0]  ;;  %v7473_v16 = vld [vmem:[%s12055_s1 + $0x1d4] sm:$0xf0]  ;;  %v5661_v17 = vor.u32 %v7598_v8, %v5658_v9  ;;  %v7626_v26 = vld [vmem:[%s12055_s1 + $0x6a4] sm:$0xf] }
  0x57   :  { %1562 = vmatpush.bf16.msra.mxu3 %v5485_v24  ;;  %v5789_v21 = vor.u32 %v7630_v10, %v5786_v12  ;;  %v7594_v24 = vld [vmem:[%s12055_s1 + $0x5a4] sm:$0xf]  ;;  %v5642_v25 = vld [vmem:[%s12055_s1 + $0x5b0] sm:$0xf0]  ;;  %v5153_v27 = vor.u32 %v7473_v16, %v5152_v15  ;;  %v4976_v56 = vld [vmem:[%s12055_s1 + $0x68] sm:$0xf] }
  0x58   :  { %1524 = vmatpush.bf16.msra.mxu0 %v5085_v30  ;;  %v5770_v28 = vld [vmem:[%s12055_s1 + $0x6b0] sm:$0xf0]  ;;  %v7437_v30 = vld [vmem:[%s12055_s1 + $0xb4] sm:$0xf0]  ;;  %v5645_v33 = vor.u32 %v7594_v24, %v5642_v25  ;;  %v7622_v39 = vld [vmem:[%s12055_s1 + $0x684] sm:$0xf] }
  0x59   :  { %1537 = vmatpush.bf16.msra.mxu1 %v5213_v31  ;;  %v5136_v31 = vld [vmem:[%s12055_s1 + $0x1a8] sm:$0xf]  ;;  %v5773_v34 = vor.u32 %v7626_v26, %v5770_v28  ;;  %v5009_v35 = vor.u32 %v7437_v30, %v5008_v29  ;;  %v5626_v38 = vld [vmem:[%s12055_s1 + $0x590] sm:$0xf0]  ;;  %v7586_v51 = vld [vmem:[%s12055_s1 + $0x564] sm:$0xf] }
  0x5a   :  { %1550 = vmatpush.bf16.msra.mxu2 %v5341_v32  ;;  %v7469_v32 = vld [vmem:[%s12055_s1 + $0x1b4] sm:$0xf0]  ;;  %v5754_v43 = vld [vmem:[%s12055_s1 + $0x690] sm:$0xf0]  ;;  %v5104_v58 = vld [vmem:[%s12055_s1 + $0x168] sm:$0xf] }
  0x5b   :  { %1563 = vmatpush.bf16.msra.mxu3 %v5469_v36  ;;  %v7590_v36 = vld [vmem:[%s12055_s1 + $0x584] sm:$0xf]  ;;  %v5137_v42 = vor.u32 %v7469_v32, %v5136_v31  ;;  %v5610_v52 = vld [vmem:[%s12055_s1 + $0x570] sm:$0xf0]  ;;  %v7429_v57 = vld [vmem:[%s12055_s1 + $0x74] sm:$0xf0] }
  0x5c   :  { %1525 = vmatpush.bf16.msra.mxu0 %v5069_v45  ;;  %v7433_v45 = vld [vmem:[%s12055_s1 + $0x94] sm:$0xf0]  ;;  %v5738_v55 = vld [vmem:[%s12055_s1 + $0x670] sm:$0xf0]  ;;  %v4977_v62 = vor.u32 %v7429_v57, %v4976_v56  ;;  %v7582_v63 = vld [vmem:[%s12055_s1 + $0x544] sm:$0xf] }
  0x5d   :  { %1538 = vmatpush.bf16.msra.mxu1 %v5197_v48  ;;  %v5629_v48 = vor.u32 %v7590_v36, %v5626_v38  ;;  %v4993_v50 = vor.u32 %v7433_v45, %v4992_v44  ;;  %v7461_v59 = vld [vmem:[%s12055_s1 + $0x174] sm:$0xf0]  ;;  %v5722_v3 = vld [vmem:[%s12055_s1 + $0x650] sm:$0xf0]  ;;  %v7610_v13 = vld [vmem:[%s12055_s1 + $0x624] sm:$0xf] }
  0x5e   :  { %1551 = vmatpush.bf16.msra.mxu2 %v5325_v49  ;;  %v5757_v49 = vor.u32 %v7622_v39, %v5754_v43  ;;  %v5105_v2 = vor.u32 %v7461_v59, %v5104_v58  ;;  %v5578_v12 = vld [vmem:[%s12055_s1 + $0x530] sm:$0xf0]  ;;  %v4944_v16 = vld [vmem:[%s12055_s1 + $0x28] sm:$0xf]  ;;  %v7574_v25 = vld [vmem:[%s12055_s1 + $0x504] sm:$0xf] }
  0x5f   :  { %1564 = vmatpush.bf16.msra.mxu3 %v5453_v53  ;;  %v7618_v53 = vld [vmem:[%s12055_s1 + $0x664] sm:$0xf]  ;;  %v5706_v15 = vld [vmem:[%s12055_s1 + $0x630] sm:$0xf0]  ;;  %v4928_v31 = vld [vmem:[%s12055_s1 + $0x8] sm:$0xf] }
  0x60   :  { %1526 = vmatpush.bf16.msra.mxu0 %v5053_v60  ;;  %v5613_v60 = vor.u32 %v7586_v51, %v5610_v52  ;;  %v5741_v61 = vor.u32 %v7618_v53, %v5738_v55  ;;  %v5562_v26 = vld [vmem:[%s12055_s1 + $0x510] sm:$0xf0]  ;;  %v7606_v29 = vld [vmem:[%s12055_s1 + $0x604] sm:$0xf]  ;;  %v5296_v36 = vld [vmem:[%s12055_s1 + $0x2e8] sm:$0xf] }
  0x61   :  { %1539 = vmatpush.bf16.msra.mxu1 %v5181_v0  ;;  %v5594_v0 = vld [vmem:[%s12055_s1 + $0x550] sm:$0xf0]  ;;  %v7509_v38 = vld [vmem:[%s12055_s1 + $0x2f4] sm:$0xf0]  ;;  %v5424_v39 = vld [vmem:[%s12055_s1 + $0x3e8] sm:$0xf] }
  0x62   :  { %1552 = vmatpush.bf16.msra.mxu2 %v5309_v1  ;;  %v7614_v1 = vld [vmem:[%s12055_s1 + $0x644] sm:$0xf]  ;;  %v5597_v8 = vor.u32 %v7582_v63, %v5594_v0  ;;  %v5690_v30 = vld [vmem:[%s12055_s1 + $0x610] sm:$0xf0]  ;;  %v7541_v43 = vld [vmem:[%s12055_s1 + $0x3f4] sm:$0xf0]  ;;  %v5297_v51 = vor.u32 %v7509_v38, %v5296_v36 }
  0x63   :  { %1565 = vmatpush.bf16.msra.mxu3 %v5437_v4  ;;  %1527 = vmatmul.bf16.vlgmr.msra.gmra.mxu0 %v8390_v22  ;;  %v4960_v4 = vld [vmem:[%s12055_s1 + $0x48] sm:$0xf]  ;;  %v5725_v9 = vor.u32 %v7614_v1, %v5722_v3  ;;  %v7573_v45 = vld [vmem:[%s12055_s1 + $0x4f4] sm:$0xf0]  ;;  %v5693_v46 = vor.u32 %v7606_v29, %v5690_v30  ;;  %v5425_v52 = vor.u32 %v7541_v43, %v5424_v39 }
  0x64   :  { %1571 = vmatpush.bf16.msrb.mxu0 %v5677_v5  ;;  %1540 = vmatmul.bf16.vlgmr.msra.gmra.mxu1 %v8384_v18  ;;  %v7425_v5 = vld [vmem:[%s12055_s1 + $0x54] sm:$0xf0]  ;;  %v5552_v44 = vld [vmem:[%s12055_s1 + $0x4e8] sm:$0xf] }
  0x65   :  { %1584 = vmatpush.bf16.msrb.mxu1 %v5805_v6  ;;  %1553 = vmatmul.bf16.vlgmr.msra.gmra.mxu2 %v8388_v20  ;;  %v5088_v6 = vld [vmem:[%s12055_s1 + $0x148] sm:$0xf]  ;;  %v4961_v10 = vor.u32 %v7425_v5, %v4960_v4  ;;  %v5553_v53 = vor.u32 %v7573_v45, %v5552_v44  ;;  %v7505_v55 = vld [vmem:[%s12055_s1 + $0x2d4] sm:$0xf0] }
  0x66   :  { %1597 = vmatpush.bf16.msrb.mxu2 %v5041_v7  ;;  %1566 = vmatmul.bf16.vlgmr.msra.gmra.mxu3 %v8548_v40  ;;  %v7457_v7 = vld [vmem:[%s12055_s1 + $0x154] sm:$0xf0]  ;;  %v5408_v56 = vld [vmem:[%s12055_s1 + $0x3c8] sm:$0xf] }
  0x67   :  { %1610 = vmatpush.bf16.msrb.mxu3 %v5169_v11  ;;  %v7578_v11 = vld [vmem:[%s12055_s1 + $0x524] sm:$0xf]  ;;  %v5089_v14 = vor.u32 %v7457_v7, %v5088_v6  ;;  %v7537_v58 = vld [vmem:[%s12055_s1 + $0x3d4] sm:$0xf0]  ;;  %v5536_v59 = vld [vmem:[%s12055_s1 + $0x4c8] sm:$0xf] }
  0x68   :  { %1572 = vmatpush.bf16.msrb.mxu0 %v5661_v17  ;;  %v7421_v17 = vld [vmem:[%s12055_s1 + $0x34] sm:$0xf0]  ;;  %v5581_v24 = vor.u32 %v7578_v11, %v5578_v12  ;;  %v5409_v0 = vor.u32 %v7537_v58, %v5408_v56  ;;  %v5392_v4 = vld [vmem:[%s12055_s1 + $0x3a8] sm:$0xf] }
  0x69   :  { %1585 = vmatpush.bf16.msrb.mxu1 %v5789_v21  ;;  %v5072_v21 = vld [vmem:[%s12055_s1 + $0x128] sm:$0xf]  ;;  %v4945_v28 = vor.u32 %v7421_v17, %v4944_v16  ;;  %v7501_v3 = vld [vmem:[%s12055_s1 + $0x2b4] sm:$0xf0] }
  0x6a   :  { %1598 = vmatpush.bf16.msrb.mxu2 %v5025_v23  ;;  %v7453_v23 = vld [vmem:[%s12055_s1 + $0x134] sm:$0xf0]  ;;  %v5520_v7 = vld [vmem:[%s12055_s1 + $0x4a8] sm:$0xf] }
  0x6b   :  { %1611 = vmatpush.bf16.msrb.mxu3 %v5153_v27  ;;  %v5709_v27 = vor.u32 %v7610_v13, %v5706_v15  ;;  %v5073_v32 = vor.u32 %v7453_v23, %v5072_v21  ;;  %v7533_v6 = vld [vmem:[%s12055_s1 + $0x3b4] sm:$0xf0]  ;;  %v5376_v16 = vld [vmem:[%s12055_s1 + $0x388] sm:$0xf] }
  0x6c   :  { %1573 = vmatpush.bf16.msrb.mxu0 %v5645_v33  ;;  %v7417_v33 = vld [vmem:[%s12055_s1 + $0x14] sm:$0xf0]  ;;  %v5393_v12 = vor.u32 %v7533_v6, %v5392_v4  ;;  %v5504_v23 = vld [vmem:[%s12055_s1 + $0x488] sm:$0xf] }
  0x6d   :  { %1586 = vmatpush.bf16.msrb.mxu1 %v5773_v34  ;;  %v5056_v34 = vld [vmem:[%s12055_s1 + $0x108] sm:$0xf]  ;;  %v4929_v47 = vor.u32 %v7417_v33, %v4928_v31  ;;  %v7497_v15 = vld [vmem:[%s12055_s1 + $0x294] sm:$0xf0] }
  0x6e   :  { %1599 = vmatpush.bf16.msrb.mxu2 %v5009_v35  ;;  %v7449_v35 = vld [vmem:[%s12055_s1 + $0x114] sm:$0xf0]  ;;  %v5232_v30 = vld [vmem:[%s12055_s1 + $0x268] sm:$0xf] }
  0x6f   :  { %1612 = vmatpush.bf16.msrb.mxu3 %v5137_v42  ;;  %v5565_v42 = vor.u32 %v7574_v25, %v5562_v26  ;;  %v7529_v21 = vld [vmem:[%s12055_s1 + $0x394] sm:$0xf0]  ;;  %v5632_v25 = vld [vmem:[%s12055_s1 + $0x588] sm:$0xf] }
  0x70   :  { %1574 = vmatpush.bf16.msrb.mxu0 %v5629_v48  ;;  %v5680_v48 = vld [vmem:[%s12055_s1 + $0x5e8] sm:$0xf]  ;;  %v7593_v26 = vld [vmem:[%s12055_s1 + $0x594] sm:$0xf0] }
  0x71   :  { %1587 = vmatpush.bf16.msrb.mxu1 %v5757_v49  ;;  %v7605_v49 = vld [vmem:[%s12055_s1 + $0x5f4] sm:$0xf0]  ;;  %v5633_v33 = vor.u32 %v7593_v26, %v5632_v25  ;;  %v5616_v38 = vld [vmem:[%s12055_s1 + $0x568] sm:$0xf] }
  0x72   :  { %1600 = vmatpush.bf16.msrb.mxu2 %v4993_v50  ;;  %v5057_v50 = vor.u32 %v7449_v35, %v5056_v34  ;;  %v5681_v57 = vor.u32 %v7605_v49, %v5680_v48  ;;  %v7493_v31 = vld [vmem:[%s12055_s1 + $0x274] sm:$0xf0]  ;;  %v5488_v35 = vld [vmem:[%s12055_s1 + $0x468] sm:$0xf] }
  0x73   :  { %1613 = vmatpush.bf16.msrb.mxu3 %v5121_v54  ;;  %v5280_v54 = vld [vmem:[%s12055_s1 + $0x2c8] sm:$0xf]  ;;  %v7525_v34 = vld [vmem:[%s12055_s1 + $0x374] sm:$0xf0] }
  0x74   :  { %1575 = vmatpush.bf16.msrb.mxu0 %v5613_v60  ;;  %v7569_v60 = vld [vmem:[%s12055_s1 + $0x4d4] sm:$0xf0]  ;;  %v5281_v63 = vor.u32 %v7505_v55, %v5280_v54  ;;  %v5216_v45 = vld [vmem:[%s12055_s1 + $0x248] sm:$0xf] }
  0x75   :  { %1588 = vmatpush.bf16.msrb.mxu1 %v5741_v61  ;;  %v5664_v61 = vld [vmem:[%s12055_s1 + $0x5c8] sm:$0xf]  ;;  %v5537_v1 = vor.u32 %v7569_v60, %v5536_v59  ;;  %v7557_v36 = vld [vmem:[%s12055_s1 + $0x474] sm:$0xf0] }
  0x76   :  { %1601 = vmatpush.bf16.msrb.mxu2 %v4977_v62  ;;  %v7601_v62 = vld [vmem:[%s12055_s1 + $0x5d4] sm:$0xf0]  ;;  %v5489_v44 = vor.u32 %v7557_v36, %v5488_v35  ;;  %v5328_v59 = vld [vmem:[%s12055_s1 + $0x328] sm:$0xf]  ;;  %v7439_v35 = vld [vmem:[%s12055_s1 + $0xcc] sm:$0xf] }
  0x77   :  { %1614 = vmatpush.bf16.msrb.mxu3 %v5105_v2  ;;  %v5264_v2 = vld [vmem:[%s12055_s1 + $0x2a8] sm:$0xf]  ;;  %v5665_v5 = vor.u32 %v7601_v62, %v5664_v61  ;;  %v7589_v39 = vld [vmem:[%s12055_s1 + $0x574] sm:$0xf0] }
  0x78   :  { %1576 = vmatpush.bf16.msrb.mxu0 %v5597_v8  ;;  %v7565_v8 = vld [vmem:[%s12055_s1 + $0x4b4] sm:$0xf0]  ;;  %v5265_v11 = vor.u32 %v7501_v3, %v5264_v2  ;;  %v5617_v48 = vor.u32 %v7589_v39, %v5616_v38  ;;  %v5456_v62 = vld [vmem:[%s12055_s1 + $0x428] sm:$0xf]  ;;  %v5026_v38 = vld [vmem:[%s12055_s1 + $0xd8] sm:$0xf0] }
  0x79   :  { %1589 = vmatpush.bf16.msrb.mxu1 %v5725_v9  ;;  %v5648_v9 = vld [vmem:[%s12055_s1 + $0x5a8] sm:$0xf]  ;;  %v5521_v13 = vor.u32 %v7565_v8, %v5520_v7  ;;  %v7521_v49 = vld [vmem:[%s12055_s1 + $0x354] sm:$0xf0]  ;;  %v7471_v39 = vld [vmem:[%s12055_s1 + $0x1cc] sm:$0xf] }
  0x7a   :  { %1602 = vmatpush.bf16.msrb.mxu2 %v4961_v10  ;;  %v7597_v10 = vld [vmem:[%s12055_s1 + $0x5b4] sm:$0xf0]  ;;  %v5184_v3 = vld [vmem:[%s12055_s1 + $0x208] sm:$0xf] }
  0x7b   :  { %1615 = vmatpush.bf16.msrb.mxu3 %v5089_v14  ;;  %v5248_v14 = vld [vmem:[%s12055_s1 + $0x288] sm:$0xf]  ;;  %v5649_v17 = vor.u32 %v7597_v10, %v5648_v9  ;;  %v7485_v58 = vld [vmem:[%s12055_s1 + $0x234] sm:$0xf0] }
  0x7c   :  { %1577 = vmatpush.bf16.msrb.mxu0 %v5581_v24  ;;  %v7561_v24 = vld [vmem:[%s12055_s1 + $0x494] sm:$0xf0]  ;;  %v5312_v7 = vld [vmem:[%s12055_s1 + $0x308] sm:$0xf] }
  0x7d   :  { %1590 = vmatpush.bf16.msrb.mxu1 %v5709_v27  ;;  %v5249_v27 = vor.u32 %v7497_v15, %v5248_v14  ;;  %v5505_v29 = vor.u32 %v7561_v24, %v5504_v23  ;;  %v7517_v61 = vld [vmem:[%s12055_s1 + $0x334] sm:$0xf0]  ;;  %v5440_v9 = vld [vmem:[%s12055_s1 + $0x408] sm:$0xf]  ;;  %v7475_v23 = vld [vmem:[%s12055_s1 + $0x1ec] sm:$0xf] }
  0x7e   :  { %1603 = vmatpush.bf16.msrb.mxu2 %v4945_v28  ;;  %v5377_v28 = vor.u32 %v7529_v21, %v5376_v16  ;;  %v7481_v4 = vld [vmem:[%s12055_s1 + $0x214] sm:$0xf0]  ;;  %v5808_v14 = vld [vmem:[%s12055_s1 + $0x6e8] sm:$0xf]  ;;  %v7443_v16 = vld [vmem:[%s12055_s1 + $0xec] sm:$0xf] }
  0x7f   :  { %1616 = vmatpush.bf16.msrb.mxu3 %v5073_v32  ;;  %v5360_v32 = vld [vmem:[%s12055_s1 + $0x368] sm:$0xf]  ;;  %v7513_v8 = vld [vmem:[%s12055_s1 + $0x314] sm:$0xf0]  ;;  %v5042_v21 = vld [vmem:[%s12055_s1 + $0xf8] sm:$0xf0] }
  0x80   :  { %1578 = vmatpush.bf16.msrb.mxu0 %v5565_v42  ;;  %v5233_v42 = vor.u32 %v7493_v31, %v5232_v30  ;;  %v5361_v43 = vor.u32 %v7525_v34, %v5360_v32  ;;  %v7637_v15 = vld [vmem:[%s12055_s1 + $0x6f4] sm:$0xf0]  ;;  %v5170_v24 = vld [vmem:[%s12055_s1 + $0x1f8] sm:$0xf0]  ;;  %v5313_v25 = vor.u32 %v7513_v8, %v5312_v7  ;;  %v5045_v31 = vor.u32 %v7443_v16, %v5042_v21  ;;  %v5744_v8 = vld [vmem:[%s12055_s1 + $0x668] sm:$0xf] }
  0x81   :  { %1591 = vmatpush.bf16.msrb.mxu1 %v5693_v46  ;;  %v7489_v46 = vld [vmem:[%s12055_s1 + $0x254] sm:$0xf0]  ;;  %v5809_v30 = vor.u32 %v7637_v15, %v5808_v14  ;;  %v5173_v32 = vor.u32 %v7475_v23, %v5170_v24  ;;  %v5106_v14 = vld [vmem:[%s12055_s1 + $0x178] sm:$0xf0]  ;;  %v7491_v15 = vld [vmem:[%s12055_s1 + $0x26c] sm:$0xf] }
  0x82   :  { %1604 = vmatpush.bf16.msrb.mxu2 %v4929_v47  ;;  %v5344_v47 = vld [vmem:[%s12055_s1 + $0x348] sm:$0xf]  ;;  %v5217_v54 = vor.u32 %v7489_v46, %v5216_v45  ;;  %v7633_v34 = vld [vmem:[%s12055_s1 + $0x6d4] sm:$0xf0]  ;;  %v5029_v46 = vor.u32 %v7439_v35, %v5026_v38  ;;  %v5234_v16 = vld [vmem:[%s12055_s1 + $0x278] sm:$0xf0] }
  0x83   :  { %1617 = vmatpush.bf16.msrb.mxu3 %v5057_v50  ;;  %1579 = vmatmul.bf16.vlgmr.msrb.gmra.mxu0 %v8550_v41  ;;  %v5472_v50 = vld [vmem:[%s12055_s1 + $0x448] sm:$0xf]  ;;  %v5345_v55 = vor.u32 %v7521_v49, %v5344_v47  ;;  %v7629_v49 = vld [vmem:[%s12055_s1 + $0x6b4] sm:$0xf0] }
  0x84   :  { %1623 = vmatpush.bf16.msra.mxu0 %v5297_v51  ;;  %1592 = vmatmul.bf16.vlgmr.msrb.gmra.mxu1 %v8540_v37  ;;  %v7553_v51 = vld [vmem:[%s12055_s1 + $0x454] sm:$0xf0]  ;;  %v5728_v24 = vld [vmem:[%s12055_s1 + $0x648] sm:$0xf] }
  0x85   :  { %1636 = vmatpush.bf16.msra.mxu1 %v5425_v52  ;;  %1605 = vmatmul.bf16.vlgmr.msrb.gmra.mxu2 %v8386_v19  ;;  %v5600_v52 = vld [vmem:[%s12055_s1 + $0x548] sm:$0xf]  ;;  %v5473_v56 = vor.u32 %v7553_v51, %v5472_v50  ;;  %v7435_v50 = vld [vmem:[%s12055_s1 + $0xac] sm:$0xf] }
  0x86   :  { %1649 = vmatpush.bf16.msra.mxu2 %v5553_v53  ;;  %1618 = vmatmul.bf16.vlgmr.msrb.gmra.mxu3 %v8390_v22  ;;  %v7585_v53 = vld [vmem:[%s12055_s1 + $0x554] sm:$0xf0]  ;;  %v5712_v38 = vld [vmem:[%s12055_s1 + $0x628] sm:$0xf] }
  0x87   :  { %1662 = vmatpush.bf16.msra.mxu3 %v5681_v57  ;;  %v5200_v57 = vld [vmem:[%s12055_s1 + $0x228] sm:$0xf]  ;;  %v5601_v60 = vor.u32 %v7585_v53, %v5600_v52  ;;  %v5010_v52 = vld [vmem:[%s12055_s1 + $0xb8] sm:$0xf0]  ;;  %v7467_v53 = vld [vmem:[%s12055_s1 + $0x1ac] sm:$0xf] }
  0x88   :  { %1624 = vmatpush.bf16.msra.mxu0 %v5281_v63  ;;  %v7549_v63 = vld [vmem:[%s12055_s1 + $0x434] sm:$0xf0]  ;;  %v5201_v2 = vor.u32 %v7485_v58, %v5200_v57  ;;  %v5013_v58 = vor.u32 %v7435_v50, %v5010_v52 }
  0x89   :  { %1637 = vmatpush.bf16.msra.mxu1 %v5409_v0  ;;  %v5584_v0 = vld [vmem:[%s12055_s1 + $0x528] sm:$0xf]  ;;  %v5457_v6 = vor.u32 %v7549_v63, %v5456_v62  ;;  %v7431_v62 = vld [vmem:[%s12055_s1 + $0x8c] sm:$0xf]  ;;  %v7609_v52 = vld [vmem:[%s12055_s1 + $0x614] sm:$0xf0] }
  0x8a   :  { %1650 = vmatpush.bf16.msra.mxu2 %v5537_v1  ;;  %v7581_v1 = vld [vmem:[%s12055_s1 + $0x534] sm:$0xf0] }
  0x8b   :  { %1663 = vmatpush.bf16.msra.mxu3 %v5665_v5  ;;  %v5329_v5 = vor.u32 %v7517_v61, %v5328_v59  ;;  %v5585_v10 = vor.u32 %v7581_v1, %v5584_v0  ;;  %v7625_v61 = vld [vmem:[%s12055_s1 + $0x694] sm:$0xf0]  ;;  %v4994_v0 = vld [vmem:[%s12055_s1 + $0x98] sm:$0xf0]  ;;  %v7463_v1 = vld [vmem:[%s12055_s1 + $0x18c] sm:$0xf] }
  0x8c   :  { %1625 = vmatpush.bf16.msra.mxu0 %v5265_v11  ;;  %v7545_v11 = vld [vmem:[%s12055_s1 + $0x414] sm:$0xf0] }
  0x8d   :  { %1638 = vmatpush.bf16.msra.mxu1 %v5393_v12  ;;  %v5568_v12 = vld [vmem:[%s12055_s1 + $0x508] sm:$0xf]  ;;  %v5441_v26 = vor.u32 %v7545_v11, %v5440_v9  ;;  %v7621_v9 = vld [vmem:[%s12055_s1 + $0x674] sm:$0xf0] }
  0x8e   :  { %1651 = vmatpush.bf16.msra.mxu2 %v5521_v13  ;;  %v7577_v13 = vld [vmem:[%s12055_s1 + $0x514] sm:$0xf0] }
  0x8f   :  { %1664 = vmatpush.bf16.msra.mxu3 %v5649_v17  ;;  %v5185_v17 = vor.u32 %v7481_v4, %v5184_v3  ;;  %v7495_v3 = vld [vmem:[%s12055_s1 + $0x28c] sm:$0xf]  ;;  %v5250_v4 = vld [vmem:[%s12055_s1 + $0x298] sm:$0xf0] }
  0x90   :  { %1626 = vmatpush.bf16.msra.mxu0 %v5249_v27  ;;  %v7507_v27 = vld [vmem:[%s12055_s1 + $0x2ec] sm:$0xf]  ;;  %v5253_v11 = vor.u32 %v7495_v3, %v5250_v4  ;;  %v5554_v4 = vld [vmem:[%s12055_s1 + $0x4f8] sm:$0xf0] }
  0x91   :  { %1639 = vmatpush.bf16.msra.mxu1 %v5377_v28  ;;  %v5298_v28 = vld [vmem:[%s12055_s1 + $0x2f8] sm:$0xf0] }
  0x92   :  { %1652 = vmatpush.bf16.msra.mxu2 %v5505_v29  ;;  %v5569_v29 = vor.u32 %v7577_v13, %v5568_v12  ;;  %v5301_v36 = vor.u32 %v7507_v27, %v5298_v28  ;;  %v4978_v12 = vld [vmem:[%s12055_s1 + $0x78] sm:$0xf0]  ;;  %v7459_v13 = vld [vmem:[%s12055_s1 + $0x16c] sm:$0xf]  ;;  %v5237_v27 = vor.u32 %v7491_v15, %v5234_v16 }
  0x93   :  { %1665 = vmatpush.bf16.msra.mxu3 %v5633_v33  ;;  %v5792_v33 = vld [vmem:[%s12055_s1 + $0x6c8] sm:$0xf]  ;;  %v5109_v23 = vor.u32 %v7459_v13, %v5106_v14  ;;  %v4962_v28 = vld [vmem:[%s12055_s1 + $0x58] sm:$0xf0] }
  0x94   :  { %1627 = vmatpush.bf16.msra.mxu0 %v5233_v42  ;;  %v5154_v42 = vld [vmem:[%s12055_s1 + $0x1d8] sm:$0xf0]  ;;  %v5793_v45 = vor.u32 %v7633_v34, %v5792_v33 }
  0x95   :  { %1640 = vmatpush.bf16.msra.mxu1 %v5361_v43  ;;  %v7503_v43 = vld [vmem:[%s12055_s1 + $0x2cc] sm:$0xf]  ;;  %v5157_v47 = vor.u32 %v7471_v39, %v5154_v42  ;;  %v7613_v39 = vld [vmem:[%s12055_s1 + $0x634] sm:$0xf0] }
  0x96   :  { %1653 = vmatpush.bf16.msra.mxu2 %v5489_v44  ;;  %v5282_v44 = vld [vmem:[%s12055_s1 + $0x2d8] sm:$0xf0]  ;;  %v7419_v42 = vld [vmem:[%s12055_s1 + $0x2c] sm:$0xf]  ;;  %v5713_v50 = vor.u32 %v7613_v39, %v5712_v38 }
  0x97   :  { %1666 = vmatpush.bf16.msra.mxu3 %v5617_v48  ;;  %v5776_v48 = vld [vmem:[%s12055_s1 + $0x6a8] sm:$0xf]  ;;  %v5285_v51 = vor.u32 %v7503_v43, %v5282_v44  ;;  %v5394_v38 = vld [vmem:[%s12055_s1 + $0x3b8] sm:$0xf0]  ;;  %v7563_v39 = vld [vmem:[%s12055_s1 + $0x4ac] sm:$0xf] }
  0x98   :  { %1628 = vmatpush.bf16.msra.mxu0 %v5217_v54  ;;  %v5138_v54 = vld [vmem:[%s12055_s1 + $0x1b8] sm:$0xf0]  ;;  %v5777_v57 = vor.u32 %v7629_v49, %v5776_v48  ;;  %v7483_v48 = vld [vmem:[%s12055_s1 + $0x22c] sm:$0xf] }
  0x99   :  { %1641 = vmatpush.bf16.msra.mxu1 %v5345_v55  ;;  %v7499_v55 = vld [vmem:[%s12055_s1 + $0x2ac] sm:$0xf]  ;;  %v5141_v59 = vor.u32 %v7467_v53, %v5138_v54  ;;  %v5202_v49 = vld [vmem:[%s12055_s1 + $0x238] sm:$0xf0] }
  0x9a   :  { %1654 = vmatpush.bf16.msra.mxu2 %v5473_v56  ;;  %v5266_v56 = vld [vmem:[%s12055_s1 + $0x2b8] sm:$0xf0] }
  0x9b   :  { %1667 = vmatpush.bf16.msra.mxu3 %v5601_v60  ;;  %v5760_v60 = vld [vmem:[%s12055_s1 + $0x688] sm:$0xf]  ;;  %v5269_v63 = vor.u32 %v7499_v55, %v5266_v56  ;;  %v7415_v55 = vld [vmem:[%s12055_s1 + $0xc] sm:$0xf]  ;;  %v4930_v56 = vld [vmem:[%s12055_s1 + $0x18] sm:$0xf0] }
  0x9c   :  { %1629 = vmatpush.bf16.msra.mxu0 %v5201_v2  ;;  %v5122_v2 = vld [vmem:[%s12055_s1 + $0x198] sm:$0xf0] }
  0x9d   :  { %1642 = vmatpush.bf16.msra.mxu1 %v5329_v5  ;;  %v5761_v5 = vor.u32 %v7625_v61, %v5760_v60  ;;  %v5125_v7 = vor.u32 %v7463_v1, %v5122_v2  ;;  %v5058_v60 = vld [vmem:[%s12055_s1 + $0x118] sm:$0xf0]  ;;  %v7479_v61 = vld [vmem:[%s12055_s1 + $0x20c] sm:$0xf] }
  0x9e   :  { %1655 = vmatpush.bf16.msra.mxu2 %v5457_v6  ;;  %v4997_v6 = vor.u32 %v7431_v62, %v4994_v0  ;;  %v5186_v62 = vld [vmem:[%s12055_s1 + $0x218] sm:$0xf0]  ;;  %v7539_v0 = vld [vmem:[%s12055_s1 + $0x3ec] sm:$0xf] }
  0x9f   :  { %1668 = vmatpush.bf16.msra.mxu3 %v5585_v10  ;;  %v7427_v10 = vld [vmem:[%s12055_s1 + $0x6c] sm:$0xf]  ;;  %v5426_v1 = vld [vmem:[%s12055_s1 + $0x3f8] sm:$0xf0]  ;;  %v5189_v13 = vor.u32 %v7479_v61, %v5186_v62 }
  0xa0   :  { %1630 = vmatpush.bf16.msra.mxu0 %v5185_v17  ;;  %v5745_v17 = vor.u32 %v7621_v9, %v5744_v8  ;;  %v4981_v21 = vor.u32 %v7427_v10, %v4978_v12  ;;  %v7571_v2 = vld [vmem:[%s12055_s1 + $0x4ec] sm:$0xf]  ;;  %v4933_v8 = vor.u32 %v7415_v55, %v4930_v56  ;;  %v5429_v14 = vor.u32 %v7539_v0, %v5426_v1  ;;  %v5634_v55 = vld [vmem:[%s12055_s1 + $0x598] sm:$0xf0] }
  0xa1   :  { %1643 = vmatpush.bf16.msra.mxu1 %v5313_v25  ;;  %v7617_v25 = vld [vmem:[%s12055_s1 + $0x654] sm:$0xf0]  ;;  %v7635_v10 = vld [vmem:[%s12055_s1 + $0x6ec] sm:$0xf]  ;;  %v5557_v15 = vor.u32 %v7571_v2, %v5554_v4  ;;  %v5362_v2 = vld [vmem:[%s12055_s1 + $0x378] sm:$0xf0] }
  0xa2   :  { %1656 = vmatpush.bf16.msra.mxu2 %v5441_v26  ;;  %v7423_v26 = vld [vmem:[%s12055_s1 + $0x4c] sm:$0xf]  ;;  %v5729_v33 = vor.u32 %v7617_v25, %v5728_v24  ;;  %v5538_v25 = vld [vmem:[%s12055_s1 + $0x4d8] sm:$0xf0] }
  0xa3   :  { %1669 = vmatpush.bf16.msra.mxu3 %v5569_v29  ;;  %1631 = vmatmul.bf16.vlgmr.msra.gmra.mxu0 %v8384_v18  ;;  %v7455_v29 = vld [vmem:[%s12055_s1 + $0x14c] sm:$0xf]  ;;  %v4965_v35 = vor.u32 %v7423_v26, %v4962_v28 }
  0xa4   :  { %1675 = vmatpush.bf16.msrb.mxu0 %v5809_v30  ;;  %1644 = vmatmul.bf16.vlgmr.msra.gmra.mxu1 %v8388_v20  ;;  %v5090_v30 = vld [vmem:[%s12055_s1 + $0x158] sm:$0xf0]  ;;  %v7599_v26 = vld [vmem:[%s12055_s1 + $0x5cc] sm:$0xf] }
  0xa5   :  { %1688 = vmatpush.bf16.msrb.mxu1 %v5045_v31  ;;  %1657 = vmatmul.bf16.vlgmr.msra.gmra.mxu2 %v8548_v40  ;;  %v7487_v31 = vld [vmem:[%s12055_s1 + $0x24c] sm:$0xf] }
  0xa6   :  { %1701 = vmatpush.bf16.msrb.mxu2 %v5173_v32  ;;  %1670 = vmatmul.bf16.vlgmr.msra.gmra.mxu3 %v8550_v41  ;;  %v5218_v32 = vld [vmem:[%s12055_s1 + $0x258] sm:$0xf0]  ;;  %v7631_v28 = vld [vmem:[%s12055_s1 + $0x6cc] sm:$0xf] }
  0xa7   :  { %1714 = vmatpush.bf16.msrb.mxu3 %v5301_v36  ;;  %v5093_v36 = vor.u32 %v7455_v29, %v5090_v30  ;;  %v5221_v44 = vor.u32 %v7487_v31, %v5218_v32  ;;  %v5794_v29 = vld [vmem:[%s12055_s1 + $0x6d8] sm:$0xf0]  ;;  %v7623_v56 = vld [vmem:[%s12055_s1 + $0x68c] sm:$0xf] }
  0xa8   :  { %1676 = vmatpush.bf16.msrb.mxu0 %v5793_v45  ;;  %v4946_v45 = vld [vmem:[%s12055_s1 + $0x38] sm:$0xf0]  ;;  %v7523_v1 = vld [vmem:[%s12055_s1 + $0x36c] sm:$0xf] }
  0xa9   :  { %1689 = vmatpush.bf16.msrb.mxu1 %v5029_v46  ;;  %v7451_v46 = vld [vmem:[%s12055_s1 + $0x12c] sm:$0xf]  ;;  %v4949_v53 = vor.u32 %v7419_v42, %v4946_v45  ;;  %v5797_v42 = vor.u32 %v7631_v28, %v5794_v29 }
  0xaa   :  { %1702 = vmatpush.bf16.msrb.mxu2 %v5157_v47  ;;  %v5074_v47 = vld [vmem:[%s12055_s1 + $0x138] sm:$0xf0]  ;;  %v7595_v45 = vld [vmem:[%s12055_s1 + $0x5ac] sm:$0xf] }
  0xab   :  { %1715 = vmatpush.bf16.msrb.mxu3 %v5285_v51  ;;  %v5696_v51 = vld [vmem:[%s12055_s1 + $0x608] sm:$0xf]  ;;  %v5077_v54 = vor.u32 %v7451_v46, %v5074_v47  ;;  %v5650_v46 = vld [vmem:[%s12055_s1 + $0x5b8] sm:$0xf0]  ;;  %v7627_v47 = vld [vmem:[%s12055_s1 + $0x6ac] sm:$0xf] }
  0xac   :  { %1677 = vmatpush.bf16.msrb.mxu0 %v5777_v57  ;;  %v9240_v34 = vpop.f32.mrf.mxu0  ;;  %v7447_v57 = vld [vmem:[%s12055_s1 + $0x10c] sm:$0xf]  ;;  %v5697_v3 = vor.u32 %v7609_v52, %v5696_v51  ;;  %v5653_v51 = vor.u32 %v7595_v45, %v5650_v46  ;;  %v5378_v52 = vld [vmem:[%s12055_s1 + $0x398] sm:$0xf0] }
  0xad   :  { %1690 = vmatpush.bf16.msrb.mxu1 %v5013_v58  ;;  %v9251_v43 = vpop.f32.mrf.mxu1  ;;  %v9283_v58 = vpop.f32.mrf.mxu2  ;;  %v5061_v9 = vor.u32 %v7447_v57, %v5058_v60  ;;  %v5762_v57 = vld [vmem:[%s12055_s1 + $0x698] sm:$0xf0]  ;;  %v7611_v45 = vld [vmem:[%s12055_s1 + $0x62c] sm:$0xf] }
  0xae   :  { %1703 = vmatpush.bf16.msrb.mxu2 %v5141_v59  ;;  %v5205_v59 = vor.u32 %v7483_v48, %v5202_v49  ;;  %v5778_v48 = vld [vmem:[%s12055_s1 + $0x6b8] sm:$0xf0]  ;;  %v5765_v4 = vor.u32 %v7623_v56, %v5762_v57  ;;  %v6040_v57 = vld [vmem:[%s12057_s3 + $0x1c0] sm:$0xf] }
  0xaf   :  { %1716 = vmatpush.bf16.msrb.mxu3 %v5269_v63  ;;  %v9294_v63 = vpop.f32.mrf.mxu3  ;;  %v5714_v46 = vld [vmem:[%s12055_s1 + $0x638] sm:$0xf0] }
  0xb0   :  { %1678 = vmatpush.bf16.msrb.mxu0 %v5761_v5  ;;  %v7603_v5 = vld [vmem:[%s12055_s1 + $0x5ec] sm:$0xf]  ;;  %v5698_v56 = vld [vmem:[%s12055_s1 + $0x618] sm:$0xf0] }
  0xb1   :  { %1691 = vmatpush.bf16.msrb.mxu1 %v4997_v6  ;;  %v5682_v6 = vld [vmem:[%s12055_s1 + $0x5f8] sm:$0xf0] }
  0xb2   :  { %1704 = vmatpush.bf16.msrb.mxu2 %v5125_v7  ;;  %v5685_v16 = vor.u32 %v7603_v5, %v5682_v6  ;;  %v5490_v5 = vld [vmem:[%s12055_s1 + $0x478] sm:$0xf0]  ;;  %v7587_v6 = vld [vmem:[%s12055_s1 + $0x56c] sm:$0xf] }
  0xb3   :  { %1717 = vmatpush.bf16.msrb.mxu3 %v5253_v11  ;;  %v5810_v11 = vld [vmem:[%s12055_s1 + $0x6f8] sm:$0xf0] }
  0xb4   :  { %1679 = vmatpush.bf16.msrb.mxu0 %v5745_v17  ;;  %v1426_v7 = vpop.f32.mrf.mxu0  ;;  %v7535_v17 = vld [vmem:[%s12055_s1 + $0x3cc] sm:$0xf]  ;;  %v5813_v24 = vor.u32 %v7635_v10, %v5810_v11  ;;  %v5365_v10 = vor.u32 %v7523_v1, %v5362_v2  ;;  %v6296_v2 = vld [vmem:[%s12057_s3 + $0x3c0] sm:$0xf] }
  0xb5   :  { %1692 = vmatpush.bf16.msrb.mxu1 %v4981_v21  ;;  %v1439_v12 = vpop.f32.mrf.mxu1  ;;  %v5410_v21 = vld [vmem:[%s12055_s1 + $0x3d8] sm:$0xf0]  ;;  %v1452_v30 = vpop.f32.mrf.mxu2 }
  0xb6   :  { %1705 = vmatpush.bf16.msrb.mxu2 %v5109_v23  ;;  %v7567_v23 = vld [vmem:[%s12055_s1 + $0x4cc] sm:$0xf]  ;;  %v5413_v31 = vor.u32 %v7535_v17, %v5410_v21  ;;  %v5618_v7 = vld [vmem:[%s12055_s1 + $0x578] sm:$0xf0] }
  0xb7   :  { %1718 = vmatpush.bf16.msrb.mxu3 %v5237_v27  ;;  %v5666_v27 = vld [vmem:[%s12055_s1 + $0x5d8] sm:$0xf0]  ;;  %v1465_v32 = vpop.f32.mrf.mxu3  ;;  %v5621_v12 = vor.u32 %v7587_v6, %v5618_v7 }
  0xb8   :  { %1680 = vmatpush.bf16.msrb.mxu0 %v5729_v33  ;;  %v5541_v33 = vor.u32 %v7567_v23, %v5538_v25  ;;  %v5474_v21 = vld [vmem:[%s12055_s1 + $0x458] sm:$0xf0]  ;;  %v7583_v23 = vld [vmem:[%s12055_s1 + $0x54c] sm:$0xf] }
  0xb9   :  { %1693 = vmatpush.bf16.msrb.mxu1 %v4965_v35  ;;  %v5669_v35 = vor.u32 %v7599_v26, %v5666_v27  ;;  %v7615_v25 = vld [vmem:[%s12055_s1 + $0x64c] sm:$0xf]  ;;  %v5730_v26 = vld [vmem:[%s12055_s1 + $0x658] sm:$0xf0] }
  0xba   :  { %1706 = vmatpush.bf16.msrb.mxu2 %v5093_v36  ;;  %v7531_v36 = vld [vmem:[%s12055_s1 + $0x3ac] sm:$0xf] }
  0xbb   :  { %1719 = vmatpush.bf16.msrb.mxu3 %v5221_v44  ;;  %v5522_v44 = vld [vmem:[%s12055_s1 + $0x4b8] sm:$0xf0]  ;;  %v5397_v49 = vor.u32 %v7531_v36, %v5394_v38  ;;  %v7547_v36 = vld [vmem:[%s12055_s1 + $0x42c] sm:$0xf]  ;;  %v5733_v38 = vor.u32 %v7615_v25, %v5730_v26 }
  0xbc   :  { %1681 = vmatpush.bf16.msrb.mxu0 %v5713_v50  ;;  %v5525_v50 = vor.u32 %v7563_v39, %v5522_v44  ;;  %v5458_v39 = vld [vmem:[%s12055_s1 + $0x438] sm:$0xf0] }
  0xbd   :  { %1694 = vmatpush.bf16.msrb.mxu1 %v4949_v53  ;;  %v5781_v53 = vor.u32 %v7627_v47, %v5778_v48  ;;  %v5586_v44 = vld [vmem:[%s12055_s1 + $0x538] sm:$0xf0]  ;;  %v7511_v48 = vld [vmem:[%s12055_s1 + $0x30c] sm:$0xf] }
  0xbe   :  { %1707 = vmatpush.bf16.msrb.mxu2 %v5077_v54  ;;  %v7591_v54 = vld [vmem:[%s12055_s1 + $0x58c] sm:$0xf] }
  0xbf   :  { %1720 = vmatpush.bf16.msrb.mxu3 %v5205_v59  ;;  %v5637_v0 = vor.u32 %v7591_v54, %v5634_v55  ;;  %v5570_v54 = vld [vmem:[%s12055_s1 + $0x518] sm:$0xf0]  ;;  %v7607_v55 = vld [vmem:[%s12055_s1 + $0x60c] sm:$0xf] }
  0xc0   :  { %1682 = vmatpush.bf16.msrb.mxu0 %v5697_v3  ;;  %v9396_v60 = vpop.f32.mrf.mxu0  ;;  %v7555_v3 = vld [vmem:[%s12055_s1 + $0x46c] sm:$0xf]  ;;  %v5701_v6 = vor.u32 %v7607_v55, %v5698_v56 }
  0xc1   :  { %1695 = vmatpush.bf16.msrb.mxu1 %v4933_v8  ;;  %v9398_v61 = vpop.f32.mrf.mxu1  ;;  %v7619_v8 = vld [vmem:[%s12055_s1 + $0x66c] sm:$0xf]  ;;  %v5493_v11 = vor.u32 %v7555_v3, %v5490_v5  ;;  %v7762_v3 = vld [vmem:[%s12057_s3 + $0x3dc] sm:$0xf0] }
  0xc2   :  { %1708 = vmatpush.bf16.msrb.mxu2 %v5061_v9  ;;  %v5746_v9 = vld [vmem:[%s12055_s1 + $0x678] sm:$0xf0] }
  0xc3   :  { %1721 = vmatpush.bf16.msrb.mxu3 %v5189_v13  ;;  %1683 = vmatmul.bf16.vlgmr.msrb.gmra.mxu0 %v8540_v37  ;;  %v7519_v13 = vld [vmem:[%s12055_s1 + $0x34c] sm:$0xf]  ;;  %v5749_v17 = vor.u32 %v7619_v8, %v5746_v9  ;;  %v6297_v9 = vor.u32 %v7762_v3, %v6296_v2  ;;  %v6488_v2 = vld [vmem:[%s12057_s3 + $0x540] sm:$0xf] }
  0xc4   :  { %1727 = vmatpush.bf16.msra.mxu0 %v5429_v14  ;;  %1696 = vmatmul.bf16.vlgmr.msrb.gmra.mxu1 %v8386_v19  ;;  %v5506_v19 = vld [vmem:[%s12055_s1 + $0x498] sm:$0xf0]  ;;  %v7810_v3 = vld [vmem:[%s12057_s3 + $0x55c] sm:$0xf0] }
  0xc5   :  { %1740 = vmatpush.bf16.msra.mxu1 %v5557_v15  ;;  %1709 = vmatmul.bf16.vlgmr.msrb.gmra.mxu2 %v8390_v22  ;;  %v7527_v22 = vld [vmem:[%s12055_s1 + $0x38c] sm:$0xf]  ;;  %v5346_v14 = vld [vmem:[%s12055_s1 + $0x358] sm:$0xf0] }
  0xc6   :  { %1753 = vmatpush.bf16.msra.mxu2 %v5685_v16  ;;  %1722 = vmatmul.bf16.vlgmr.msrb.gmra.mxu3 %v8384_v18  ;;  %v7559_v18 = vld [vmem:[%s12055_s1 + $0x48c] sm:$0xf]  ;;  %v5381_v59 = vor.u32 %v7527_v22, %v5378_v52  ;;  %v5349_v28 = vor.u32 %v7519_v13, %v5346_v14  ;;  %v5442_v52 = vld [vmem:[%s12055_s1 + $0x418] sm:$0xf0]  ;;  %v7754_v13 = vld [vmem:[%s12057_s3 + $0x39c] sm:$0xf0] }
  0xc7   :  { %1766 = vmatpush.bf16.msra.mxu3 %v5813_v24  ;;  %v5509_v62 = vor.u32 %v7559_v18, %v5506_v19  ;;  %v7551_v15 = vld [vmem:[%s12055_s1 + $0x44c] sm:$0xf]  ;;  %v5602_v24 = vld [vmem:[%s12055_s1 + $0x558] sm:$0xf0] }
  0xc8   :  { %1728 = vmatpush.bf16.msra.mxu0 %v5413_v31  ;;  %v9433_v16 = vpop.f32.mrf.mxu2  ;;  %v1478_v29 = vpop.f32.mrf.mxu0  ;;  %v5477_v31 = vor.u32 %v7551_v15, %v5474_v21  ;;  %v5605_v32 = vor.u32 %v7583_v23, %v5602_v24  ;;  %v7543_v22 = vld [vmem:[%s12055_s1 + $0x40c] sm:$0xf]  ;;  %v5976_v21 = vld [vmem:[%s12057_s3 + $0x140] sm:$0xf] }
  0xc9   :  { %1741 = vmatpush.bf16.msra.mxu1 %v5541_v33  ;;  %v9450_v27 = vpop.f32.mrf.mxu3  ;;  %v1491_v30 = vpop.f32.mrf.mxu1  ;;  %v7515_v33 = vld [vmem:[%s12055_s1 + $0x32c] sm:$0xf]  ;;  %v7682_v23 = vld [vmem:[%s12057_s3 + $0x15c] sm:$0xf0] }
  0xca   :  { %1754 = vmatpush.bf16.msra.mxu2 %v5669_v35  ;;  %v5330_v35 = vld [vmem:[%s12055_s1 + $0x338] sm:$0xf0]  ;;  %v7575_v19 = vld [vmem:[%s12055_s1 + $0x50c] sm:$0xf]  ;;  %v5977_v24 = vor.u32 %v7682_v23, %v5976_v21  ;;  %v7758_v21 = vld [vmem:[%s12057_s3 + $0x3c4] sm:$0xf] }
  0xcb   :  { %1767 = vmatpush.bf16.msra.mxu3 %v5797_v42  ;;  %v7579_v42 = vld [vmem:[%s12055_s1 + $0x52c] sm:$0xf]  ;;  %v5333_v47 = vor.u32 %v7515_v33, %v5330_v35  ;;  %v5573_v5 = vor.u32 %v7575_v19, %v5570_v54  ;;  %v7666_v33 = vld [vmem:[%s12057_s3 + $0xdc] sm:$0xf0]  ;;  %v6298_v23 = vld [vmem:[%s12057_s3 + $0x3e0] sm:$0xf0] }
  0xcc   :  { %1729 = vmatpush.bf16.msra.mxu0 %v5397_v49  ;;  %v5461_v49 = vor.u32 %v7547_v36, %v5458_v39  ;;  %v6168_v35 = vld [vmem:[%s12057_s3 + $0x2c0] sm:$0xf] }
  0xcd   :  { %1742 = vmatpush.bf16.msra.mxu1 %v5525_v50  ;;  %v5589_v50 = vor.u32 %v7579_v42, %v5586_v44  ;;  %v7826_v39 = vld [vmem:[%s12057_s3 + $0x5dc] sm:$0xf0] }
  0xce   :  { %1755 = vmatpush.bf16.msra.mxu2 %v5653_v51  ;;  %v5314_v51 = vld [vmem:[%s12055_s1 + $0x318] sm:$0xf0] }
  0xcf   :  { %1768 = vmatpush.bf16.msra.mxu3 %v5781_v53  ;;  %v5717_v53 = vor.u32 %v7611_v45, %v5714_v46  ;;  %v5317_v1 = vor.u32 %v7511_v48, %v5314_v51  ;;  %v7658_v48 = vld [vmem:[%s12057_s3 + $0x9c] sm:$0xf0] }
  0xd0   :  { %1730 = vmatpush.bf16.msra.mxu0 %v5381_v59  ;;  %v1504_v18 = vpop.f32.mrf.mxu2  ;;  %v7698_v59 = vld [vmem:[%s12057_s3 + $0x1dc] sm:$0xf0] }
  0xd1   :  { %1743 = vmatpush.bf16.msra.mxu1 %v5509_v62  ;;  %v1517_v62 = vpop.f32.mrf.mxu3  ;;  %v6041_v7 = vor.u32 %v7698_v59, %v6040_v57  ;;  %v5848_v57 = vld [vmem:[%s12057_s3 + $0x40] sm:$0xf] }
  0xd2   :  { %1756 = vmatpush.bf16.msra.mxu2 %v5637_v0  ;;  %v9509_v0 = vld [vmem:[%s12058_s2] sm:$0xf] }
  0xd3   :  { %1769 = vmatpush.bf16.msra.mxu3 %v5765_v4  ;;  %v5445_v4 = vor.u32 %v7543_v22, %v5442_v52  ;;  %v262_v8 = vperm.slane %v9509_v0, 0  ;;  %v6520_v22 = vld [vmem:[%s12057_s3 + $0x580] sm:$0xf] }
  0xd4   :  { %1731 = vmatpush.bf16.msra.mxu0 %v5365_v10  ;;  %v6008_v10 = vld [vmem:[%s12057_s3 + $0x180] sm:$0xf] }
  0xd5   :  { %1744 = vmatpush.bf16.msra.mxu1 %v5493_v11  ;;  %v7690_v11 = vld [vmem:[%s12057_s3 + $0x19c] sm:$0xf0]  ;;  %v1425_v15 = vadd.f32 %v9240_v34, %v262_v8 }
  0xd6   :  { %1757 = vmatpush.bf16.msra.mxu2 %v5621_v12  ;;  %v6264_v12 = vld [vmem:[%s12057_s3 + $0x380] sm:$0xf]  ;;  %v6009_v14 = vor.u32 %v7690_v11, %v6008_v10 }
  0xd7   :  { %1770 = vmatpush.bf16.msra.mxu3 %v5749_v17  ;;  %v6265_v17 = vor.u32 %v7754_v13, %v6264_v12  ;;  %v6232_v34 = vld [vmem:[%s12057_s3 + $0x340] sm:$0xf]  ;;  %v1438_v25 = vadd.f32 %v9251_v43, %v1425_v15  ;;  %v7694_v12 = vld [vmem:[%s12057_s3 + $0x1c4] sm:$0xf] }
  0xd8   :  { %1732 = vmatpush.bf16.msra.mxu0 %v5349_v28  ;;  %v6200_v28 = vld [vmem:[%s12057_s3 + $0x300] sm:$0xf] }
  0xd9   :  { %1745 = vmatpush.bf16.msra.mxu1 %v5477_v31  ;;  %v1451_v30 = vadd.f32 %v9283_v58, %v1438_v25  ;;  %v7730_v58 = vld [vmem:[%s12057_s3 + $0x2dc] sm:$0xf0] }
  0xda   :  { %1758 = vmatpush.bf16.msra.mxu2 %v5605_v32  ;;  %v5912_v32 = vld [vmem:[%s12057_s3 + $0xc0] sm:$0xf]  ;;  %v6169_v46 = vor.u32 %v7730_v58, %v6168_v35 }
  0xdb   :  { %1771 = vmatpush.bf16.msra.mxu3 %v5733_v38  ;;  %v6552_v38 = vld [vmem:[%s12057_s3 + $0x5c0] sm:$0xf]  ;;  %v5913_v44 = vor.u32 %v7666_v33, %v5912_v32  ;;  %v1464_v45 = vadd.f32 %v9294_v63, %v1451_v30 }
  0xdc   :  { %1733 = vmatpush.bf16.msra.mxu0 %v5333_v47  ;;  %v6553_v42 = vor.u32 %v7826_v39, %v6552_v38  ;;  %v5880_v47 = vld [vmem:[%s12057_s3 + $0x80] sm:$0xf]  ;;  %v7678_v38 = vld [vmem:[%s12057_s3 + $0x144] sm:$0xf] }
  0xdd   :  { %1746 = vmatpush.bf16.msra.mxu1 %v5461_v49  ;;  %v6136_v49 = vld [vmem:[%s12057_s3 + $0x280] sm:$0xf]  ;;  %v5881_v19 = vor.u32 %v7658_v48, %v5880_v47  ;;  %v1477_v55 = vadd.f32 %v9396_v60, %v1464_v45  ;;  %v5978_v39 = vld [vmem:[%s12057_s3 + $0x160] sm:$0xf0] }
  0xde   :  { %1759 = vmatpush.bf16.msra.mxu2 %v5589_v50  ;;  %v7722_v63 = vld [vmem:[%s12057_s3 + $0x29c] sm:$0xf0]  ;;  %v5981_v48 = vor.u32 %v7678_v38, %v5978_v39  ;;  %v7702_v38 = vld [vmem:[%s12057_s3 + $0x204] sm:$0xf] }
  0xdf   :  { %1772 = vmatpush.bf16.msra.mxu3 %v5717_v53  ;;  %v7818_v52 = vld [vmem:[%s12057_s3 + $0x59c] sm:$0xf0]  ;;  %v263_v53 = vperm.slane %v9509_v0, 1  ;;  %v6137_v56 = vor.u32 %v7722_v63, %v6136_v49  ;;  %v7670_v63 = vld [vmem:[%s12057_s3 + $0x104] sm:$0xf] }
  0xe0   :  { %1734 = vmatpush.bf16.msra.mxu0 %v5317_v1  ;;  %v9560_v29 = vpop.f32.mrf.mxu0  ;;  %v6521_v18 = vor.u32 %v7818_v52, %v6520_v22  ;;  %v7650_v59 = vld [vmem:[%s12057_s3 + $0x5c] sm:$0xf0]  ;;  %v5946_v22 = vld [vmem:[%s12057_s3 + $0x120] sm:$0xf0] }
  0xe1   :  { %1747 = vmatpush.bf16.msra.mxu1 %v5445_v4  ;;  %v9572_v36 = vpop.f32.mrf.mxu1  ;;  %v6104_v62 = vld [vmem:[%s12057_s3 + $0x240] sm:$0xf]  ;;  %v6489_v4 = vor.u32 %v7810_v3, %v6488_v2  ;;  %v7734_v52 = vld [vmem:[%s12057_s3 + $0x304] sm:$0xf] }
  0xe2   :  { %1760 = vmatpush.bf16.msra.mxu2 %v5573_v5  ;;  %v7714_v60 = vld [vmem:[%s12057_s3 + $0x25c] sm:$0xf0]  ;;  %v1516_v5 = vadd.f32 %v9450_v27, %v263_v53  ;;  %v6170_v2 = vld [vmem:[%s12057_s3 + $0x2e0] sm:$0xf0] }
  0xe3   :  { %1773 = vmatpush.bf16.msra.mxu3 %v5701_v6  ;;  %1735 = vmatmul.bf16.vlgmr.msra.gmra.mxu0 %v8388_v20  ;;  %v7746_v20 = vld [vmem:[%s12057_s3 + $0x35c] sm:$0xf0]  ;;  %v5849_v6 = vor.u32 %v7650_v59, %v5848_v57  ;;  %v6105_v10 = vor.u32 %v7714_v60, %v6104_v62  ;;  %v7662_v57 = vld [vmem:[%s12057_s3 + $0xc4] sm:$0xf] }
  0xe4   :  { %3337 = vmatpush.bf16.msrb.mxu0 %v6041_v7  ;;  %1748 = vmatmul.bf16.vlgmr.msra.gmra.mxu1 %v8548_v40  ;;  %v6233_v26 = vor.u32 %v7746_v20, %v6232_v34  ;;  %v5944_v40 = vld [vmem:[%s12057_s3 + $0x100] sm:$0xf]  ;;  %v1529_v20 = vadd.f32 %v9560_v29, %v1516_v5  ;;  %v5914_v60 = vld [vmem:[%s12057_s3 + $0xe0] sm:$0xf0] }
  0xe5   :  { %3350 = vmatpush.bf16.msrb.mxu1 %v6297_v9  ;;  %1761 = vmatmul.bf16.vlgmr.msra.gmra.mxu2 %v8550_v41  ;;  %v7674_v41 = vld [vmem:[%s12057_s3 + $0x11c] sm:$0xf0]  ;;  %v1490_v9 = vadd.f32 %v9398_v61, %v1477_v55  ;;  %v6042_v61 = vld [vmem:[%s12057_s3 + $0x1e0] sm:$0xf0] }
  0xe6   :  { %1774 = vmatmul.bf16.vlgmr.msra.gmra.mxu3 %v8540_v37  ;;  %v7738_v37 = vld [vmem:[%s12057_s3 + $0x31c] sm:$0xf0]  ;;  %v5945_v43 = vor.u32 %v7674_v41, %v5944_v40  ;;  %3363 = vmatpush.bf16.msrb.mxu2 %v6553_v42  ;;  %v6045_v40 = vor.u32 %v7694_v12, %v6042_v61  ;;  %v6301_v41 = vor.u32 %v7758_v21, %v6298_v23  ;;  %v6234_v42 = vld [vmem:[%s12057_s3 + $0x360] sm:$0xf0] }
  0xe7   :  { %v6201_v31 = vor.u32 %v7738_v37, %v6200_v28  ;;  %v5816_v7 = vld [vmem:[%s12057_s3] sm:$0xf]  ;;  %v1503_v25 = vadd.f32 %v9433_v16, %v1490_v9  ;;  %v7686_v28 = vld [vmem:[%s12057_s3 + $0x184] sm:$0xf]  ;;  %v5917_v9 = vor.u32 %v7662_v57, %v5914_v60 }
  0xe8   :  { %3338 = vmatpush.bf16.msrb.mxu0 %v6009_v14  ;;  %v9593_v50 = vpop.f32.mrf.mxu2  ;;  %v1530_v54 = vpop.f32.mrf.mxu0  ;;  %v7642_v8 = vld [vmem:[%s12057_s3 + $0x1c] sm:$0xf0]  ;;  %v6010_v37 = vld [vmem:[%s12057_s3 + $0x1a0] sm:$0xf0] }
  0xe9   :  { %3351 = vmatpush.bf16.msrb.mxu1 %v6265_v17  ;;  %v9598_v51 = vpop.f32.mrf.mxu3  ;;  %v1543_v1 = vpop.f32.mrf.mxu1  ;;  %v6072_v11 = vld [vmem:[%s12057_s3 + $0x200] sm:$0xf]  ;;  %v6266_v16 = vld [vmem:[%s12057_s3 + $0x3a0] sm:$0xf0]  ;;  %v9679_v33 = vpack.c.bf16 %v1503_v25, %v1503_v25  ;;  %v6013_v35 = vor.u32 %v7686_v28, %v6010_v37 }
  0xea   :  { %3364 = vmatpush.bf16.msrb.mxu2 %v6521_v18  ;;  %v7706_v27 = vld [vmem:[%s12057_s3 + $0x21c] sm:$0xf0]  ;;  %v7822_v5 = vld [vmem:[%s12057_s3 + $0x5c4] sm:$0xf] }
  0xeb   :  { %v6456_v15 = vld [vmem:[%s12057_s3 + $0x500] sm:$0xf]  ;;  %v7654_v12 = vld [vmem:[%s12057_s3 + $0x84] sm:$0xf] }
  0xec   :  { %3339 = vmatpush.bf16.msrb.mxu0 %v5977_v24  ;;  %v7802_v17 = vld [vmem:[%s12057_s3 + $0x51c] sm:$0xf0]  ;;  %v5817_v24 = vor.u32 %v7642_v8, %v5816_v7  ;;  %v6554_v8 = vld [vmem:[%s12057_s3 + $0x5e0] sm:$0xf0] }
  0xed   :  { %3352 = vmatpush.bf16.msrb.mxu1 %v6233_v26  ;;  %v6457_v34 = vor.u32 %v7802_v17, %v6456_v15  ;;  %v6073_v26 = vor.u32 %v7706_v27, %v6072_v11  ;;  %v6424_v29 = vld [vmem:[%s12057_s3 + $0x4c0] sm:$0xf]  ;;  %v7718_v61 = vld [vmem:[%s12057_s3 + $0x284] sm:$0xf] }
  0xee   :  { %3365 = vmatpush.bf16.msrb.mxu2 %v6489_v4  ;;  %v7794_v30 = vld [vmem:[%s12057_s3 + $0x4dc] sm:$0xf0]  ;;  %v7814_v15 = vld [vmem:[%s12057_s3 + $0x584] sm:$0xf] }
  0xef   :  { %v6425_v32 = vor.u32 %v7794_v30, %v6424_v29  ;;  %v7786_v45 = vld [vmem:[%s12057_s3 + $0x49c] sm:$0xf0]  ;;  %v6522_v17 = vld [vmem:[%s12057_s3 + $0x5a0] sm:$0xf0] }
  0xf0   :  { %3340 = vmatpush.bf16.msrb.mxu0 %v5945_v43  ;;  %v1556_v13 = vpop.f32.mrf.mxu2  ;;  %v7750_v43 = vld [vmem:[%s12057_s3 + $0x384] sm:$0xf]  ;;  %v6360_v18 = vld [vmem:[%s12057_s3 + $0x440] sm:$0xf]  ;;  %v6525_v23 = vor.u32 %v7814_v15, %v6522_v17 }
  0xf1   :  { %3353 = vmatpush.bf16.msrb.mxu1 %v6201_v31  ;;  %v1569_v14 = vpop.f32.mrf.mxu3  ;;  %v1542_v31 = vadd.f32 %v9572_v36, %v1529_v20  ;;  %v6269_v58 = vor.u32 %v7750_v43, %v6266_v16  ;;  %v7742_v36 = vld [vmem:[%s12057_s3 + $0x344] sm:$0xf]  ;;  %v7778_v53 = vld [vmem:[%s12057_s3 + $0x45c] sm:$0xf0] }
  0xf2   :  { %3366 = vmatpush.bf16.msrb.mxu2 %v6457_v34  ;;  %v6237_v49 = vor.u32 %v7742_v36, %v6234_v42  ;;  %v6361_v54 = vor.u32 %v7778_v53, %v6360_v18  ;;  %v6328_v3 = vld [vmem:[%s12057_s3 + $0x400] sm:$0xf]  ;;  %v5882_v13 = vld [vmem:[%s12057_s3 + $0xa0] sm:$0xf0] }
  0xf3   :  { %v7770_v4 = vld [vmem:[%s12057_s3 + $0x41c] sm:$0xf0]  ;;  %v6138_v14 = vld [vmem:[%s12057_s3 + $0x2a0] sm:$0xf0]  ;;  %v5885_v34 = vor.u32 %v7654_v12, %v5882_v13 }
  0xf4   :  { %3341 = vmatpush.bf16.msrb.mxu0 %v5913_v44  ;;  %v6392_v44 = vld [vmem:[%s12057_s3 + $0x480] sm:$0xf]  ;;  %v6329_v7 = vor.u32 %v7770_v4, %v6328_v3  ;;  %v7646_v20 = vld [vmem:[%s12057_s3 + $0x44] sm:$0xf] }
  0xf5   :  { %3354 = vmatpush.bf16.msrb.mxu1 %v6169_v46  ;;  %v1555_v46 = vadd.f32 %v9593_v50, %v1542_v31  ;;  %v6393_v47 = vor.u32 %v7786_v45, %v6392_v44  ;;  %v6202_v50 = vld [vmem:[%s12057_s3 + $0x320] sm:$0xf0]  ;;  %v6808_v43 = vld [vmem:[%s12057_s3 + $0x7c0] sm:$0xf]  ;;  %v6048_v44 = vld [vmem:[%s12057_s3 + $0x1c8] sm:$0xf] }
  0xf6   :  { %3367 = vmatpush.bf16.msrb.mxu2 %v6425_v32  ;;  %v6205_v62 = vor.u32 %v7734_v52, %v6202_v50  ;;  %v6106_v28 = vld [vmem:[%s12057_s3 + $0x260] sm:$0xf0]  ;;  %v7890_v16 = vld [vmem:[%s12057_s3 + $0x7dc] sm:$0xf0]  ;;  %v7699_v45 = vld [vmem:[%s12057_s3 + $0x1e4] sm:$0xf0] }
  0xf7   :  { %v7806_v29 = vld [vmem:[%s12057_s3 + $0x544] sm:$0xf]  ;;  %v6809_v30 = vor.u32 %v7890_v16, %v6808_v43  ;;  %v6744_v60 = vld [vmem:[%s12057_s3 + $0x740] sm:$0xf] }
  0xf8   :  { %3342 = vmatpush.bf16.msrb.mxu0 %v5881_v19  ;;  %v1568_v19 = vadd.f32 %v9598_v51, %v1555_v46  ;;  %v7726_v51 = vld [vmem:[%s12057_s3 + $0x2c4] sm:$0xf]  ;;  %v6776_v46 = vld [vmem:[%s12057_s3 + $0x780] sm:$0xf] }
  0xf9   :  { %3355 = vmatpush.bf16.msrb.mxu1 %v6137_v56  ;;  %v5949_v56 = vor.u32 %v7670_v63, %v5946_v22  ;;  %v6173_v27 = vor.u32 %v7726_v51, %v6170_v2  ;;  %v6490_v31 = vld [vmem:[%s12057_s3 + $0x560] sm:$0xf0]  ;;  %3376 = vmatpush.bf16.msrb.mxu3 %v6809_v30  ;;  %v7763_v63 = vld [vmem:[%s12057_s3 + $0x3e4] sm:$0xf0]  ;;  %v7874_v51 = vld [vmem:[%s12057_s3 + $0x75c] sm:$0xf0] }
  0xfa   :  { %3368 = vmatpush.bf16.msrb.mxu2 %v6393_v47  ;;  %v6493_v39 = vor.u32 %v7806_v29, %v6490_v31  ;;  %v6074_v42 = vld [vmem:[%s12057_s3 + $0x220] sm:$0xf0]  ;;  %v7882_v47 = vld [vmem:[%s12057_s3 + $0x79c] sm:$0xf0]  ;;  %v6745_v3 = vor.u32 %v7874_v51, %v6744_v60  ;;  %v5920_v30 = vld [vmem:[%s12057_s3 + $0xc8] sm:$0xf] }
  0xfb   :  { %v6777_v52 = vor.u32 %v7882_v47, %v6776_v46  ;;  %v6458_v50 = vld [vmem:[%s12057_s3 + $0x520] sm:$0xf0]  ;;  %v6712_v12 = vld [vmem:[%s12057_s3 + $0x700] sm:$0xf]  ;;  %v7651_v60 = vld [vmem:[%s12057_s3 + $0x64] sm:$0xf0] }
  0xfc   :  { %3343 = vmatpush.bf16.msrb.mxu0 %v5849_v6  ;;  %v7790_v2 = vld [vmem:[%s12057_s3 + $0x4c4] sm:$0xf]  ;;  %v7866_v13 = vld [vmem:[%s12057_s3 + $0x71c] sm:$0xf0]  ;;  %v6112_v51 = vld [vmem:[%s12057_s3 + $0x248] sm:$0xf] }
  0xfd   :  { %3356 = vmatpush.bf16.msrb.mxu1 %v6105_v10  ;;  %v6557_v10 = vor.u32 %v7822_v5, %v6554_v8  ;;  %3377 = vmatpush.bf16.msrb.mxu3 %v6777_v52  ;;  %v6426_v4 = vld [vmem:[%s12057_s3 + $0x4e0] sm:$0xf0]  ;;  %v5888_v52 = vld [vmem:[%s12057_s3 + $0x88] sm:$0xf] }
  0xfe   :  { %3369 = vmatpush.bf16.msrb.mxu2 %v6361_v54  ;;  %v6077_v54 = vor.u32 %v7702_v38, %v6074_v42  ;;  %v6394_v15 = vld [vmem:[%s12057_s3 + $0x4a0] sm:$0xf0]  ;;  %v7731_v38 = vld [vmem:[%s12057_s3 + $0x2e4] sm:$0xf0]  ;;  %v7850_v42 = vld [vmem:[%s12057_s3 + $0x69c] sm:$0xf0] }
  0xff   :  { %v6362_v16 = vld [vmem:[%s12057_s3 + $0x460] sm:$0xf0] }
 0x100   :  { %3344 = vmatpush.bf16.msrb.mxu0 %v5817_v24  ;;  %v1580_v55 = vpop.f32.mrf.mxu0  ;;  %v6330_v47 = vld [vmem:[%s12057_s3 + $0x420] sm:$0xf0] }
 0x101   :  { %3357 = vmatpush.bf16.msrb.mxu1 %v6073_v26  ;;  %v1581_v59 = vadd.f32 %v1580_v55, %v1568_v19  ;;  %v1593_v1 = vpop.f32.mrf.mxu1  ;;  %v6141_v26 = vor.u32 %v7718_v61, %v6138_v14  ;;  %v6049_v55 = vor.u32 %v7699_v45, %v6048_v44  ;;  %3378 = vmatpush.bf16.msrb.mxu3 %v6745_v3  ;;  %v7782_v61 = vld [vmem:[%s12057_s3 + $0x484] sm:$0xf] }
 0x102   :  { %3370 = vmatpush.bf16.msrb.mxu2 %v6329_v7  ;;  %v6429_v7 = vor.u32 %v7790_v2, %v6426_v4  ;;  %v6713_v14 = vor.u32 %v7866_v13, %v6712_v12  ;;  %v7766_v44 = vld [vmem:[%s12057_s3 + $0x404] sm:$0xf]  ;;  %v7715_v2 = vld [vmem:[%s12057_s3 + $0x264] sm:$0xf0] }
 0x103   :  { %3345 = vmatmul.bf16.vlgmr.msrb.gmra.mxu0 %v9679_v33  ;;  %v1594_v6 = vadd.f32 %v1593_v1, %v1581_v59  ;;  %v7691_v59 = vld [vmem:[%s12057_s3 + $0x1a4] sm:$0xf0] }
 0x104   :  { %3389 = vmatpush.bf16.msra.mxu0 %v6045_v40  ;;  %v5850_v40 = vld [vmem:[%s12057_s3 + $0x60] sm:$0xf0]  ;;  %v7755_v1 = vld [vmem:[%s12057_s3 + $0x3a4] sm:$0xf0] }
 0x105   :  { %3402 = vmatpush.bf16.msra.mxu1 %v6301_v41  ;;  %v9744_v11 = vpack.c.bf16 %v1594_v6, %v1594_v6  ;;  %v7710_v41 = vld [vmem:[%s12057_s3 + $0x244] sm:$0xf]  ;;  %v5853_v32 = vor.u32 %v7646_v20, %v5850_v40  ;;  %v5984_v6 = vld [vmem:[%s12057_s3 + $0x148] sm:$0xf]  ;;  %3379 = vmatpush.bf16.msrb.mxu3 %v6713_v14 }
 0x106   :  { %3415 = vmatpush.bf16.msra.mxu2 %v6557_v10  ;;  %v6109_v36 = vor.u32 %v7710_v41, %v6106_v28  ;;  %v6240_v10 = vld [vmem:[%s12057_s3 + $0x348] sm:$0xf]  ;;  %v6680_v41 = vld [vmem:[%s12057_s3 + $0x6c0] sm:$0xf] }
 0x107   :  { %3358 = vmatmul.bf16.vlgmr.msrb.gmra.mxu1 %v9744_v11  ;;  %v7739_v40 = vld [vmem:[%s12057_s3 + $0x324] sm:$0xf0]  ;;  %v7858_v28 = vld [vmem:[%s12057_s3 + $0x6dc] sm:$0xf0] }
 0x108   :  { %3390 = vmatpush.bf16.msra.mxu0 %v6013_v35  ;;  %v9765_v21 = vpop.f32.mrf.mxu2  ;;  %v1582_v25 = vpop.f32.mrf.mxu0  ;;  %v7638_v35 = vld [vmem:[%s12057_s3 + $0x4] sm:$0xf]  ;;  %v6681_v43 = vor.u32 %v7858_v28, %v6680_v41  ;;  %v7643_v12 = vld [vmem:[%s12057_s3 + $0x24] sm:$0xf0] }
 0x109   :  { %3403 = vmatpush.bf16.msra.mxu1 %v6269_v58  ;;  %v9770_v24 = vpop.f32.mrf.mxu3  ;;  %v1595_v37 = vpop.f32.mrf.mxu1  ;;  %v5818_v58 = vld [vmem:[%s12057_s3 + $0x20] sm:$0xf0]  ;;  %v7675_v25 = vld [vmem:[%s12057_s3 + $0x124] sm:$0xf0] }
 0x10a   :  { %3416 = vmatpush.bf16.msra.mxu2 %v6525_v23  ;;  %v5821_v18 = vor.u32 %v7638_v35, %v5818_v58  ;;  %v5952_v23 = vld [vmem:[%s12057_s3 + $0x108] sm:$0xf]  ;;  %v7774_v37 = vld [vmem:[%s12057_s3 + $0x444] sm:$0xf]  ;;  %3380 = vmatpush.bf16.msrb.mxu3 %v6681_v43 }
 0x10b   :  { %v5953_v29 = vor.u32 %v7675_v25, %v5952_v23  ;;  %v6365_v31 = vor.u32 %v7774_v37, %v6362_v16  ;;  %v7667_v35 = vld [vmem:[%s12057_s3 + $0xe4] sm:$0xf0]  ;;  %v6778_v25 = vld [vmem:[%s12057_s3 + $0x7a0] sm:$0xf0] }
 0x10c   :  { %3391 = vmatpush.bf16.msra.mxu0 %v5981_v48  ;;  %v7798_v48 = vld [vmem:[%s12057_s3 + $0x504] sm:$0xf]  ;;  %v6176_v58 = vld [vmem:[%s12057_s3 + $0x2c8] sm:$0xf] }
 0x10d   :  { %3404 = vmatpush.bf16.msra.mxu1 %v6237_v49  ;;  %v6304_v49 = vld [vmem:[%s12057_s3 + $0x3c8] sm:$0xf]  ;;  %v6461_v19 = vor.u32 %v7798_v48, %v6458_v50  ;;  %v264_v48 = vperm.slane %v9509_v0, 2 }
 0x10e   :  { %3417 = vmatpush.bf16.msra.mxu2 %v6493_v39  ;;  %v6305_v57 = vor.u32 %v7763_v63, %v6304_v49  ;;  %v5921_v49 = vor.u32 %v7667_v35, %v5920_v30  ;;  %v6333_v63 = vor.u32 %v7766_v44, %v6330_v47  ;;  %v7659_v50 = vld [vmem:[%s12057_s3 + $0xa4] sm:$0xf0]  ;;  %v7751_v35 = vld [vmem:[%s12057_s3 + $0x38c] sm:$0xf] }
 0x10f   :  { %v1607_v3 = vadd.f32 %v9765_v21, %v264_v48  ;;  %v6080_v14 = vld [vmem:[%s12057_s3 + $0x208] sm:$0xf]  ;;  %v7679_v47 = vld [vmem:[%s12057_s3 + $0x14c] sm:$0xf] }
 0x110   :  { %3392 = vmatpush.bf16.msra.mxu0 %v5949_v56  ;;  %v1608_v22 = vpop.f32.mrf.mxu2  ;;  %v6016_v56 = vld [vmem:[%s12057_s3 + $0x188] sm:$0xf]  ;;  %v5986_v48 = vld [vmem:[%s12057_s3 + $0x168] sm:$0xf0] }
 0x111   :  { %3405 = vmatpush.bf16.msra.mxu1 %v6205_v62  ;;  %v1621_v53 = vpop.f32.mrf.mxu3  ;;  %v6272_v62 = vld [vmem:[%s12057_s3 + $0x388] sm:$0xf]  ;;  %v6017_v5 = vor.u32 %v7691_v59, %v6016_v56  ;;  %v6177_v22 = vor.u32 %v7731_v38, %v6176_v58  ;;  %v1620_v23 = vadd.f32 %v9770_v24, %v1607_v3  ;;  %v6306_v24 = vld [vmem:[%s12057_s3 + $0x3e8] sm:$0xf0]  ;;  %v7870_v38 = vld [vmem:[%s12057_s3 + $0x744] sm:$0xf] }
 0x112   :  { %3418 = vmatpush.bf16.msra.mxu2 %v6461_v19  ;;  %v6273_v8 = vor.u32 %v7755_v1, %v6272_v62  ;;  %v7723_v53 = vld [vmem:[%s12057_s3 + $0x2a4] sm:$0xf0]  ;;  %v6616_v19 = vld [vmem:[%s12057_s3 + $0x640] sm:$0xf]  ;;  %v6274_v58 = vld [vmem:[%s12057_s3 + $0x3a8] sm:$0xf0] }
 0x113   :  { %v5856_v59 = vld [vmem:[%s12057_s3 + $0x48] sm:$0xf] }
 0x114   :  { %3393 = vmatpush.bf16.msra.mxu0 %v5917_v9  ;;  %v7683_v9 = vld [vmem:[%s12057_s3 + $0x164] sm:$0xf0]  ;;  %v5857_v21 = vor.u32 %v7651_v60, %v5856_v59  ;;  %v6682_v59 = vld [vmem:[%s12057_s3 + $0x6e0] sm:$0xf0] }
 0x115   :  { %3406 = vmatpush.bf16.msra.mxu1 %v6173_v27  ;;  %v7747_v27 = vld [vmem:[%s12057_s3 + $0x364] sm:$0xf0]  ;;  %v5985_v17 = vor.u32 %v7683_v9, %v5984_v6  ;;  %v7834_v6 = vld [vmem:[%s12057_s3 + $0x61c] sm:$0xf0] }
 0x116   :  { %3419 = vmatpush.bf16.msra.mxu2 %v6429_v7  ;;  %v6241_v20 = vor.u32 %v7747_v27, %v6240_v10  ;;  %v7886_v7 = vld [vmem:[%s12057_s3 + $0x7c4] sm:$0xf]  ;;  %v5824_v27 = vld [vmem:[%s12057_s3 + $0x8] sm:$0xf] }
 0x117   :  { %v6810_v10 = vld [vmem:[%s12057_s3 + $0x7e0] sm:$0xf0]  ;;  %v5825_v28 = vor.u32 %v7643_v12, %v5824_v27 }
 0x118   :  { %3394 = vmatpush.bf16.msra.mxu0 %v5885_v34  ;;  %v6397_v34 = vor.u32 %v7782_v61, %v6394_v15  ;;  %v6813_v13 = vor.u32 %v7886_v7, %v6810_v10  ;;  %v6113_v61 = vor.u32 %v7715_v2, %v6112_v51  ;;  %v7707_v15 = vld [vmem:[%s12057_s3 + $0x224] sm:$0xf0]  ;;  %v7727_v7 = vld [vmem:[%s12057_s3 + $0x2cc] sm:$0xf]  ;;  %v6650_v10 = vld [vmem:[%s12057_s3 + $0x6a0] sm:$0xf0] }
 0x119   :  { %3407 = vmatpush.bf16.msra.mxu1 %v6141_v26  ;;  %v6208_v26 = vld [vmem:[%s12057_s3 + $0x308] sm:$0xf]  ;;  %v6081_v43 = vor.u32 %v7707_v15, %v6080_v14 }
 0x11a   :  { %3420 = vmatpush.bf16.msra.mxu2 %v6397_v34  ;;  %v6050_v34 = vld [vmem:[%s12057_s3 + $0x1e8] sm:$0xf0]  ;;  %v6560_v51 = vld [vmem:[%s12057_s3 + $0x5c8] sm:$0xf] }
 0x11b   :  { %v7827_v2 = vld [vmem:[%s12057_s3 + $0x5e4] sm:$0xf0] }
 0x11c   :  { %3395 = vmatpush.bf16.msra.mxu0 %v5853_v32  ;;  %v6209_v32 = vor.u32 %v7739_v40, %v6208_v26  ;;  %v7759_v26 = vld [vmem:[%s12057_s3 + $0x3cc] sm:$0xf]  ;;  %v6561_v12 = vor.u32 %v7827_v2, %v6560_v51  ;;  %v6528_v14 = vld [vmem:[%s12057_s3 + $0x588] sm:$0xf] }
 0x11d   :  { %3408 = vmatpush.bf16.msra.mxu1 %v6109_v36  ;;  %v6648_v36 = vld [vmem:[%s12057_s3 + $0x680] sm:$0xf]  ;;  %v6309_v30 = vor.u32 %v7759_v26, %v6306_v24  ;;  %v7819_v15 = vld [vmem:[%s12057_s3 + $0x5a4] sm:$0xf0]  ;;  %v6146_v26 = vld [vmem:[%s12057_s3 + $0x2a8] sm:$0xf0] }
 0x11e   :  { %3421 = vmatpush.bf16.msra.mxu2 %v6365_v31  ;;  %v6649_v46 = vor.u32 %v7850_v42, %v6648_v36  ;;  %v7687_v31 = vld [vmem:[%s12057_s3 + $0x18c] sm:$0xf]  ;;  %v7838_v24 = vld [vmem:[%s12057_s3 + $0x644] sm:$0xf]  ;;  %v6432_v2 = vld [vmem:[%s12057_s3 + $0x4c8] sm:$0xf] }
 0x120   :  { %3396 = vmatpush.bf16.msra.mxu0 %v5821_v18  ;;  %v9915_v39 = vpop.f32.mrf.mxu0  ;;  %v6144_v18 = vld [vmem:[%s12057_s3 + $0x288] sm:$0xf]  ;;  %3381 = vmatpush.bf16.msrb.mxu3 %v6649_v46  ;;  %v6277_v46 = vor.u32 %v7751_v35, %v6274_v58  ;;  %v5858_v35 = vld [vmem:[%s12057_s3 + $0x68] sm:$0xf0] }
 0x121   :  { %3409 = vmatpush.bf16.msra.mxu1 %v6077_v54  ;;  %v9926_v45 = vpop.f32.mrf.mxu1  ;;  %v7842_v54 = vld [vmem:[%s12057_s3 + $0x65c] sm:$0xf0]  ;;  %v6145_v1 = vor.u32 %v7723_v53, %v6144_v18  ;;  %v7711_v58 = vld [vmem:[%s12057_s3 + $0x24c] sm:$0xf] }
 0x122   :  { %3422 = vmatpush.bf16.msra.mxu2 %v6333_v63  ;;  %v6617_v56 = vor.u32 %v7842_v54, %v6616_v19  ;;  %v7862_v63 = vld [vmem:[%s12057_s3 + $0x704] sm:$0xf]  ;;  %v7671_v19 = vld [vmem:[%s12057_s3 + $0x10c] sm:$0xf] }
 0x123   :  { %3397 = vmatmul.bf16.vlgmr.msra.gmra.mxu0 %v9679_v33  ;;  %v5954_v54 = vld [vmem:[%s12057_s3 + $0x128] sm:$0xf0] }
 0x124   :  { %3441 = vmatpush.bf16.msrb.mxu0 %v6049_v55  ;;  %3410 = vmatmul.bf16.vlgmr.msra.gmra.mxu1 %v9744_v11  ;;  %v5957_v60 = vor.u32 %v7671_v19, %v5954_v54  ;;  %v7700_v19 = vld [vmem:[%s12057_s3 + $0x1ec] sm:$0xf0] }
 0x125   :  { %3454 = vmatpush.bf16.msrb.mxu1 %v6305_v57  ;;  %v5889_v57 = vor.u32 %v7659_v50, %v5888_v52  ;;  %3382 = vmatpush.bf16.msrb.mxu3 %v6617_v56  ;;  %v5989_v50 = vor.u32 %v7679_v47, %v5986_v48  ;;  %v7735_v56 = vld [vmem:[%s12057_s3 + $0x30c] sm:$0xf]  ;;  %v6312_v54 = vld [vmem:[%s12057_s3 + $0x3d0] sm:$0xf] }
 0x128   :  { %3442 = vmatpush.bf16.msrb.mxu0 %v6017_v5  ;;  %v9950_v55 = vpop.f32.mrf.mxu2  ;;  %v1634_v4 = vpop.f32.mrf.mxu0  ;;  %v6584_v5 = vld [vmem:[%s12057_s3 + $0x600] sm:$0xf] }
 0x129   :  { %3455 = vmatpush.bf16.msrb.mxu1 %v6273_v8  ;;  %v9955_v62 = vpop.f32.mrf.mxu3  ;;  %v1647_v8 = vpop.f32.mrf.mxu1  ;;  %v6585_v9 = vor.u32 %v7834_v6, %v6584_v5  ;;  %v7663_v5 = vld [vmem:[%s12057_s3 + $0xcc] sm:$0xf] }
 0x12a   :  { %v5922_v6 = vld [vmem:[%s12057_s3 + $0xe8] sm:$0xf0] }
 0x12b   :  { %3383 = vmatpush.bf16.msrb.mxu3 %v6585_v9  ;;  %v7846_v9 = vld [vmem:[%s12057_s3 + $0x684] sm:$0xf] }
 0x12c   :  { %3443 = vmatpush.bf16.msrb.mxu0 %v5985_v17  ;;  %v7695_v17 = vld [vmem:[%s12057_s3 + $0x1cc] sm:$0xf]  ;;  %v6653_v27 = vor.u32 %v7846_v9, %v6650_v10 }
 0x12d   :  { %3456 = vmatpush.bf16.msrb.mxu1 %v6241_v20  ;;  %v7878_v20 = vld [vmem:[%s12057_s3 + $0x784] sm:$0xf]  ;;  %v6053_v16 = vor.u32 %v7695_v17, %v6050_v34  ;;  %v7655_v34 = vld [vmem:[%s12057_s3 + $0x8c] sm:$0xf] }
 0x12e   :  { %v6781_v41 = vor.u32 %v7878_v20, %v6778_v25  ;;  %v5890_v20 = vld [vmem:[%s12057_s3 + $0xa8] sm:$0xf0] }
 0x12f   :  { %3428 = vmatpush.bf16.msra.mxu3 %v6813_v13  ;;  %v5925_v13 = vor.u32 %v7663_v5, %v5922_v6  ;;  %v7719_v25 = vld [vmem:[%s12057_s3 + $0x28c] sm:$0xf]  ;;  %v6024_v5 = vld [vmem:[%s12057_s3 + $0x190] sm:$0xf] }
 0x130   :  { %3444 = vmatpush.bf16.msrb.mxu0 %v5953_v29  ;;  %v1660_v40 = vpop.f32.mrf.mxu2  ;;  %v1633_v29 = vadd.f32 %v9915_v39, %v1620_v23  ;;  %v6746_v39 = vld [vmem:[%s12057_s3 + $0x760] sm:$0xf0]  ;;  %v7692_v6 = vld [vmem:[%s12057_s3 + $0x1ac] sm:$0xf0] }
 0x131   :  { %3457 = vmatpush.bf16.msrb.mxu1 %v6209_v32  ;;  %v1673_v37 = vpop.f32.mrf.mxu3  ;;  %v6018_v32 = vld [vmem:[%s12057_s3 + $0x1a8] sm:$0xf0]  ;;  %v6749_v36 = vor.u32 %v7870_v38, %v6746_v39  ;;  %v6618_v40 = vld [vmem:[%s12057_s3 + $0x660] sm:$0xf0]  ;;  %v6025_v10 = vor.u32 %v7692_v6, %v6024_v5  ;;  %v7891_v5 = vld [vmem:[%s12057_s3 + $0x7e4] sm:$0xf0] }
 0x132   :  { %v6021_v42 = vor.u32 %v7687_v31, %v6018_v32  ;;  %v1646_v44 = vadd.f32 %v9926_v45, %v1633_v29  ;;  %v6242_v45 = vld [vmem:[%s12057_s3 + $0x368] sm:$0xf0]  ;;  %v5893_v37 = vor.u32 %v7655_v34, %v5890_v20  ;;  %v6149_v29 = vor.u32 %v7719_v25, %v6146_v26  ;;  %v7779_v25 = vld [vmem:[%s12057_s3 + $0x464] sm:$0xf0]  ;;  %v5864_v6 = vld [vmem:[%s12057_s3 + $0x50] sm:$0xf] }
 0x133   :  { %3429 = vmatpush.bf16.msra.mxu3 %v6781_v41  ;;  %v6621_v41 = vor.u32 %v7838_v24, %v6618_v40  ;;  %v7647_v32 = vld [vmem:[%s12057_s3 + $0x4c] sm:$0xf]  ;;  %v5960_v24 = vld [vmem:[%s12057_s3 + $0x110] sm:$0xf] }
 0x134   :  { %3445 = vmatpush.bf16.msrb.mxu0 %v5921_v49  ;;  %v7743_v49 = vld [vmem:[%s12057_s3 + $0x34c] sm:$0xf]  ;;  %v1659_v18 = vadd.f32 %v9950_v55, %v1646_v44  ;;  %v7854_v55 = vld [vmem:[%s12057_s3 + $0x6c4] sm:$0xf]  ;;  %v5861_v47 = vor.u32 %v7647_v32, %v5858_v35  ;;  %v7676_v40 = vld [vmem:[%s12057_s3 + $0x12c] sm:$0xf0] }
 0x135   :  { %3458 = vmatpush.bf16.msrb.mxu1 %v6177_v22  ;;  %v6714_v22 = vld [vmem:[%s12057_s3 + $0x720] sm:$0xf0]  ;;  %v6245_v53 = vor.u32 %v7743_v49, %v6242_v45  ;;  %v6114_v38 = vld [vmem:[%s12057_s3 + $0x268] sm:$0xf0]  ;;  %v6464_v49 = vld [vmem:[%s12057_s3 + $0x508] sm:$0xf] }
 0x136   :  { %v6717_v52 = vor.u32 %v7862_v63, %v6714_v22  ;;  %v1672_v3 = vadd.f32 %v9955_v62, %v1659_v18  ;;  %v6178_v62 = vld [vmem:[%s12057_s3 + $0x2e8] sm:$0xf0]  ;;  %v7803_v45 = vld [vmem:[%s12057_s3 + $0x524] sm:$0xf0]  ;;  %v6117_v63 = vor.u32 %v7711_v58, %v6114_v38  ;;  %v5928_v38 = vld [vmem:[%s12057_s3 + $0xd0] sm:$0xf] }
 0x137   :  { %3430 = vmatpush.bf16.msra.mxu3 %v6749_v36  ;;  %v6181_v23 = vor.u32 %v7727_v7, %v6178_v62  ;;  %v7830_v36 = vld [vmem:[%s12057_s3 + $0x604] sm:$0xf]  ;;  %v7639_v22 = vld [vmem:[%s12057_s3 + $0xc] sm:$0xf]  ;;  %v265_v7 = vperm.slane %v9509_v0, 3 }
 0x138   :  { %3446 = vmatpush.bf16.msrb.mxu0 %v5889_v57  ;;  %v6210_v57 = vld [vmem:[%s12057_s3 + $0x328] sm:$0xf0]  ;;  %v7756_v62 = vld [vmem:[%s12057_s3 + $0x3ac] sm:$0xf0]  ;;  %v7787_v0 = vld [vmem:[%s12057_s3 + $0x4a4] sm:$0xf0] }
 0x139   :  { %3459 = vmatpush.bf16.msrb.mxu1 %v6145_v1  ;;  %v6685_v1 = vor.u32 %v7854_v55, %v6682_v59  ;;  %v6213_v4 = vor.u32 %v7735_v56, %v6210_v57  ;;  %v6082_v18 = vld [vmem:[%s12057_s3 + $0x228] sm:$0xf0]  ;;  %v7764_v56 = vld [vmem:[%s12057_s3 + $0x3ec] sm:$0xf0]  ;;  %v6465_v57 = vor.u32 %v7803_v45, %v6464_v49 }
 0x13a   :  { %v7823_v32 = vld [vmem:[%s12057_s3 + $0x5cc] sm:$0xf] }
 0x13b   :  { %3431 = vmatpush.bf16.msra.mxu3 %v6717_v52  ;;  %v5826_v52 = vld [vmem:[%s12057_s3 + $0x28] sm:$0xf0] }
 0x13c   :  { %3447 = vmatpush.bf16.msrb.mxu0 %v5857_v21  ;;  %v5829_v55 = vor.u32 %v7639_v22, %v5826_v52  ;;  %v6562_v58 = vld [vmem:[%s12057_s3 + $0x5e8] sm:$0xf0] }
 0x13d   :  { %3460 = vmatpush.bf16.msrb.mxu1 %v6113_v61  ;;  %v6565_v45 = vor.u32 %v7823_v32, %v6562_v58  ;;  %v6530_v52 = vld [vmem:[%s12057_s3 + $0x5a8] sm:$0xf0] }
 0x13e   :  { %v6434_v32 = vld [vmem:[%s12057_s3 + $0x4e8] sm:$0xf0] }
 0x13f   :  { %3432 = vmatpush.bf16.msra.mxu3 %v6685_v1 }
 0x140   :  { %3448 = vmatpush.bf16.msrb.mxu0 %v5825_v28  ;;  %v1684_v8 = vpop.f32.mrf.mxu0  ;;  %v6529_v28 = vor.u32 %v7819_v15, %v6528_v14  ;;  %v6248_v15 = vld [vmem:[%s12057_s3 + $0x350] sm:$0xf] }
 0x141   :  { %3461 = vmatpush.bf16.msrb.mxu1 %v6081_v43  ;;  %v1685_v21 = vadd.f32 %v1684_v8, %v1672_v3  ;;  %v10094_v61 = vpop.f32.mrf.mxu1  ;;  %v6496_v43 = vld [vmem:[%s12057_s3 + $0x548] sm:$0xf]  ;;  %v6280_v8 = vld [vmem:[%s12057_s3 + $0x390] sm:$0xf] }
 0x142   :  { %v7795_v3 = vld [vmem:[%s12057_s3 + $0x4e4] sm:$0xf0]  ;;  %v1698_v14 = vadd.f32 %v10094_v61, %v265_v7  ;;  %v7652_v7 = vld [vmem:[%s12057_s3 + $0x6c] sm:$0xf0] }
 0x143   :  { %3449 = vmatmul.bf16.vlgmr.msrb.gmra.mxu0 %v9679_v33  ;;  %v10102_v17 = vpack.c.bf16 %v1685_v21, %v1685_v21  ;;  %3433 = vmatpush.bf16.msra.mxu3 %v6653_v27  ;;  %v6433_v9 = vor.u32 %v7795_v3, %v6432_v2  ;;  %v6400_v21 = vld [vmem:[%s12057_s3 + $0x488] sm:$0xf]  ;;  %v6281_v27 = vor.u32 %v7756_v62, %v6280_v8  ;;  %v6120_v62 = vld [vmem:[%s12057_s3 + $0x250] sm:$0xf] }
 0x144   :  { %3493 = vmatpush.bf16.msra.mxu0 %v6053_v16  ;;  %3462 = vmatmul.bf16.vlgmr.msrb.gmra.mxu1 %v9744_v11  ;;  %v7811_v16 = vld [vmem:[%s12057_s3 + $0x564] sm:$0xf0]  ;;  %v6401_v34 = vor.u32 %v7787_v0, %v6400_v21 }
 0x145   :  { %3506 = vmatpush.bf16.msra.mxu1 %v6309_v30  ;;  %3371 = vmatmul.bf16.vlgmr.msrb.gmra.mxu2 %v10102_v17  ;;  %v6368_v61 = vld [vmem:[%s12057_s3 + $0x448] sm:$0xf] }
 0x146   :  { %3467 = vmatpush.bf16.msrb.mxu2 %v6561_v12  ;;  %v5992_v12 = vld [vmem:[%s12057_s3 + $0x150] sm:$0xf]  ;;  %v6784_v0 = vld [vmem:[%s12057_s3 + $0x788] sm:$0xf] }
 0x147   :  { %3434 = vmatpush.bf16.msra.mxu3 %v6621_v41 }
 0x148   :  { %3494 = vmatpush.bf16.msra.mxu0 %v6021_v42  ;;  %v10129_v30 = vpop.f32.mrf.mxu2  ;;  %v1686_v39 = vpop.f32.mrf.mxu0  ;;  %v6586_v42 = vld [vmem:[%s12057_s3 + $0x620] sm:$0xf0] }
 0x149   :  { %3507 = vmatpush.bf16.msra.mxu1 %v6277_v46  ;;  %v10131_v31 = vpop.f32.mrf.mxu3  ;;  %v6589_v44 = vor.u32 %v7830_v36, %v6586_v42  ;;  %v6497_v46 = vor.u32 %v7811_v16, %v6496_v43  ;;  %v1699_v48 = vpop.f32.mrf.mxu1  ;;  %v1711_v41 = vadd.f32 %v10129_v30, %v1698_v14  ;;  %v6369_v43 = vor.u32 %v7779_v25, %v6368_v61  ;;  %v7771_v30 = vld [vmem:[%s12057_s3 + $0x424] sm:$0xf0]  ;;  %v7668_v39 = vld [vmem:[%s12057_s3 + $0xec] sm:$0xf0]  ;;  %v7799_v14 = vld [vmem:[%s12057_s3 + $0x50c] sm:$0xf] }
 0x14a   :  { %3468 = vmatpush.bf16.msrb.mxu2 %v6529_v28  ;;  %v6216_v28 = vld [vmem:[%s12057_s3 + $0x310] sm:$0xf]  ;;  %v5961_v16 = vor.u32 %v7676_v40, %v5960_v24  ;;  %v7696_v24 = vld [vmem:[%s12057_s3 + $0x1d4] sm:$0xf] }
 0x14b   :  { %3435 = vmatpush.bf16.msra.mxu3 %v6589_v44  ;;  %v1724_v36 = vadd.f32 %v10131_v31, %v1711_v41  ;;  %v6184_v44 = vld [vmem:[%s12057_s3 + $0x2d0] sm:$0xf]  ;;  %v7815_v31 = vld [vmem:[%s12057_s3 + $0x58c] sm:$0xf]  ;;  %v6058_v40 = vld [vmem:[%s12057_s3 + $0x1f0] sm:$0xf0] }
 0x14c   :  { %3495 = vmatpush.bf16.msra.mxu0 %v5989_v50  ;;  %v7703_v50 = vld [vmem:[%s12057_s3 + $0x20c] sm:$0xf]  ;;  %v7644_v61 = vld [vmem:[%s12057_s3 + $0x2c] sm:$0xf0] }
 0x14d   :  { %3508 = vmatpush.bf16.msra.mxu1 %v6245_v53  ;;  %v6056_v53 = vld [vmem:[%s12057_s3 + $0x1d0] sm:$0xf]  ;;  %v6085_v59 = vor.u32 %v7703_v50, %v6082_v18 }
 0x14e   :  { %3469 = vmatpush.bf16.msrb.mxu2 %v6497_v46  ;;  %v6057_v1 = vor.u32 %v7700_v19, %v6056_v53  ;;  %v7732_v46 = vld [vmem:[%s12057_s3 + $0x2ec] sm:$0xf0] }
 0x14f   :  { %v6185_v22 = vor.u32 %v7732_v46, %v6184_v44  ;;  %v5896_v50 = vld [vmem:[%s12057_s3 + $0x90] sm:$0xf]  ;;  %v7688_v44 = vld [vmem:[%s12057_s3 + $0x194] sm:$0xf] }
 0x150   :  { %3496 = vmatpush.bf16.msra.mxu0 %v5957_v60  ;;  %v1712_v60 = vpop.f32.mrf.mxu2  ;;  %v7660_v18 = vld [vmem:[%s12057_s3 + $0xac] sm:$0xf0]  ;;  %v6026_v46 = vld [vmem:[%s12057_s3 + $0x1b0] sm:$0xf0] }
 0x151   :  { %3509 = vmatpush.bf16.msra.mxu1 %v6213_v4  ;;  %v1725_v51 = vpop.f32.mrf.mxu3  ;;  %v6313_v4 = vor.u32 %v7764_v56, %v6312_v54  ;;  %v6152_v53 = vld [vmem:[%s12057_s3 + $0x290] sm:$0xf]  ;;  %v6533_v56 = vor.u32 %v7815_v31, %v6530_v52  ;;  %v7807_v60 = vld [vmem:[%s12057_s3 + $0x54c] sm:$0xf]  ;;  %v6720_v52 = vld [vmem:[%s12057_s3 + $0x708] sm:$0xf] }
 0x152   :  { %3470 = vmatpush.bf16.msrb.mxu2 %v6465_v57  ;;  %v7724_v19 = vld [vmem:[%s12057_s3 + $0x2ac] sm:$0xf0]  ;;  %v5897_v57 = vor.u32 %v7660_v18, %v5896_v50  ;;  %v6498_v51 = vld [vmem:[%s12057_s3 + $0x568] sm:$0xf0]  ;;  %v7867_v50 = vld [vmem:[%s12057_s3 + $0x724] sm:$0xf0] }
 0x153   :  { %v6501_v21 = vor.u32 %v7807_v60, %v6498_v51  ;;  %v6088_v25 = vld [vmem:[%s12057_s3 + $0x210] sm:$0xf]  ;;  %v6402_v31 = vld [vmem:[%s12057_s3 + $0x4a8] sm:$0xf0]  ;;  %v6688_v51 = vld [vmem:[%s12057_s3 + $0x6c8] sm:$0xf] }
 0x154   :  { %3497 = vmatpush.bf16.msra.mxu0 %v5925_v13  ;;  %v7684_v13 = vld [vmem:[%s12057_s3 + $0x16c] sm:$0xf0] }
 0x155   :  { %3510 = vmatpush.bf16.msra.mxu1 %v6181_v23  ;;  %3423 = vmatmul.bf16.vlgmr.msra.gmra.mxu2 %v10102_v17  ;;  %v7748_v23 = vld [vmem:[%s12057_s3 + $0x36c] sm:$0xf0]  ;;  %v5993_v20 = vor.u32 %v7684_v13, %v5992_v12  ;;  %v5865_v12 = vor.u32 %v7652_v7, %v5864_v6  ;;  %v7883_v13 = vld [vmem:[%s12057_s3 + $0x7a4] sm:$0xf0]  ;;  %v7736_v7 = vld [vmem:[%s12057_s3 + $0x314] sm:$0xf] }
 0x156   :  { %3471 = vmatpush.bf16.msrb.mxu2 %v6433_v9  ;;  %v6249_v26 = vor.u32 %v7748_v23, %v6248_v15  ;;  %v7716_v9 = vld [vmem:[%s12057_s3 + $0x26c] sm:$0xf0]  ;;  %v6466_v15 = vld [vmem:[%s12057_s3 + $0x528] sm:$0xf0] }
 0x157   :  { %v6469_v41 = vor.u32 %v7799_v14, %v6466_v15  ;;  %v7664_v15 = vld [vmem:[%s12057_s3 + $0xd4] sm:$0xf] }
 0x158   :  { %3498 = vmatpush.bf16.msra.mxu0 %v5893_v37  ;;  %v7740_v37 = vld [vmem:[%s12057_s3 + $0x32c] sm:$0xf0] }
 0x159   :  { %3511 = vmatpush.bf16.msra.mxu1 %v6149_v29  ;;  %v6336_v29 = vld [vmem:[%s12057_s3 + $0x408] sm:$0xf]  ;;  %v6217_v35 = vor.u32 %v7740_v37, %v6216_v28  ;;  %v7760_v28 = vld [vmem:[%s12057_s3 + $0x3d4] sm:$0xf] }
 0x15a   :  { %3472 = vmatpush.bf16.msrb.mxu2 %v6401_v34  ;;  %v6337_v48 = vor.u32 %v7771_v30, %v6336_v29  ;;  %v6121_v34 = vor.u32 %v7716_v9, %v6120_v62  ;;  %v6314_v37 = vld [vmem:[%s12057_s3 + $0x3f0] sm:$0xf0]  ;;  %v7791_v30 = vld [vmem:[%s12057_s3 + $0x4cc] sm:$0xf]  ;;  %v6656_v9 = vld [vmem:[%s12057_s3 + $0x688] sm:$0xf] }
 0x15c   :  { %3499 = vmatpush.bf16.msra.mxu0 %v5861_v47 }
 0x15d   :  { %3512 = vmatpush.bf16.msra.mxu1 %v6117_v63  ;;  %v5929_v63 = vor.u32 %v7668_v39, %v5928_v38  ;;  %v6061_v38 = vor.u32 %v7696_v24, %v6058_v40  ;;  %v6752_v39 = vld [vmem:[%s12057_s3 + $0x748] sm:$0xf] }
 0x15e   :  { %3473 = vmatpush.bf16.msrb.mxu2 %v6369_v43 }
 0x160   :  { %3500 = vmatpush.bf16.msra.mxu0 %v5829_v55  ;;  %v1736_v42 = vpop.f32.mrf.mxu0 }
 0x161   :  { %3513 = vmatpush.bf16.msra.mxu1 %v6085_v59  ;;  %v1749_v47 = vpop.f32.mrf.mxu1  ;;  %v1737_v49 = vadd.f32 %v1736_v42, %v1724_v36  ;;  %v6153_v59 = vor.u32 %v7724_v19, %v6152_v53  ;;  %v7875_v36 = vld [vmem:[%s12057_s3 + $0x764] sm:$0xf0]  ;;  %v6317_v42 = vor.u32 %v7760_v28, %v6314_v37  ;;  %v7680_v53 = vld [vmem:[%s12057_s3 + $0x154] sm:$0xf] }
 0x162   :  { %3474 = vmatpush.bf16.msrb.mxu2 %v6337_v48  ;;  %v7752_v48 = vld [vmem:[%s12057_s3 + $0x394] sm:$0xf]  ;;  %v7843_v37 = vld [vmem:[%s12057_s3 + $0x664] sm:$0xf0] }
 0x163   :  { %3501 = vmatmul.bf16.vlgmr.msra.gmra.mxu0 %v9679_v33  ;;  %v1750_v54 = vadd.f32 %v1749_v47, %v1737_v49  ;;  %v6437_v47 = vor.u32 %v7791_v30, %v6434_v32  ;;  %v6282_v49 = vld [vmem:[%s12057_s3 + $0x3b0] sm:$0xf0] }
 0x164   :  { %3545 = vmatpush.bf16.msrb.mxu0 %v6057_v1  ;;  %3514 = vmatmul.bf16.vlgmr.msra.gmra.mxu1 %v9744_v11  ;;  %v6816_v1 = vld [vmem:[%s12057_s3 + $0x7c8] sm:$0xf]  ;;  %v6285_v18 = vor.u32 %v7752_v48, %v6282_v49  ;;  %v5994_v19 = vld [vmem:[%s12057_s3 + $0x170] sm:$0xf0]  ;;  %v6504_v48 = vld [vmem:[%s12057_s3 + $0x550] sm:$0xf] }
 0x165   :  { %3558 = vmatpush.bf16.msrb.mxu1 %v6313_v4  ;;  %3475 = vmatmul.bf16.vlgmr.msrb.gmra.mxu2 %v10102_v17  ;;  %v5997_v60 = vor.u32 %v7680_v53, %v5994_v19  ;;  %v7656_v30 = vld [vmem:[%s12057_s3 + $0x94] sm:$0xf]  ;;  %v7812_v49 = vld [vmem:[%s12057_s3 + $0x56c] sm:$0xf0] }
 0x166   :  { %3519 = vmatpush.bf16.msra.mxu2 %v6565_v45  ;;  %v6753_v45 = vor.u32 %v7875_v36, %v6752_v39  ;;  %v5898_v32 = vld [vmem:[%s12057_s3 + $0xb0] sm:$0xf0] }
 0x167   :  { %v6122_v53 = vld [vmem:[%s12057_s3 + $0x270] sm:$0xf0] }
 0x168   :  { %3546 = vmatpush.bf16.msrb.mxu0 %v6025_v10  ;;  %v1762_v55 = vpop.f32.mrf.mxu2  ;;  %v1738_v4 = vpop.f32.mrf.mxu0 }
 0x169   :  { %3559 = vmatpush.bf16.msrb.mxu1 %v6281_v27  ;;  %v1763_v2 = vadd.f32 %v1762_v55, %v1750_v54  ;;  %v1775_v3 = vpop.f32.mrf.mxu3  ;;  %v1751_v8 = vpop.f32.mrf.mxu1  ;;  %v6817_v27 = vor.u32 %v7891_v5, %v6816_v1  ;;  %v6721_v55 = vor.u32 %v7867_v50, %v6720_v52  ;;  %v6370_v1 = vld [vmem:[%s12057_s3 + $0x468] sm:$0xf0]  ;;  %v7672_v4 = vld [vmem:[%s12057_s3 + $0x114] sm:$0xf] }
 0x16a   :  { %3520 = vmatpush.bf16.msra.mxu2 %v6533_v56  ;;  %v7744_v56 = vld [vmem:[%s12057_s3 + $0x354] sm:$0xf] }
 0x16b   :  { %v1776_v10 = vadd.f32 %v1775_v3, %v1763_v2  ;;  %v7859_v2 = vld [vmem:[%s12057_s3 + $0x6e4] sm:$0xf0]  ;;  %v5962_v5 = vld [vmem:[%s12057_s3 + $0x130] sm:$0xf0] }
 0x16c   :  { %3547 = vmatpush.bf16.msrb.mxu0 %v5993_v20  ;;  %v5832_v20 = vld [vmem:[%s12057_s3 + $0x10] sm:$0xf]  ;;  %v6218_v8 = vld [vmem:[%s12057_s3 + $0x330] sm:$0xf0]  ;;  %v6689_v62 = vor.u32 %v7859_v2, %v6688_v51 }
 0x16d   :  { %3560 = vmatpush.bf16.msrb.mxu1 %v6249_v26  ;;  %v10321_v23 = vpack.c.bf16 %v1776_v10, %v1776_v10  ;;  %v7708_v26 = vld [vmem:[%s12057_s3 + $0x22c] sm:$0xf0]  ;;  %v5833_v29 = vor.u32 %v7644_v61, %v5832_v20  ;;  %v7767_v10 = vld [vmem:[%s12057_s3 + $0x40c] sm:$0xf]  ;;  %v6221_v14 = vor.u32 %v7736_v7, %v6218_v8  ;;  %v7640_v2 = vld [vmem:[%s12057_s3 + $0x14] sm:$0xf] }
 0x16e   :  { %3521 = vmatpush.bf16.msra.mxu2 %v6501_v21  ;;  %v6089_v58 = vor.u32 %v7708_v26, %v6088_v25  ;;  %v6338_v21 = vld [vmem:[%s12057_s3 + $0x428] sm:$0xf0]  ;;  %v7728_v25 = vld [vmem:[%s12057_s3 + $0x2d4] sm:$0xf]  ;;  %v6064_v7 = vld [vmem:[%s12057_s3 + $0x1d8] sm:$0xf] }
 0x16f   :  { %3384 = vmatmul.bf16.vlgmr.msrb.gmra.mxu3 %v10321_v23  ;;  %v6341_v61 = vor.u32 %v7767_v10, %v6338_v21  ;;  %v6186_v26 = vld [vmem:[%s12057_s3 + $0x2f0] sm:$0xf0]  ;;  %v7701_v8 = vld [vmem:[%s12057_s3 + $0x1f4] sm:$0xf0] }
 0x170   :  { %3548 = vmatpush.bf16.msrb.mxu0 %v5961_v16  ;;  %3480 = vmatpush.bf16.msrb.mxu3 %v6817_v27  ;;  %v1764_v43 = vpop.f32.mrf.mxu2  ;;  %v6785_v16 = vor.u32 %v7883_v13, %v6784_v0  ;;  %v5965_v0 = vor.u32 %v7672_v4, %v5962_v5  ;;  %v7851_v27 = vld [vmem:[%s12057_s3 + $0x6a4] sm:$0xf0]  ;;  %v7828_v13 = vld [vmem:[%s12057_s3 + $0x5ec] sm:$0xf0]  ;;  %v7704_v4 = vld [vmem:[%s12057_s3 + $0x214] sm:$0xf] }
 0x171   :  { %3561 = vmatpush.bf16.msrb.mxu1 %v6217_v35  ;;  %v1777_v35 = vpop.f32.mrf.mxu3  ;;  %v6657_v24 = vor.u32 %v7851_v27, %v6656_v9  ;;  %v6536_v43 = vld [vmem:[%s12057_s3 + $0x590] sm:$0xf]  ;;  %v6320_v10 = vld [vmem:[%s12057_s3 + $0x3d8] sm:$0xf] }
 0x172   :  { %3522 = vmatpush.bf16.msra.mxu2 %v6469_v41  ;;  %v6624_v41 = vld [vmem:[%s12057_s3 + $0x648] sm:$0xf]  ;;  %v7720_v35 = vld [vmem:[%s12057_s3 + $0x294] sm:$0xf]  ;;  %v7765_v21 = vld [vmem:[%s12057_s3 + $0x3f4] sm:$0xf0] }
 0x173   :  { %v6625_v39 = vor.u32 %v7843_v37, %v6624_v41  ;;  %v6288_v41 = vld [vmem:[%s12057_s3 + $0x398] sm:$0xf] }
 0x174   :  { %3549 = vmatpush.bf16.msrb.mxu0 %v5929_v63  ;;  %3481 = vmatpush.bf16.msrb.mxu3 %v6785_v16  ;;  %v7783_v63 = vld [vmem:[%s12057_s3 + $0x48c] sm:$0xf]  ;;  %v7820_v16 = vld [vmem:[%s12057_s3 + $0x5ac] sm:$0xf0] }
 0x175   :  { %3562 = vmatpush.bf16.msrb.mxu1 %v6185_v22  ;;  %v6029_v22 = vor.u32 %v7688_v44, %v6026_v46  ;;  %v6405_v54 = vor.u32 %v7783_v63, %v6402_v31  ;;  %v6537_v36 = vor.u32 %v7820_v16, %v6536_v43  ;;  %v7835_v44 = vld [vmem:[%s12057_s3 + $0x624] sm:$0xf0]  ;;  %v5901_v46 = vor.u32 %v7656_v30, %v5898_v32  ;;  %v6818_v63 = vld [vmem:[%s12057_s3 + $0x7e8] sm:$0xf0]  ;;  %v7648_v31 = vld [vmem:[%s12057_s3 + $0x54] sm:$0xf] }
 0x176   :  { %3523 = vmatpush.bf16.msra.mxu2 %v6437_v47  ;;  %v7887_v47 = vld [vmem:[%s12057_s3 + $0x7cc] sm:$0xf]  ;;  %v6408_v43 = vld [vmem:[%s12057_s3 + $0x490] sm:$0xf] }
 0x177   :  { %v7788_v16 = vld [vmem:[%s12057_s3 + $0x4ac] sm:$0xf0]  ;;  %v7863_v30 = vld [vmem:[%s12057_s3 + $0x70c] sm:$0xf] }
 0x178   :  { %3550 = vmatpush.bf16.msrb.mxu0 %v5897_v57  ;;  %v6250_v57 = vld [vmem:[%s12057_s3 + $0x370] sm:$0xf0]  ;;  %3482 = vmatpush.bf16.msrb.mxu3 %v6753_v45  ;;  %v6722_v32 = vld [vmem:[%s12057_s3 + $0x728] sm:$0xf0] }
 0x179   :  { %3563 = vmatpush.bf16.msrb.mxu1 %v6153_v59  ;;  %v7775_v59 = vld [vmem:[%s12057_s3 + $0x44c] sm:$0xf]  ;;  %v6253_v3 = vor.u32 %v7744_v56, %v6250_v57  ;;  %v6821_v57 = vor.u32 %v7887_v47, %v6818_v63  ;;  %v6725_v47 = vor.u32 %v7863_v30, %v6722_v32  ;;  %v7808_v30 = vld [vmem:[%s12057_s3 + $0x554] sm:$0xf] }
 0x17a   :  { %3524 = vmatpush.bf16.msra.mxu2 %v6405_v54  ;;  %v6373_v6 = vor.u32 %v7775_v59, %v6370_v1  ;;  %v6505_v54 = vor.u32 %v7812_v49, %v6504_v48  ;;  %v7879_v56 = vld [vmem:[%s12057_s3 + $0x78c] sm:$0xf]  ;;  %v6472_v1 = vld [vmem:[%s12057_s3 + $0x510] sm:$0xf]  ;;  %v6506_v32 = vld [vmem:[%s12057_s3 + $0x570] sm:$0xf0] }
 0x17b   :  { %v6786_v59 = vld [vmem:[%s12057_s3 + $0x7a8] sm:$0xf0]  ;;  %v6376_v48 = vld [vmem:[%s12057_s3 + $0x450] sm:$0xf] }
 0x17c   :  { %3551 = vmatpush.bf16.msrb.mxu0 %v5865_v12  ;;  %3483 = vmatpush.bf16.msrb.mxu3 %v6721_v55  ;;  %v6568_v12 = vld [vmem:[%s12057_s3 + $0x5d0] sm:$0xf]  ;;  %v6789_v27 = vor.u32 %v7879_v56, %v6786_v59  ;;  %v7855_v63 = vld [vmem:[%s12057_s3 + $0x6cc] sm:$0xf] }
 0x17d   :  { %3564 = vmatpush.bf16.msrb.mxu1 %v6121_v34  ;;  %v5930_v34 = vld [vmem:[%s12057_s3 + $0xf0] sm:$0xf0]  ;;  %v6569_v40 = vor.u32 %v7828_v13, %v6568_v12  ;;  %v6440_v13 = vld [vmem:[%s12057_s3 + $0x4d0] sm:$0xf] }
 0x17e   :  { %3525 = vmatpush.bf16.msra.mxu2 %v6373_v6  ;;  %v5933_v28 = vor.u32 %v7664_v15, %v5930_v34  ;;  %v6090_v6 = vld [vmem:[%s12057_s3 + $0x230] sm:$0xf0]  ;;  %v6065_v34 = vor.u32 %v7701_v8, %v6064_v7  ;;  %v7780_v49 = vld [vmem:[%s12057_s3 + $0x46c] sm:$0xf0]  ;;  %v6192_v8 = vld [vmem:[%s12057_s3 + $0x2d8] sm:$0xf] }
 0x17f   :  { %3436 = vmatmul.bf16.vlgmr.msra.gmra.mxu3 %v10321_v23  ;;  %v6093_v15 = vor.u32 %v7704_v4, %v6090_v6  ;;  %v7772_v59 = vld [vmem:[%s12057_s3 + $0x42c] sm:$0xf0]  ;;  %v5936_v4 = vld [vmem:[%s12057_s3 + $0xd8] sm:$0xf] }
 0x180   :  { %3552 = vmatpush.bf16.msrb.mxu0 %v5833_v29  ;;  %v3346_v20 = vpop.f32.mrf.mxu0  ;;  %3484 = vmatpush.bf16.msrb.mxu3 %v6689_v62  ;;  %v6189_v29 = vor.u32 %v7728_v25, %v6186_v26  ;;  %v6321_v25 = vor.u32 %v7765_v21, %v6320_v10  ;;  %v6032_v26 = vld [vmem:[%s12057_s3 + $0x198] sm:$0xf] }
 0x181   :  { %3565 = vmatpush.bf16.msrb.mxu1 %v6089_v58  ;;  %v6154_v58 = vld [vmem:[%s12057_s3 + $0x2b0] sm:$0xf0] }
 0x182   :  { %3526 = vmatpush.bf16.msra.mxu2 %v6341_v61  ;;  %v6157_v45 = vor.u32 %v7720_v35, %v6154_v58  ;;  %v6754_v61 = vld [vmem:[%s12057_s3 + $0x768] sm:$0xf0]  ;;  %v6000_v58 = vld [vmem:[%s12057_s3 + $0x158] sm:$0xf] }
 0x183   :  { %3553 = vmatmul.bf16.vlgmr.msrb.gmra.mxu0 %v9679_v33 }
 0x184   :  { %3597 = vmatpush.bf16.msra.mxu0 %v6061_v38  ;;  %3566 = vmatmul.bf16.vlgmr.msrb.gmra.mxu1 %v9744_v11  ;;  %v10480_v38 = vld [vmem:[%s12059_s4] sm:$0xff]  ;;  %v3359_v62 = vpop.f32.mrf.mxu1 }
 0x185   :  { %3610 = vmatpush.bf16.msra.mxu1 %v6317_v42  ;;  %3485 = vmatpush.bf16.msrb.mxu3 %v6657_v24  ;;  %v6592_v42 = vld [vmem:[%s12057_s3 + $0x608] sm:$0xf]  ;;  %v2041_v52 = vperm.slane %v10480_v38, 0  ;;  %v7693_v24 = vld [vmem:[%s12057_s3 + $0x1b4] sm:$0xf0] }
 0x186   :  { %3571 = vmatpush.bf16.msrb.mxu2 %v6569_v40  ;;  %v6593_v19 = vor.u32 %v7835_v44, %v6592_v42  ;;  %v6409_v42 = vor.u32 %v7788_v16, %v6408_v43  ;;  %v6256_v44 = vld [vmem:[%s12057_s3 + $0x358] sm:$0xf]  ;;  %v6594_v43 = vld [vmem:[%s12057_s3 + $0x628] sm:$0xf0] }
 0x187   :  { %3527 = vmatmul.bf16.vlgmr.msra.gmra.mxu2 %v10102_v17  ;;  %v3347_v5 = vadd.f32 %v3346_v20, %v2041_v52  ;;  %v7871_v20 = vld [vmem:[%s12057_s3 + $0x74c] sm:$0xf]  ;;  %v5968_v52 = vld [vmem:[%s12057_s3 + $0x118] sm:$0xf] }
 0x188   :  { %3598 = vmatpush.bf16.msra.mxu0 %v6029_v22  ;;  %v5866_v22 = vld [vmem:[%s12057_s3 + $0x70] sm:$0xf0]  ;;  %v3348_v50 = vpop.f32.mrf.mxu0  ;;  %v6757_v37 = vor.u32 %v7871_v20, %v6754_v61 }
 0x189   :  { %3611 = vmatpush.bf16.msra.mxu1 %v6285_v18  ;;  %v7712_v18 = vld [vmem:[%s12057_s3 + $0x254] sm:$0xf]  ;;  %3486 = vmatpush.bf16.msrb.mxu3 %v6625_v39  ;;  %v5869_v55 = vor.u32 %v7648_v31, %v5866_v22  ;;  %v7685_v39 = vld [vmem:[%s12057_s3 + $0x174] sm:$0xf0]  ;;  %v6690_v31 = vld [vmem:[%s12057_s3 + $0x6e8] sm:$0xf0] }
 0x18a   :  { %3572 = vmatpush.bf16.msrb.mxu2 %v6537_v36  ;;  %v6125_v51 = vor.u32 %v7712_v18, %v6122_v53  ;;  %v7677_v50 = vld [vmem:[%s12057_s3 + $0x134] sm:$0xf0]  ;;  %v2042_v18 = vperm.slane %v10480_v38, 1  ;;  %v6377_v53 = vor.u32 %v7780_v49, %v6376_v48  ;;  %v6693_v56 = vor.u32 %v7855_v63, %v6690_v31 }
 0x18b   :  { %v6509_v49 = vor.u32 %v7808_v30, %v6506_v32  ;;  %v6696_v32 = vld [vmem:[%s12057_s3 + $0x6d0] sm:$0xf] }
 0x18c   :  { %3599 = vmatpush.bf16.msra.mxu0 %v5997_v60  ;;  %v7804_v60 = vld [vmem:[%s12057_s3 + $0x52c] sm:$0xf0]  ;;  %v3361_v36 = vpop.f32.mrf.mxu1 }
 0x18d   :  { %3612 = vmatpush.bf16.msra.mxu1 %v6253_v3  ;;  %v5834_v3 = vld [vmem:[%s12057_s3 + $0x30] sm:$0xf0]  ;;  %3487 = vmatpush.bf16.msrb.mxu3 %v6593_v19  ;;  %v6473_v9 = vor.u32 %v7804_v60, %v6472_v1  ;;  %v6224_v19 = vld [vmem:[%s12057_s3 + $0x318] sm:$0xf]  ;;  %v5969_v1 = vor.u32 %v7677_v50, %v5968_v52  ;;  %v6658_v60 = vld [vmem:[%s12057_s3 + $0x6a8] sm:$0xf0] }
 0x18e   :  { %3573 = vmatpush.bf16.msrb.mxu2 %v6505_v54  ;;  %v5837_v12 = vor.u32 %v7640_v2, %v5834_v3  ;;  %v7741_v54 = vld [vmem:[%s12057_s3 + $0x334] sm:$0xf0]  ;;  %v6570_v2 = vld [vmem:[%s12057_s3 + $0x5f0] sm:$0xf0] }
 0x18f   :  { %v6225_v3 = vor.u32 %v7741_v54, %v6224_v19  ;;  %v7653_v36 = vld [vmem:[%s12057_s3 + $0x74] sm:$0xf0]  ;;  %v7800_v52 = vld [vmem:[%s12057_s3 + $0x514] sm:$0xf] }
 0x190   :  { %3600 = vmatpush.bf16.msra.mxu0 %v5965_v0  ;;  %v10550_v0 = vadd.f32 %v3359_v62, %v3347_v5  ;;  %3488 = vmatmul.bf16.vlgmr.msrb.gmra.mxu3 %v10321_v23  ;;  %v7669_v5 = vld [vmem:[%s12057_s3 + $0xf4] sm:$0xf0]  ;;  %v6474_v50 = vld [vmem:[%s12057_s3 + $0x530] sm:$0xf0] }
 0x191   :  { %3613 = vmatpush.bf16.msra.mxu1 %v6221_v14  ;;  %3532 = vmatpush.bf16.msra.mxu3 %v6821_v57  ;;  %v7796_v14 = vld [vmem:[%s12057_s3 + $0x4ec] sm:$0xf0]  ;;  %v7847_v57 = vld [vmem:[%s12057_s3 + $0x68c] sm:$0xf]  ;;  %v7733_v62 = vld [vmem:[%s12057_s3 + $0x2f4] sm:$0xf0] }
 0x192   :  { %3574 = vmatpush.bf16.msrb.mxu2 %v6473_v9  ;;  %v6441_v40 = vor.u32 %v7796_v14, %v6440_v13  ;;  %v6661_v21 = vor.u32 %v7847_v57, %v6658_v60  ;;  %v5937_v13 = vor.u32 %v7669_v5, %v5936_v4  ;;  %v6626_v14 = vld [vmem:[%s12057_s3 + $0x668] sm:$0xf0]  ;;  %v6193_v61 = vor.u32 %v7733_v62, %v6192_v8  ;;  %v7645_v19 = vld [vmem:[%s12057_s3 + $0x34] sm:$0xf0]  ;;  %v7697_v57 = vld [vmem:[%s12057_s3 + $0x1dc] sm:$0xf] }
 0x193   :  { %v6096_v54 = vld [vmem:[%s12057_s3 + $0x218] sm:$0xf]  ;;  %v6322_v60 = vld [vmem:[%s12057_s3 + $0x3f8] sm:$0xf0]  ;;  %v6442_v4 = vld [vmem:[%s12057_s3 + $0x4f0] sm:$0xf0] }
 0x194   :  { %3601 = vmatpush.bf16.msra.mxu0 %v5933_v28  ;;  %v7757_v28 = vld [vmem:[%s12057_s3 + $0x3b4] sm:$0xf0]  ;;  %v7876_v8 = vld [vmem:[%s12057_s3 + $0x76c] sm:$0xf0] }
 0x195   :  { %3614 = vmatpush.bf16.msra.mxu1 %v6189_v29  ;;  %3533 = vmatpush.bf16.msra.mxu3 %v6789_v27  ;;  %v6033_v29 = vor.u32 %v7693_v24, %v6032_v26  ;;  %v6289_v35 = vor.u32 %v7757_v28, %v6288_v41  ;;  %v7661_v26 = vld [vmem:[%s12057_s3 + $0xb4] sm:$0xf0] }
 0x196   :  { %3575 = vmatpush.bf16.msrb.mxu2 %v6441_v40  ;;  %v6160_v24 = vld [vmem:[%s12057_s3 + $0x298] sm:$0xf] }
 0x197   :  { %v7725_v40 = vld [vmem:[%s12057_s3 + $0x2b4] sm:$0xf0] }
 0x198   :  { %3602 = vmatpush.bf16.msra.mxu0 %v5901_v46  ;;  %v7749_v46 = vld [vmem:[%s12057_s3 + $0x374] sm:$0xf0] }
 0x199   :  { %3615 = vmatpush.bf16.msra.mxu1 %v6157_v45  ;;  %3534 = vmatpush.bf16.msra.mxu3 %v6757_v37  ;;  %v6001_v45 = vor.u32 %v7685_v39, %v6000_v58  ;;  %v6257_v22 = vor.u32 %v7749_v46, %v6256_v44  ;;  %v7831_v37 = vld [vmem:[%s12057_s3 + $0x60c] sm:$0xf]  ;;  %v7892_v58 = vld [vmem:[%s12057_s3 + $0x7ec] sm:$0xf0]  ;;  %v5872_v39 = vld [vmem:[%s12057_s3 + $0x58] sm:$0xf] }
 0x19a   :  { %3576 = vmatpush.bf16.msrb.mxu2 %v6409_v42  ;;  %v6128_v44 = vld [vmem:[%s12057_s3 + $0x258] sm:$0xf]  ;;  %v6597_v48 = vor.u32 %v7831_v37, %v6594_v43  ;;  %v5873_v31 = vor.u32 %v7653_v36, %v5872_v39  ;;  %v6258_v37 = vld [vmem:[%s12057_s3 + $0x378] sm:$0xf0] }
 0x19b   :  { %v7717_v46 = vld [vmem:[%s12057_s3 + $0x274] sm:$0xf0]  ;;  %v7673_v39 = vld [vmem:[%s12057_s3 + $0x11c] sm:$0xf] }
 0x19c   :  { %3603 = vmatpush.bf16.msra.mxu0 %v5869_v55  ;;  %v6344_v55 = vld [vmem:[%s12057_s3 + $0x410] sm:$0xf]  ;;  %v5970_v36 = vld [vmem:[%s12057_s3 + $0x138] sm:$0xf0] }
 0x19d   :  { %3616 = vmatpush.bf16.msra.mxu1 %v6125_v51  ;;  %3535 = vmatpush.bf16.msra.mxu3 %v6725_v47  ;;  %v7824_v51 = vld [vmem:[%s12057_s3 + $0x5d4] sm:$0xf]  ;;  %v6345_v7 = vor.u32 %v7772_v59, %v6344_v55  ;;  %v6066_v55 = vld [vmem:[%s12057_s3 + $0x1f8] sm:$0xf0]  ;;  %v6477_v59 = vor.u32 %v7800_v52, %v6474_v50  ;;  %v6576_v52 = vld [vmem:[%s12057_s3 + $0x5d8] sm:$0xf] }
 0x19e   :  { %3577 = vmatpush.bf16.msrb.mxu2 %v6377_v53  ;;  %v6573_v27 = vor.u32 %v7824_v51, %v6570_v2  ;;  %v5840_v53 = vld [vmem:[%s12057_s3 + $0x18] sm:$0xf] }
 0x19f   :  { %v5841_v2 = vor.u32 %v7645_v19, %v5840_v53  ;;  %v7829_v50 = vld [vmem:[%s12057_s3 + $0x5f4] sm:$0xf0]  ;;  %v7665_v53 = vld [vmem:[%s12057_s3 + $0xdc] sm:$0xf] }
 0x1a0   :  { %3604 = vmatpush.bf16.msra.mxu0 %v5837_v12  ;;  %v3398_v6 = vpop.f32.mrf.mxu0  ;;  %v7839_v12 = vld [vmem:[%s12057_s3 + $0x64c] sm:$0xf]  ;;  %v5938_v19 = vld [vmem:[%s12057_s3 + $0xf8] sm:$0xf0] }
 0x1a1   :  { %3617 = vmatpush.bf16.msra.mxu1 %v6093_v15  ;;  %v3399_v9 = vadd.f32 %v3398_v6, %v2042_v18  ;;  %3536 = vmatpush.bf16.msra.mxu3 %v6693_v56  ;;  %v3411_v10 = vpop.f32.mrf.mxu1  ;;  %v7816_v15 = vld [vmem:[%s12057_s3 + $0x594] sm:$0xf]  ;;  %v6629_v41 = vor.u32 %v7839_v12, %v6626_v14  ;;  %v6129_v18 = vor.u32 %v7717_v46, %v6128_v44  ;;  %v7709_v56 = vld [vmem:[%s12057_s3 + $0x234] sm:$0xf0]  ;;  %v6290_v12 = vld [vmem:[%s12057_s3 + $0x3b8] sm:$0xf0] }
 0x1a2   :  { %3578 = vmatpush.bf16.msrb.mxu2 %v6345_v7  ;;  %v6097_v5 = vor.u32 %v7709_v56, %v6096_v54  ;;  %v6069_v6 = vor.u32 %v7697_v57, %v6066_v55  ;;  %v6760_v7 = vld [vmem:[%s12057_s3 + $0x750] sm:$0xf]  ;;  %v7784_v14 = vld [vmem:[%s12057_s3 + $0x494] sm:$0xf]  ;;  %v7737_v46 = vld [vmem:[%s12057_s3 + $0x31c] sm:$0xf] }
 0x1a3   :  { %3605 = vmatmul.bf16.vlgmr.msra.gmra.mxu0 %v9679_v33  ;;  %v10670_v20 = vadd.f32 %v3411_v10, %v3399_v9  ;;  %v7689_v9 = vld [vmem:[%s12057_s3 + $0x19c] sm:$0xf] }
 0x1a4   :  { %3649 = vmatpush.bf16.msrb.mxu0 %v6065_v34  ;;  %3618 = vmatmul.bf16.vlgmr.msra.gmra.mxu1 %v9744_v11  ;;  %v6538_v34 = vld [vmem:[%s12057_s3 + $0x5b0] sm:$0xf0]  ;;  %v6034_v10 = vld [vmem:[%s12057_s3 + $0x1b8] sm:$0xf0] }
 0x1a5   :  { %3662 = vmatpush.bf16.msrb.mxu1 %v6321_v25  ;;  %v5904_v25 = vld [vmem:[%s12057_s3 + $0x98] sm:$0xf]  ;;  %3537 = vmatpush.bf16.msra.mxu3 %v6661_v21  ;;  %v6541_v28 = vor.u32 %v7816_v15, %v6538_v34  ;;  %v6410_v15 = vld [vmem:[%s12057_s3 + $0x4b0] sm:$0xf0]  ;;  %v6037_v34 = vor.u32 %v7689_v9, %v6034_v10  ;;  %v7729_v57 = vld [vmem:[%s12057_s3 + $0x2dc] sm:$0xf] }
 0x1a6   :  { %3623 = vmatpush.bf16.msra.mxu2 %v6573_v27  ;;  %v5905_v16 = vor.u32 %v7661_v26, %v5904_v25  ;;  %v7753_v27 = vld [vmem:[%s12057_s3 + $0x39c] sm:$0xf]  ;;  %v7868_v25 = vld [vmem:[%s12057_s3 + $0x72c] sm:$0xf0] }
 0x1a7   :  { %3579 = vmatmul.bf16.vlgmr.msrb.gmra.mxu2 %v10102_v17  ;;  %v6293_v26 = vor.u32 %v7753_v27, %v6290_v12  ;;  %v6194_v55 = vld [vmem:[%s12057_s3 + $0x2f8] sm:$0xf0] }
 0x1a8   :  { %3650 = vmatpush.bf16.msrb.mxu0 %v6033_v29  ;;  %v6824_v29 = vld [vmem:[%s12057_s3 + $0x7d0] sm:$0xf]  ;;  %v3400_v42 = vpop.f32.mrf.mxu0  ;;  %v5906_v9 = vld [vmem:[%s12057_s3 + $0xb8] sm:$0xf0] }
 0x1a9   :  { %3663 = vmatpush.bf16.msrb.mxu1 %v6289_v35  ;;  %v6161_v35 = vor.u32 %v7725_v40, %v6160_v24  ;;  %3538 = vmatpush.bf16.msra.mxu3 %v6629_v41  ;;  %v3413_v47 = vpop.f32.mrf.mxu1  ;;  %v6825_v63 = vor.u32 %v7892_v58, %v6824_v29  ;;  %v7681_v24 = vld [vmem:[%s12057_s3 + $0x15c] sm:$0xf]  ;;  %v6413_v41 = vor.u32 %v7784_v14, %v6410_v15  ;;  %v6378_v29 = vld [vmem:[%s12057_s3 + $0x470] sm:$0xf0]  ;;  %v2043_v42 = vperm.slane %v10480_v38, 2 }
 0x1aa   :  { %3624 = vmatpush.bf16.msra.mxu2 %v6541_v28  ;;  %v6002_v40 = vld [vmem:[%s12057_s3 + $0x178] sm:$0xf0]  ;;  %v7836_v14 = vld [vmem:[%s12057_s3 + $0x62c] sm:$0xf0] }
 0x1ab   :  { %v7745_v28 = vld [vmem:[%s12057_s3 + $0x35c] sm:$0xf]  ;;  %v6005_v30 = vor.u32 %v7681_v24, %v6002_v40  ;;  %v6826_v24 = vld [vmem:[%s12057_s3 + $0x7f0] sm:$0xf0] }
 0x1ac   :  { %3651 = vmatpush.bf16.msrb.mxu0 %v6001_v45  ;;  %v6792_v45 = vld [vmem:[%s12057_s3 + $0x790] sm:$0xf]  ;;  %v6261_v58 = vor.u32 %v7745_v28, %v6258_v37  ;;  %v6226_v47 = vld [vmem:[%s12057_s3 + $0x338] sm:$0xf0] }
 0x1ad   :  { %3664 = vmatpush.bf16.msrb.mxu1 %v6257_v22  ;;  %v7884_v22 = vld [vmem:[%s12057_s3 + $0x7ac] sm:$0xf0]  ;;  %3539 = vmatpush.bf16.msra.mxu3 %v6597_v48  ;;  %v7721_v10 = vld [vmem:[%s12057_s3 + $0x29c] sm:$0xf] }
 0x1ae   :  { %3625 = vmatpush.bf16.msra.mxu2 %v6509_v49  ;;  %v6793_v51 = vor.u32 %v7884_v22, %v6792_v45  ;;  %v6664_v49 = vld [vmem:[%s12057_s3 + $0x690] sm:$0xf]  ;;  %v7768_v45 = vld [vmem:[%s12057_s3 + $0x414] sm:$0xf]  ;;  %v7649_v40 = vld [vmem:[%s12057_s3 + $0x5c] sm:$0xf] }
 0x1af   :  { %v7852_v22 = vld [vmem:[%s12057_s3 + $0x6ac] sm:$0xf0]  ;;  %v7713_v37 = vld [vmem:[%s12057_s3 + $0x25c] sm:$0xf] }
 0x1b0   :  { %3652 = vmatpush.bf16.msrb.mxu0 %v5969_v1  ;;  %v7761_v1 = vld [vmem:[%s12057_s3 + $0x3dc] sm:$0xf]  ;;  %3540 = vmatmul.bf16.vlgmr.msra.gmra.mxu3 %v10321_v23 }
 0x1b1   :  { %3665 = vmatpush.bf16.msrb.mxu1 %v6225_v3  ;;  %3584 = vmatpush.bf16.msrb.mxu3 %v6825_v63  ;;  %v7792_v3 = vld [vmem:[%s12057_s3 + $0x4d4] sm:$0xf]  ;;  %v6325_v62 = vor.u32 %v7761_v1, %v6322_v60  ;;  %v6665_v60 = vor.u32 %v7852_v22, %v6664_v49  ;;  %v6098_v49 = vld [vmem:[%s12057_s3 + $0x238] sm:$0xf0] }
 0x1b2   :  { %3626 = vmatpush.bf16.msra.mxu2 %v6477_v59  ;;  %v6445_v21 = vor.u32 %v7792_v3, %v6442_v4  ;;  %v6346_v63 = vld [vmem:[%s12057_s3 + $0x430] sm:$0xf0]  ;;  %v5941_v3 = vor.u32 %v7665_v53, %v5938_v19  ;;  %v7844_v4 = vld [vmem:[%s12057_s3 + $0x66c] sm:$0xf0] }
 0x1b3   :  { %v6349_v56 = vor.u32 %v7768_v45, %v6346_v63  ;;  %v6896_v45 = vld [vmem:[%s12060_s5 + $0x70] sm:$0xf]  ;;  %v7909_v63 = vld [vmem:[%s12060_s5 + $0x74] sm:$0xf0]  ;;  %v7872_v19 = vld [vmem:[%s12057_s3 + $0x754] sm:$0xf] }
 0x1b4   :  { %3653 = vmatpush.bf16.msrb.mxu0 %v5937_v13  ;;  %v6761_v13 = vor.u32 %v7876_v8, %v6760_v7  ;;  %v6197_v8 = vor.u32 %v7729_v57, %v6194_v55  ;;  %v6960_v57 = vld [vmem:[%s12060_s5 + $0xf0] sm:$0xf]  ;;  %v6888_v55 = vld [vmem:[%s12060_s5 + $0x60] sm:$0xf] }
 0x1b5   :  { %3666 = vmatpush.bf16.msrb.mxu1 %v6193_v61  ;;  %3585 = vmatpush.bf16.msrb.mxu3 %v6793_v51  ;;  %v6728_v61 = vld [vmem:[%s12057_s3 + $0x710] sm:$0xf]  ;;  %v6577_v51 = vor.u32 %v7829_v50, %v6576_v52  ;;  %v6448_v50 = vld [vmem:[%s12057_s3 + $0x4d8] sm:$0xf] }
 0x1b6   :  { %3627 = vmatpush.bf16.msra.mxu2 %v6445_v21  ;;  %v6729_v43 = vor.u32 %v7868_v25, %v6728_v61  ;;  %v6162_v21 = vld [vmem:[%s12057_s3 + $0x2b8] sm:$0xf0]  ;;  %v6512_v61 = vld [vmem:[%s12057_s3 + $0x558] sm:$0xf] }
 0x1b7   :  { %v7813_v25 = vld [vmem:[%s12057_s3 + $0x574] sm:$0xf0] }
 0x1b8   :  { %3654 = vmatpush.bf16.msrb.mxu0 %v5905_v16  ;;  %v7776_v16 = vld [vmem:[%s12057_s3 + $0x454] sm:$0xf] }
 0x1b9   :  { %3667 = vmatpush.bf16.msrb.mxu1 %v6161_v35  ;;  %3586 = vmatpush.bf16.msrb.mxu3 %v6761_v13  ;;  %v7860_v35 = vld [vmem:[%s12057_s3 + $0x6ec] sm:$0xf0]  ;;  %v6381_v44 = vor.u32 %v7776_v16, %v6378_v29 }
 0x1ba   :  { %3628 = vmatpush.bf16.msra.mxu2 %v6413_v41  ;;  %v6697_v48 = vor.u32 %v7860_v35, %v6696_v32  ;;  %v6600_v13 = vld [vmem:[%s12057_s3 + $0x610] sm:$0xf]  ;;  %v5874_v41 = vld [vmem:[%s12057_s3 + $0x78] sm:$0xf0]  ;;  %v7880_v32 = vld [vmem:[%s12057_s3 + $0x794] sm:$0xf] }
 0x1bb   :  { %v6601_v29 = vor.u32 %v7836_v14, %v6600_v13  ;;  %v6384_v14 = vld [vmem:[%s12057_s3 + $0x458] sm:$0xf] }
 0x1bc   :  { %3655 = vmatpush.bf16.msrb.mxu0 %v5873_v31  ;;  %v5973_v31 = vor.u32 %v7673_v39, %v5970_v36  ;;  %v6794_v39 = vld [vmem:[%s12057_s3 + $0x7b0] sm:$0xf0]  ;;  %v6480_v36 = vld [vmem:[%s12057_s3 + $0x518] sm:$0xf] }
 0x1bd   :  { %3668 = vmatpush.bf16.msrb.mxu1 %v6129_v18  ;;  %3587 = vmatpush.bf16.msrb.mxu3 %v6729_v43  ;;  %v6229_v18 = vor.u32 %v7737_v46, %v6226_v47  ;;  %v6130_v43 = vld [vmem:[%s12057_s3 + $0x278] sm:$0xf0]  ;;  %v6797_v22 = vor.u32 %v7880_v32, %v6794_v39 }
 0x1be   :  { %3629 = vmatpush.bf16.msra.mxu2 %v6381_v44  ;;  %v6133_v44 = vor.u32 %v7713_v37, %v6130_v43  ;;  %v7641_v46 = vld [vmem:[%s12057_s3 + $0x1c] sm:$0xf]  ;;  %v7848_v43 = vld [vmem:[%s12057_s3 + $0x694] sm:$0xf] }
 0x1bf   :  { %v5842_v47 = vld [vmem:[%s12057_s3 + $0x38] sm:$0xf0] }
 0x1c0   :  { %3656 = vmatpush.bf16.msrb.mxu0 %v5841_v2  ;;  %v3450_v54 = vpop.f32.mrf.mxu0  ;;  %v6632_v2 = vld [vmem:[%s12057_s3 + $0x650] sm:$0xf]  ;;  %v5845_v52 = vor.u32 %v7641_v46, %v5842_v47  ;;  %v6578_v39 = vld [vmem:[%s12057_s3 + $0x5f8] sm:$0xf0]  ;;  %v6936_v46 = vld [vmem:[%s12060_s5 + $0xc0] sm:$0xf] }
 0x1c1   :  { %3669 = vmatpush.bf16.msrb.mxu1 %v6097_v5  ;;  %v3451_v59 = vadd.f32 %v3450_v54, %v2043_v42  ;;  %v3463_v1 = vpop.f32.mrf.mxu1  ;;  %3588 = vmatpush.bf16.msrb.mxu3 %v6697_v48  ;;  %v6544_v5 = vld [vmem:[%s12057_s3 + $0x598] sm:$0xf]  ;;  %v6633_v27 = vor.u32 %v7844_v4, %v6632_v2  ;;  %v7705_v48 = vld [vmem:[%s12057_s3 + $0x21c] sm:$0xf]  ;;  %v6762_v54 = vld [vmem:[%s12057_s3 + $0x770] sm:$0xf0] }
 0x1c2   :  { %3630 = vmatpush.bf16.msra.mxu2 %v6349_v56  ;;  %v7805_v42 = vld [vmem:[%s12057_s3 + $0x534] sm:$0xf0]  ;;  %v6101_v53 = vor.u32 %v7705_v48, %v6098_v49  ;;  %v6897_v56 = vor.u32 %v7909_v63, %v6896_v45  ;;  %v6765_v2 = vor.u32 %v7872_v19, %v6762_v54  ;;  %v7919_v49 = vld [vmem:[%s12060_s5 + $0xc4] sm:$0xf0]  ;;  %v6546_v19 = vld [vmem:[%s12057_s3 + $0x5b8] sm:$0xf0] }
 0x1c3   :  { %3657 = vmatmul.bf16.vlgmr.msrb.gmra.mxu0 %v9679_v33  ;;  %v10869_v7 = vadd.f32 %v3463_v1, %v3451_v59  ;;  %v7907_v59 = vld [vmem:[%s12060_s5 + $0x64] sm:$0xf0]  ;;  %v7925_v1 = vld [vmem:[%s12060_s5 + $0xf4] sm:$0xf0] }
 0x1c4   :  { %3701 = vmatpush.bf16.msra.mxu0 %v6069_v6  ;;  %3670 = vmatmul.bf16.vlgmr.msrb.gmra.mxu1 %v9744_v11  ;;  %v7821_v6 = vld [vmem:[%s12057_s3 + $0x5b4] sm:$0xf0] }
 0x1c5   :  { %3714 = vmatpush.bf16.msra.mxu1 %v6325_v62  ;;  %v7657_v62 = vld [vmem:[%s12057_s3 + $0x9c] sm:$0xf]  ;;  %3589 = vmatpush.bf16.msrb.mxu3 %v6665_v60  ;;  %v6545_v12 = vor.u32 %v7821_v6, %v6544_v5  ;;  %v7789_v4 = vld [vmem:[%s12057_s3 + $0x4b4] sm:$0xf0]  ;;  %v7864_v6 = vld [vmem:[%s12057_s3 + $0x714] sm:$0xf] }
 0x1c6   :  { %3675 = vmatpush.bf16.msrb.mxu2 %v6577_v51  ;;  %v5909_v15 = vor.u32 %v7657_v62, %v5906_v9  ;;  %v6961_v51 = vor.u32 %v7925_v1, %v6960_v57  ;;  %v6889_v62 = vor.u32 %v7907_v59, %v6888_v55  ;;  %v6880_v9 = vld [vmem:[%s12060_s5 + $0x50] sm:$0xf]  ;;  %v7899_v55 = vld [vmem:[%s12060_s5 + $0x24] sm:$0xf0]  ;;  %v7917_v1 = vld [vmem:[%s12060_s5 + $0xb4] sm:$0xf0] }
 0x1c7   :  { %3631 = vmatmul.bf16.vlgmr.msra.gmra.mxu2 %v10102_v17  ;;  %v6928_v59 = vld [vmem:[%s12060_s5 + $0xb0] sm:$0xf] }
 0x1c8   :  { %3702 = vmatpush.bf16.msra.mxu0 %v6037_v34  ;;  %v7888_v34 = vld [vmem:[%s12057_s3 + $0x7d4] sm:$0xf]  ;;  %v3452_v28 = vpop.f32.mrf.mxu0  ;;  %v10975_v5 = vpop.f32.mrf.mxu2 }
 0x1c9   :  { %3715 = vmatpush.bf16.msra.mxu1 %v6293_v26  ;;  %v6165_v26 = vor.u32 %v7721_v10, %v6162_v21  ;;  %v3465_v16 = vpop.f32.mrf.mxu1  ;;  %3590 = vmatpush.bf16.msrb.mxu3 %v6633_v27  ;;  %v6829_v35 = vor.u32 %v7888_v34, %v6826_v24  ;;  %v7905_v10 = vld [vmem:[%s12060_s5 + $0x54] sm:$0xf0]  ;;  %v6952_v21 = vld [vmem:[%s12060_s5 + $0xe0] sm:$0xf]  ;;  %v6944_v24 = vld [vmem:[%s12060_s5 + $0xd0] sm:$0xf] }
 0x1ca   :  { %3676 = vmatpush.bf16.msrb.mxu2 %v6545_v12  ;;  %v7923_v12 = vld [vmem:[%s12060_s5 + $0xe4] sm:$0xf0]  ;;  %v7921_v28 = vld [vmem:[%s12060_s5 + $0xd4] sm:$0xf0] }
 0x1cb   :  { %v6953_v34 = vor.u32 %v7923_v12, %v6952_v21  ;;  %v6352_v16 = vld [vmem:[%s12057_s3 + $0x418] sm:$0xf] }
 0x1cc   :  { %3703 = vmatpush.bf16.msra.mxu0 %v6005_v30  ;;  %v6513_v30 = vor.u32 %v7813_v25, %v6512_v61  ;;  %v6698_v61 = vld [vmem:[%s12057_s3 + $0x6f0] sm:$0xf0]  ;;  %v6872_v25 = vld [vmem:[%s12060_s5 + $0x40] sm:$0xf]  ;;  %v7897_v12 = vld [vmem:[%s12060_s5 + $0x14] sm:$0xf0] }
 0x1cd   :  { %3716 = vmatpush.bf16.msra.mxu1 %v6261_v58  ;;  %v5877_v58 = vor.u32 %v7649_v40, %v5874_v41  ;;  %3591 = vmatpush.bf16.msrb.mxu3 %v6601_v29  ;;  %v2044_v40 = vperm.slane %v10480_v38, 3  ;;  %v7773_v29 = vld [vmem:[%s12057_s3 + $0x434] sm:$0xf0] }
 0x1ce   :  { %3677 = vmatpush.bf16.msrb.mxu2 %v6513_v30  ;;  %v6945_v30 = vor.u32 %v7921_v28, %v6944_v24  ;;  %v6353_v48 = vor.u32 %v7773_v29, %v6352_v16  ;;  %v6912_v16 = vld [vmem:[%s12060_s5 + $0x90] sm:$0xf]  ;;  %v7913_v29 = vld [vmem:[%s12060_s5 + $0x94] sm:$0xf0] }
 0x1d0   :  { %3704 = vmatpush.bf16.msra.mxu0 %v5973_v31  ;;  %v6481_v31 = vor.u32 %v7805_v42, %v6480_v36  ;;  %3592 = vmatmul.bf16.vlgmr.msrb.gmra.mxu3 %v10321_v23  ;;  %v3374_v32 = vpop.f32.mrf.mxu2  ;;  %v6864_v42 = vld [vmem:[%s12060_s5 + $0x30] sm:$0xf] }
 0x1d1   :  { %3717 = vmatpush.bf16.msra.mxu1 %v6229_v18  ;;  %3636 = vmatpush.bf16.msra.mxu3 %v6829_v35  ;;  %v7797_v18 = vld [vmem:[%s12057_s3 + $0x4f4] sm:$0xf0]  ;;  %v6666_v35 = vld [vmem:[%s12057_s3 + $0x6b0] sm:$0xf0] }
 0x1d2   :  { %3678 = vmatpush.bf16.msrb.mxu2 %v6481_v31  ;;  %v6449_v60 = vor.u32 %v7797_v18, %v6448_v50  ;;  %v6669_v31 = vor.u32 %v7848_v43, %v6666_v35  ;;  %v6634_v50 = vld [vmem:[%s12057_s3 + $0x670] sm:$0xf0]  ;;  %v6937_v18 = vor.u32 %v7919_v49, %v6936_v46  ;;  %v7895_v43 = vld [vmem:[%s12060_s5 + $0x4] sm:$0xf0]  ;;  %v7877_v46 = vld [vmem:[%s12057_s3 + $0x774] sm:$0xf0] }
 0x1d4   :  { %3705 = vmatpush.bf16.msra.mxu0 %v5941_v3  ;;  %v6416_v3 = vld [vmem:[%s12057_s3 + $0x498] sm:$0xf] }
 0x1d5   :  { %3718 = vmatpush.bf16.msra.mxu1 %v6197_v8  ;;  %3637 = vmatpush.bf16.msra.mxu3 %v6797_v22  ;;  %v6730_v8 = vld [vmem:[%s12057_s3 + $0x730] sm:$0xf0]  ;;  %v6417_v27 = vor.u32 %v7789_v4, %v6416_v3 }
 0x1d6   :  { %3679 = vmatpush.bf16.msrb.mxu2 %v6449_v60  ;;  %v6733_v13 = vor.u32 %v7864_v6, %v6730_v8  ;;  %v7832_v60 = vld [vmem:[%s12057_s3 + $0x614] sm:$0xf]  ;;  %v6832_v6 = vld [vmem:[%s12057_s3 + $0x7d8] sm:$0xf] }
 0x1d7   :  { %v6602_v4 = vld [vmem:[%s12057_s3 + $0x630] sm:$0xf0]  ;;  %v7893_v8 = vld [vmem:[%s12057_s3 + $0x7f4] sm:$0xf0] }
 0x1d8   :  { %3706 = vmatpush.bf16.msra.mxu0 %v5909_v15  ;;  %v7781_v15 = vld [vmem:[%s12057_s3 + $0x474] sm:$0xf0]  ;;  %v6833_v24 = vor.u32 %v7893_v8, %v6832_v6  ;;  %v3373_v6 = vadd.f32 %v10975_v5, %v10550_v0  ;;  %v7024_v8 = vld [vmem:[%s12060_s5 + $0x170] sm:$0xf] }
 0x1d9   :  { %3719 = vmatpush.bf16.msra.mxu1 %v6165_v26  ;;  %3638 = vmatpush.bf16.msra.mxu3 %v6765_v2  ;;  %v7903_v26 = vld [vmem:[%s12060_s5 + $0x44] sm:$0xf0]  ;;  %v6385_v41 = vor.u32 %v7781_v15, %v6384_v14 }
 0x1da   :  { %3680 = vmatpush.bf16.msrb.mxu2 %v6417_v27  ;;  %v6873_v36 = vor.u32 %v7903_v26, %v6872_v25  ;;  %v6848_v27 = vld [vmem:[%s12060_s5 + $0x10] sm:$0xf]  ;;  %v7915_v14 = vld [vmem:[%s12060_s5 + $0xa4] sm:$0xf0]  ;;  %v6800_v25 = vld [vmem:[%s12057_s3 + $0x798] sm:$0xf] }
 0x1db   :  { %v7885_v26 = vld [vmem:[%s12057_s3 + $0x7b4] sm:$0xf0]  ;;  %v6849_v28 = vor.u32 %v7897_v12, %v6848_v27 }
 0x1dc   :  { %3707 = vmatpush.bf16.msra.mxu0 %v5877_v58  ;;  %v7825_v58 = vld [vmem:[%s12057_s3 + $0x5dc] sm:$0xf] }
 0x1dd   :  { %3720 = vmatpush.bf16.msra.mxu1 %v6133_v44  ;;  %3639 = vmatpush.bf16.msra.mxu3 %v6733_v13  ;;  %v7901_v44 = vld [vmem:[%s12060_s5 + $0x34] sm:$0xf0]  ;;  %v6581_v22 = vor.u32 %v7825_v58, %v6578_v39  ;;  %v6920_v13 = vld [vmem:[%s12060_s5 + $0xa0] sm:$0xf]  ;;  %v6801_v58 = vor.u32 %v7885_v26, %v6800_v25  ;;  %v7939_v25 = vld [vmem:[%s12060_s5 + $0x164] sm:$0xf0] }
 0x1de   :  { %3681 = vmatpush.bf16.msrb.mxu2 %v6385_v41  ;;  %v6865_v54 = vor.u32 %v7901_v44, %v6864_v42  ;;  %v6482_v41 = vld [vmem:[%s12057_s3 + $0x538] sm:$0xf0]  ;;  %v6768_v39 = vld [vmem:[%s12057_s3 + $0x758] sm:$0xf] }
 0x1df   :  { %v6450_v42 = vld [vmem:[%s12057_s3 + $0x4f8] sm:$0xf0] }
 0x1e0   :  { %3708 = vmatpush.bf16.msra.mxu0 %v5845_v52  ;;  %v3502_v47 = vpop.f32.mrf.mxu0  ;;  %v7840_v52 = vld [vmem:[%s12057_s3 + $0x654] sm:$0xf] }
 0x1e1   :  { %3721 = vmatpush.bf16.msra.mxu1 %v6101_v53  ;;  %v3503_v45 = vadd.f32 %v3502_v47, %v2044_v40  ;;  %v3515_v63 = vpop.f32.mrf.mxu1  ;;  %v7817_v53 = vld [vmem:[%s12057_s3 + $0x59c] sm:$0xf]  ;;  %v6637_v2 = vor.u32 %v7840_v52, %v6634_v50  ;;  %v6904_v47 = vld [vmem:[%s12060_s5 + $0x80] sm:$0xf]  ;;  %v6736_v52 = vld [vmem:[%s12057_s3 + $0x718] sm:$0xf] }
 0x1e2   :  { %3682 = vmatpush.bf16.msrb.mxu2 %v6353_v48  ;;  %v6549_v3 = vor.u32 %v7817_v53, %v6546_v19  ;;  %v7801_v40 = vld [vmem:[%s12057_s3 + $0x51c] sm:$0xf]  ;;  %v7911_v48 = vld [vmem:[%s12060_s5 + $0x84] sm:$0xf0]  ;;  %v7869_v50 = vld [vmem:[%s12057_s3 + $0x734] sm:$0xf0] }
 0x1e3   :  { %3709 = vmatmul.bf16.vlgmr.msra.gmra.mxu0 %v9679_v33  ;;  %v7856_v33 = vld [vmem:[%s12057_s3 + $0x6d4] sm:$0xf]  ;;  %v11067_v57 = vadd.f32 %v3515_v63, %v3503_v45  ;;  %v6485_v32 = vor.u32 %v7801_v40, %v6482_v41  ;;  %v6905_v49 = vor.u32 %v7911_v48, %v6904_v47  ;;  %v6769_v63 = vor.u32 %v7877_v46, %v6768_v39  ;;  %v6834_v39 = vld [vmem:[%s12057_s3 + $0x7f8] sm:$0xf0]  ;;  %v7144_v46 = vld [vmem:[%s12060_s5 + $0x260] sm:$0xf] }
 0x1e4   :  { %4543 = vmatpush.bf16.msrb.mxu0 %v6897_v56  ;;  %3722 = vmatmul.bf16.vlgmr.msra.gmra.mxu1 %v9744_v11  ;;  %v6881_v11 = vor.u32 %v7905_v10, %v6880_v9  ;;  %v6701_v37 = vor.u32 %v7856_v33, %v6698_v61  ;;  %v6856_v56 = vld [vmem:[%s12060_s5 + $0x20] sm:$0xf]  ;;  %v7809_v9 = vld [vmem:[%s12057_s3 + $0x55c] sm:$0xf]  ;;  %v6605_v61 = vor.u32 %v7832_v60, %v6602_v4 }
 0x1e5   :  { %4556 = vmatpush.bf16.msrb.mxu1 %v6961_v51  ;;  %v6929_v51 = vor.u32 %v7917_v1, %v6928_v59  ;;  %v6514_v10 = vld [vmem:[%s12057_s3 + $0x578] sm:$0xf0]  ;;  %v6857_v21 = vor.u32 %v7899_v55, %v6856_v56  ;;  %3683 = vmatmul.bf16.vlgmr.msrb.gmra.mxu2 %v10102_v17  ;;  %v6737_v19 = vor.u32 %v7869_v50, %v6736_v52  ;;  %v6704_v55 = vld [vmem:[%s12057_s3 + $0x6d8] sm:$0xf]  ;;  %v2045_v1 = vperm.slane %v10480_v38, 4 }
 0x1e6   :  { %3640 = vmatpush.bf16.msra.mxu3 %v6701_v37  ;;  %3727 = vmatpush.bf16.msra.mxu2 %v6581_v22  ;;  %v6840_v37 = vld [vmem:[%s12060_s5] sm:$0xf]  ;;  %v6418_v22 = vld [vmem:[%s12057_s3 + $0x4b8] sm:$0xf0]  ;;  %v7861_v59 = vld [vmem:[%s12057_s3 + $0x6f4] sm:$0xf0] }
 0x1e7   :  { %v6841_v44 = vor.u32 %v7895_v43, %v6840_v37  ;;  %v6386_v56 = vld [vmem:[%s12057_s3 + $0x478] sm:$0xf0]  ;;  %v7853_v38 = vld [vmem:[%s12057_s3 + $0x6b4] sm:$0xf0]  ;;  %v7152_v37 = vld [vmem:[%s12060_s5 + $0x270] sm:$0xf] }
 0x1e8   :  { %4544 = vmatpush.bf16.msrb.mxu0 %v6889_v62  ;;  %v11090_v62 = vpop.f32.mrf.mxu2  ;;  %v3504_v15 = vpop.f32.mrf.mxu0  ;;  %v6354_v4 = vld [vmem:[%s12057_s3 + $0x438] sm:$0xf0]  ;;  %v7973_v43 = vld [vmem:[%s12060_s5 + $0x274] sm:$0xf0]  ;;  %v7000_v48 = vld [vmem:[%s12060_s5 + $0x140] sm:$0xf] }
 0x1e9   :  { %4557 = vmatpush.bf16.msrb.mxu1 %v6953_v34  ;;  %v6921_v34 = vor.u32 %v7915_v14, %v6920_v13  ;;  %v3517_v33 = vpop.f32.mrf.mxu1  ;;  %v6640_v14 = vld [vmem:[%s12057_s3 + $0x658] sm:$0xf]  ;;  %v7136_v50 = vld [vmem:[%s12060_s5 + $0x250] sm:$0xf] }
 0x1ea   :  { %3641 = vmatpush.bf16.msra.mxu3 %v6669_v31  ;;  %3728 = vmatpush.bf16.msra.mxu2 %v6549_v3  ;;  %v7785_v31 = vld [vmem:[%s12057_s3 + $0x49c] sm:$0xf]  ;;  %v7845_v15 = vld [vmem:[%s12057_s3 + $0x674] sm:$0xf0] }
 0x1eb   :  { %v7769_v3 = vld [vmem:[%s12057_s3 + $0x41c] sm:$0xf]  ;;  %v6641_v40 = vor.u32 %v7845_v15, %v6640_v14  ;;  %v6976_v15 = vld [vmem:[%s12060_s5 + $0x110] sm:$0xf] }
 0x1ec   :  { %4545 = vmatpush.bf16.msrb.mxu0 %v6881_v11  ;;  %v6517_v11 = vor.u32 %v7809_v9, %v6514_v10  ;;  %v7941_v9 = vld [vmem:[%s12060_s5 + $0x174] sm:$0xf0]  ;;  %v6357_v27 = vor.u32 %v7769_v3, %v6354_v4  ;;  %v7967_v3 = vld [vmem:[%s12060_s5 + $0x244] sm:$0xf0] }
 0x1ed   :  { %4558 = vmatpush.bf16.msrb.mxu1 %v6945_v30  ;;  %v6913_v30 = vor.u32 %v7913_v29, %v6912_v16  ;;  %v7025_v5 = vor.u32 %v7941_v9, %v7024_v8  ;;  %v7837_v16 = vld [vmem:[%s12057_s3 + $0x634] sm:$0xf0]  ;;  %v7008_v29 = vld [vmem:[%s12060_s5 + $0x150] sm:$0xf]  ;;  %v7931_v8 = vld [vmem:[%s12060_s5 + $0x124] sm:$0xf0] }
 0x1ee   :  { %3642 = vmatpush.bf16.msra.mxu3 %v6637_v2  ;;  %3729 = vmatpush.bf16.msra.mxu2 %v6517_v11  ;;  %v6672_v2 = vld [vmem:[%s12057_s3 + $0x698] sm:$0xf]  ;;  %v7016_v11 = vld [vmem:[%s12060_s5 + $0x160] sm:$0xf]  ;;  %v7865_v9 = vld [vmem:[%s12057_s3 + $0x71c] sm:$0xf] }
 0x1ef   :  { %v6673_v0 = vor.u32 %v7853_v38, %v6672_v2  ;;  %v7017_v41 = vor.u32 %v7939_v25, %v7016_v11  ;;  %v7128_v2 = vld [vmem:[%s12060_s5 + $0x240] sm:$0xf]  ;;  %v6706_v11 = vld [vmem:[%s12057_s3 + $0x6f8] sm:$0xf0] }
 0x1f0   :  { %4546 = vmatpush.bf16.msrb.mxu0 %v6873_v36  ;;  %v3426_v35 = vpop.f32.mrf.mxu2  ;;  %v7793_v36 = vld [vmem:[%s12057_s3 + $0x4dc] sm:$0xf]  ;;  %v6984_v38 = vld [vmem:[%s12060_s5 + $0x120] sm:$0xf] }
 0x1f1   :  { %4559 = vmatpush.bf16.msrb.mxu1 %v6937_v18  ;;  %v6453_v45 = vor.u32 %v7793_v36, %v6450_v42  ;;  %v6421_v18 = vor.u32 %v7785_v31, %v6418_v22  ;;  %v6802_v31 = vld [vmem:[%s12057_s3 + $0x7b8] sm:$0xf0] }
 0x1f2   :  { %3643 = vmatpush.bf16.msra.mxu3 %v6605_v61  ;;  %3730 = vmatpush.bf16.msra.mxu2 %v6485_v32  ;;  %v3385_v10 = vpop.f32.mrf.mxu3  ;;  %v7153_v32 = vor.u32 %v7973_v43, %v7152_v37  ;;  %v6968_v37 = vld [vmem:[%s12060_s5 + $0x100] sm:$0xf]  ;;  %v7927_v43 = vld [vmem:[%s12060_s5 + $0x104] sm:$0xf0] }
 0x1f4   :  { %4547 = vmatpush.bf16.msrb.mxu0 %v6865_v54  ;;  %v7777_v54 = vld [vmem:[%s12057_s3 + $0x45c] sm:$0xf] }
 0x1f5   :  { %4560 = vmatpush.bf16.msrb.mxu1 %v6929_v51  ;;  %3644 = vmatmul.bf16.vlgmr.msra.gmra.mxu3 %v10321_v23  ;;  %v6389_v60 = vor.u32 %v7777_v54, %v6386_v56  ;;  %v6705_v51 = vor.u32 %v7861_v59, %v6704_v55  ;;  %v6992_v54 = vld [vmem:[%s12060_s5 + $0x130] sm:$0xf]  ;;  %v7933_v56 = vld [vmem:[%s12060_s5 + $0x134] sm:$0xf0] }
 0x1f6   :  { %3688 = vmatpush.bf16.msrb.mxu3 %v6833_v24  ;;  %3731 = vmatpush.bf16.msra.mxu2 %v6453_v45  ;;  %v7971_v45 = vld [vmem:[%s12060_s5 + $0x264] sm:$0xf0]  ;;  %v7969_v55 = vld [vmem:[%s12060_s5 + $0x254] sm:$0xf0] }
 0x1f7   :  { %v7145_v22 = vor.u32 %v7971_v45, %v7144_v46 }
 0x1f8   :  { %4548 = vmatpush.bf16.msrb.mxu0 %v6857_v21  ;;  %v11166_v53 = vpop.f32.mrf.mxu2  ;;  %v3386_v21 = vadd.f32 %v3385_v10, %v3373_v6  ;;  %v6738_v10 = vld [vmem:[%s12057_s3 + $0x738] sm:$0xf0] }
 0x1f9   :  { %4561 = vmatpush.bf16.msrb.mxu1 %v6921_v34  ;;  %v6741_v14 = vor.u32 %v7865_v9, %v6738_v10  ;;  %v7987_v9 = vld [vmem:[%s12060_s5 + $0x2e4] sm:$0xf0]  ;;  %v7906_v10 = vld [vmem:[%s12060_s5 + $0x64] sm:$0xf] }
 0x1fa   :  { %3689 = vmatpush.bf16.msrb.mxu3 %v6801_v58  ;;  %3732 = vmatpush.bf16.msra.mxu2 %v6421_v18  ;;  %v3753_v34 = vmax.f32 %v3386_v21, 0.0  ;;  %v3387_v35 = vpop.f32.mrf.mxu3  ;;  %v7889_v58 = vld [vmem:[%s12057_s3 + $0x7dc] sm:$0xf]  ;;  %v3425_v18 = vadd.f32 %v11090_v62, %v10670_v20  ;;  %v7129_v21 = vor.u32 %v7967_v3, %v7128_v2  ;;  %v7957_v2 = vld [vmem:[%s12060_s5 + $0x1f4] sm:$0xf0] }
 0x1fb   :  { %v7873_v20 = vld [vmem:[%s12057_s3 + $0x75c] sm:$0xf] }
 0x1fc   :  { %4549 = vmatpush.bf16.msrb.mxu0 %v6849_v28  ;;  %v11213_v26 = vpack.c.bf16 %v3753_v34, %v3753_v34  ;;  %v6608_v28 = vld [vmem:[%s12057_s3 + $0x618] sm:$0xf]  ;;  %v6770_v62 = vld [vmem:[%s12057_s3 + $0x778] sm:$0xf0] }
 0x1fd   :  { %4562 = vmatpush.bf16.msrb.mxu1 %v6913_v30  ;;  %v7937_v30 = vld [vmem:[%s12060_s5 + $0x154] sm:$0xf0]  ;;  %v6609_v42 = vor.u32 %v7837_v16, %v6608_v28  ;;  %v6773_v6 = vor.u32 %v7873_v20, %v6770_v62  ;;  %v7963_v16 = vld [vmem:[%s12060_s5 + $0x224] sm:$0xf0]  ;;  %v6674_v35 = vld [vmem:[%s12057_s3 + $0x6b8] sm:$0xf0] }
 0x1fe   :  { %3690 = vmatpush.bf16.msrb.mxu3 %v6769_v63  ;;  %3733 = vmatpush.bf16.msra.mxu2 %v6389_v60  ;;  %v7881_v63 = vld [vmem:[%s12057_s3 + $0x79c] sm:$0xf]  ;;  %v7929_v34 = vld [vmem:[%s12060_s5 + $0x114] sm:$0xf0]  ;;  %v7908_v62 = vld [vmem:[%s12060_s5 + $0x74] sm:$0xf] }
 0x1ff   :  { %v7989_v20 = vld [vmem:[%s12060_s5 + $0x2f4] sm:$0xf0] }
 0x200   :  { %4550 = vmatpush.bf16.msrb.mxu0 %v6841_v44  ;;  %v3554_v12 = vpop.f32.mrf.mxu0  ;;  %v3478_v13 = vpop.f32.mrf.mxu2  ;;  %v7009_v44 = vor.u32 %v7937_v30, %v7008_v29  ;;  %v11338_v29 = vld [vmem:[%s12059_s4] sm:$0xff] }
 0x201   :  { %4563 = vmatpush.bf16.msrb.mxu1 %v6905_v49  ;;  %v3555_v33 = vadd.f32 %v3554_v12, %v2045_v1  ;;  %v3567_v61 = vpop.f32.mrf.mxu1  ;;  %v7935_v49 = vld [vmem:[%s12060_s5 + $0x144] sm:$0xf0]  ;;  %v7137_v1 = vor.u32 %v7969_v55, %v7136_v50  ;;  %v6985_v12 = vor.u32 %v7931_v8, %v6984_v38  ;;  %v7120_v13 = vld [vmem:[%s12060_s5 + $0x230] sm:$0xf]  ;;  %v2046_v30 = vperm.slane %v11338_v29, 5 }
 0x202   :  { %3691 = vmatpush.bf16.msrb.mxu3 %v6737_v19  ;;  %3734 = vmatpush.bf16.msra.mxu2 %v6357_v27  ;;  %v7001_v52 = vor.u32 %v7935_v49, %v7000_v48  ;;  %v6805_v19 = vor.u32 %v7881_v63, %v6802_v31  ;;  %v3437_v59 = vpop.f32.mrf.mxu3  ;;  %v7841_v63 = vld [vmem:[%s12057_s3 + $0x65c] sm:$0xf]  ;;  %v7216_v55 = vld [vmem:[%s12060_s5 + $0x2f0] sm:$0xf]  ;;  %v7208_v8 = vld [vmem:[%s12060_s5 + $0x2e0] sm:$0xf] }
 0x203   :  { %v11215_v24 = vadd.f32 %v3567_v61, %v3555_v33  ;;  %4551 = vmatmul.bf16.vlgmr.msrb.gmra.mxu0 %v11213_v26  ;;  %v3438_v60 = vadd.f32 %v3437_v59, %v3425_v18  ;;  %v7857_v61 = vld [vmem:[%s12057_s3 + $0x6dc] sm:$0xf]  ;;  %v7096_v18 = vld [vmem:[%s12060_s5 + $0x200] sm:$0xf]  ;;  %v7217_v3 = vor.u32 %v7989_v20, %v7216_v55  ;;  %v2047_v55 = vperm.slane %v11338_v29, 6 }
 0x204   :  { %4595 = vmatpush.bf16.msra.mxu0 %v7153_v32  ;;  %v6709_v28 = vor.u32 %v7857_v61, %v6706_v11  ;;  %v7849_v32 = vld [vmem:[%s12057_s3 + $0x69c] sm:$0xf]  ;;  %v7200_v61 = vld [vmem:[%s12060_s5 + $0x2d0] sm:$0xf]  ;;  %v7985_v11 = vld [vmem:[%s12060_s5 + $0x2d4] sm:$0xf0] }
 0x205   :  { %3735 = vmatmul.bf16.vlgmr.msra.gmra.mxu2 %v10102_v17  ;;  %v6837_v17 = vor.u32 %v7889_v58, %v6834_v39  ;;  %v3754_v4 = vmax.f32 %v3438_v60, 0.0  ;;  %v6969_v39 = vor.u32 %v7927_v43, %v6968_v37  ;;  %v6642_v31 = vld [vmem:[%s12057_s3 + $0x678] sm:$0xf0]  ;;  %4608 = vmatpush.bf16.msra.mxu1 %v7217_v3  ;;  %v7953_v43 = vld [vmem:[%s12060_s5 + $0x1d4] sm:$0xf0] }
 0x206   :  { %3692 = vmatpush.bf16.msrb.mxu3 %v6705_v51  ;;  %4569 = vmatpush.bf16.msrb.mxu2 %v7025_v5  ;;  %v6993_v51 = vor.u32 %v7933_v56, %v6992_v54  ;;  %v6610_v50 = vld [vmem:[%s12057_s3 + $0x638] sm:$0xf0]  ;;  %v6645_v54 = vor.u32 %v7841_v63, %v6642_v31  ;;  %v7959_v56 = vld [vmem:[%s12060_s5 + $0x204] sm:$0xf0]  ;;  %v7056_v31 = vld [vmem:[%s12060_s5 + $0x1b0] sm:$0xf] }
 0x207   :  { %v11300_v27 = vpack.c.bf16 %v3754_v4, %v3754_v4  ;;  %v7097_v59 = vor.u32 %v7959_v56, %v7096_v18  ;;  %v6882_v37 = vld [vmem:[%s12060_s5 + $0x58] sm:$0xf0]  ;;  %v7898_v18 = vld [vmem:[%s12060_s5 + $0x24] sm:$0xf]  ;;  %v6858_v56 = vld [vmem:[%s12060_s5 + $0x28] sm:$0xf0] }
 0x208   :  { %v3556_v36 = vpop.f32.mrf.mxu0  ;;  %4596 = vmatpush.bf16.msra.mxu0 %v7145_v22  ;;  %v7947_v20 = vld [vmem:[%s12060_s5 + $0x1a4] sm:$0xf0] }
 0x209   :  { %v3569_v47 = vpop.f32.mrf.mxu1  ;;  %4564 = vmatmul.bf16.vlgmr.msrb.gmra.mxu1 %v11300_v27  ;;  %v7104_v36 = vld [vmem:[%s12060_s5 + $0x210] sm:$0xf] }
 0x20a   :  { %3693 = vmatpush.bf16.msrb.mxu3 %v6673_v0  ;;  %4570 = vmatpush.bf16.msrb.mxu2 %v7017_v41  ;;  %v7965_v0 = vld [vmem:[%s12060_s5 + $0x234] sm:$0xf0]  ;;  %v11308_v5 = vpop.f32.mrf.mxu2  ;;  %v3439_v33 = vpop.f32.mrf.mxu3  ;;  %v7112_v41 = vld [vmem:[%s12060_s5 + $0x220] sm:$0xf]  ;;  %v6677_v47 = vor.u32 %v7849_v32, %v6674_v35  ;;  %v7983_v32 = vld [vmem:[%s12060_s5 + $0x2c4] sm:$0xf0] }
 0x20b   :  { %v7121_v25 = vor.u32 %v7965_v0, %v7120_v13  ;;  %v7113_v58 = vor.u32 %v7963_v16, %v7112_v41  ;;  %v7209_v0 = vor.u32 %v7987_v9, %v7208_v8  ;;  %v7072_v41 = vld [vmem:[%s12060_s5 + $0x1d0] sm:$0xf]  ;;  %v7902_v35 = vld [vmem:[%s12060_s5 + $0x44] sm:$0xf]  ;;  %v6850_v8 = vld [vmem:[%s12060_s5 + $0x18] sm:$0xf0] }
 0x20c   :  { %4597 = vmatpush.bf16.msra.mxu0 %v7137_v1  ;;  %v6898_v1 = vld [vmem:[%s12060_s5 + $0x78] sm:$0xf0] }
 0x20d   :  { %v6901_v4 = vor.u32 %v7908_v62, %v6898_v1  ;;  %4609 = vmatpush.bf16.msra.mxu1 %v7209_v0  ;;  %v6861_v62 = vor.u32 %v7898_v18, %v6858_v56  ;;  %v7168_v1 = vld [vmem:[%s12060_s5 + $0x290] sm:$0xf]  ;;  %v7918_v56 = vld [vmem:[%s12060_s5 + $0xc4] sm:$0xf] }
 0x20e   :  { %3694 = vmatpush.bf16.msrb.mxu3 %v6641_v40  ;;  %4571 = vmatpush.bf16.msrb.mxu2 %v7009_v44  ;;  %v6977_v40 = vor.u32 %v7929_v34, %v6976_v15  ;;  %v7080_v15 = vld [vmem:[%s12060_s5 + $0x1e0] sm:$0xf]  ;;  %v7955_v34 = vld [vmem:[%s12060_s5 + $0x1e4] sm:$0xf0] }
 0x210   :  { %4598 = vmatpush.bf16.msra.mxu0 %v7129_v21 }
 0x212   :  { %3695 = vmatpush.bf16.msrb.mxu3 %v6609_v42  ;;  %4572 = vmatpush.bf16.msrb.mxu2 %v7001_v52  ;;  %v3477_v42 = vadd.f32 %v11166_v53, %v10869_v7  ;;  %v3530_v46 = vpop.f32.mrf.mxu2  ;;  %v7833_v52 = vld [vmem:[%s12057_s3 + $0x61c] sm:$0xf] }
 0x213   :  { %v3489_v45 = vpop.f32.mrf.mxu3  ;;  %v6613_v38 = vor.u32 %v7833_v52, %v6610_v50  ;;  %v7184_v46 = vld [vmem:[%s12060_s5 + $0x2b0] sm:$0xf]  ;;  %v7176_v52 = vld [vmem:[%s12060_s5 + $0x2a0] sm:$0xf]  ;;  %v7979_v50 = vld [vmem:[%s12060_s5 + $0x2a4] sm:$0xf0] }
 0x214   :  { %4599 = vmatpush.bf16.msra.mxu0 %v7121_v25  ;;  %v3490_v53 = vadd.f32 %v3489_v45, %v3477_v42  ;;  %v7904_v25 = vld [vmem:[%s12060_s5 + $0x54] sm:$0xf]  ;;  %v7064_v42 = vld [vmem:[%s12060_s5 + $0x1c0] sm:$0xf] }
 0x215   :  { %3696 = vmatmul.bf16.vlgmr.msrb.gmra.mxu3 %v10321_v23  ;;  %v6885_v16 = vor.u32 %v7904_v25, %v6882_v37 }
 0x216   :  { %3740 = vmatpush.bf16.msra.mxu3 %v6837_v17  ;;  %4573 = vmatpush.bf16.msrb.mxu2 %v6993_v51  ;;  %v7961_v17 = vld [vmem:[%s12060_s5 + $0x214] sm:$0xf0]  ;;  %v7088_v51 = vld [vmem:[%s12060_s5 + $0x1f0] sm:$0xf] }
 0x217   :  { %v7105_v7 = vor.u32 %v7961_v17, %v7104_v36  ;;  %v7089_v13 = vor.u32 %v7957_v2, %v7088_v51  ;;  %v7900_v17 = vld [vmem:[%s12060_s5 + $0x34] sm:$0xf]  ;;  %v7977_v51 = vld [vmem:[%s12060_s5 + $0x294] sm:$0xf0] }
 0x218   :  { %4600 = vmatpush.bf16.msra.mxu0 %v7113_v58  ;;  %v6874_v58 = vld [vmem:[%s12060_s5 + $0x48] sm:$0xf0]  ;;  %v7896_v2 = vld [vmem:[%s12060_s5 + $0x14] sm:$0xf] }
 0x219   :  { %v6853_v0 = vor.u32 %v7896_v2, %v6850_v8  ;;  %v7995_v8 = vld [vmem:[%s12060_s5 + $0x324] sm:$0xf0] }
 0x21a   :  { %3741 = vmatpush.bf16.msra.mxu3 %v6805_v19  ;;  %4574 = vmatpush.bf16.msrb.mxu2 %v6985_v12  ;;  %v3755_v19 = vmax.f32 %v3490_v53, 0.0 }
 0x21b   :  { %v3491_v12 = vpop.f32.mrf.mxu3 }
 0x21c   :  { %4601 = vmatpush.bf16.msra.mxu0 %v7105_v7  ;;  %v11387_v60 = vpack.c.bf16 %v3755_v19, %v3755_v19  ;;  %v7949_v7 = vld [vmem:[%s12060_s5 + $0x1b4] sm:$0xf0]  ;;  %v7040_v12 = vld [vmem:[%s12060_s5 + $0x190] sm:$0xf] }
 0x21d   :  { %v7057_v19 = vor.u32 %v7949_v7, %v7056_v31  ;;  %v8001_v31 = vld [vmem:[%s12060_s5 + $0x354] sm:$0xf0]  ;;  %v7920_v7 = vld [vmem:[%s12060_s5 + $0xd4] sm:$0xf] }
 0x21e   :  { %3742 = vmatpush.bf16.msra.mxu3 %v6773_v6  ;;  %4575 = vmatpush.bf16.msrb.mxu2 %v6977_v40  ;;  %v7081_v40 = vor.u32 %v7955_v34, %v7080_v15  ;;  %v7032_v34 = vld [vmem:[%s12060_s5 + $0x180] sm:$0xf] }
 0x220   :  { %v3606_v44 = vpop.f32.mrf.mxu0  ;;  %4602 = vmatpush.bf16.msra.mxu0 %v7097_v59  ;;  %v7048_v59 = vld [vmem:[%s12060_s5 + $0x1a0] sm:$0xf] }
 0x221   :  { %v3607_v48 = vadd.f32 %v3606_v44, %v2046_v30  ;;  %v3619_v49 = vpop.f32.mrf.mxu1  ;;  %v7192_v30 = vld [vmem:[%s12060_s5 + $0x2c0] sm:$0xf]  ;;  %v6877_v44 = vor.u32 %v7902_v35, %v6874_v58 }
 0x222   :  { %3743 = vmatpush.bf16.msra.mxu3 %v6741_v14  ;;  %4576 = vmatpush.bf16.msrb.mxu2 %v6969_v39  ;;  %v6890_v14 = vld [vmem:[%s12060_s5 + $0x68] sm:$0xf0]  ;;  %v7073_v39 = vor.u32 %v7953_v43, %v7072_v41  ;;  %v7193_v36 = vor.u32 %v7983_v32, %v7192_v30  ;;  %v7280_v41 = vld [vmem:[%s12060_s5 + $0x370] sm:$0xf]  ;;  %v8005_v43 = vld [vmem:[%s12060_s5 + $0x374] sm:$0xf0] }
 0x223   :  { %v11361_v22 = vadd.f32 %v3619_v49, %v3607_v48  ;;  %v6893_v33 = vor.u32 %v7906_v10, %v6890_v14  ;;  %v6866_v48 = vld [vmem:[%s12060_s5 + $0x38] sm:$0xf0]  ;;  %v3529_v14 = vadd.f32 %v11308_v5, %v11067_v57  ;;  %v7943_v5 = vld [vmem:[%s12060_s5 + $0x184] sm:$0xf0]  ;;  %v7281_v32 = vor.u32 %v8005_v43, %v7280_v41  ;;  %v7272_v58 = vld [vmem:[%s12060_s5 + $0x360] sm:$0xf] }
 0x224   :  { %4647 = vmatpush.bf16.msrb.mxu0 %v6901_v4  ;;  %v6869_v53 = vor.u32 %v7900_v17, %v6866_v48  ;;  %v6962_v30 = vld [vmem:[%s12060_s5 + $0xf8] sm:$0xf0]  ;;  %v7224_v43 = vld [vmem:[%s12060_s5 + $0x300] sm:$0xf] }
 0x225   :  { %4577 = vmatmul.bf16.vlgmr.msrb.gmra.mxu2 %v11387_v60 }
 0x226   :  { %3744 = vmatpush.bf16.msra.mxu3 %v6709_v28  ;;  %v7201_v28 = vor.u32 %v7985_v11, %v7200_v61  ;;  %v7975_v61 = vld [vmem:[%s12060_s5 + $0x284] sm:$0xf0]  ;;  %v7894_v11 = vld [vmem:[%s12060_s5 + $0x4] sm:$0xf]  ;;  %4621 = vmatpush.bf16.msra.mxu2 %v7281_v32 }
 0x228   :  { %v3608_v6 = vpop.f32.mrf.mxu0  ;;  %4648 = vmatpush.bf16.msrb.mxu0 %v6893_v33  ;;  %4610 = vmatpush.bf16.msra.mxu1 %v7201_v28  ;;  %v7160_v33 = vld [vmem:[%s12060_s5 + $0x280] sm:$0xf] }
 0x229   :  { %v3621_v21 = vpop.f32.mrf.mxu1  ;;  %v7049_v6 = vor.u32 %v7947_v20, %v7048_v59  ;;  %v7161_v25 = vor.u32 %v7975_v61, %v7160_v33 }
 0x22a   :  { %3745 = vmatpush.bf16.msra.mxu3 %v6677_v47  ;;  %v7981_v47 = vld [vmem:[%s12060_s5 + $0x2b4] sm:$0xf0]  ;;  %v11463_v49 = vpop.f32.mrf.mxu2 }
 0x22b   :  { %v7185_v63 = vor.u32 %v7981_v47, %v7184_v46  ;;  %v3581_v33 = vadd.f32 %v11463_v49, %v11215_v24  ;;  %v7154_v24 = vld [vmem:[%s12060_s5 + $0x278] sm:$0xf0] }
 0x22c   :  { %4649 = vmatpush.bf16.msrb.mxu0 %v6885_v16  ;;  %4611 = vmatpush.bf16.msra.mxu1 %v7193_v36  ;;  %v7924_v16 = vld [vmem:[%s12060_s5 + $0xf4] sm:$0xf]  ;;  %v7922_v36 = vld [vmem:[%s12060_s5 + $0xe4] sm:$0xf] }
 0x22d   :  { %v6965_v35 = vor.u32 %v7924_v16, %v6962_v30  ;;  %v7991_v16 = vld [vmem:[%s12060_s5 + $0x304] sm:$0xf0]  ;;  %v7910_v30 = vld [vmem:[%s12060_s5 + $0x84] sm:$0xf] }
 0x22e   :  { %3746 = vmatpush.bf16.msra.mxu3 %v6645_v54  ;;  %v7177_v54 = vor.u32 %v7979_v50, %v7176_v52 }
 0x230   :  { %4650 = vmatpush.bf16.msrb.mxu0 %v6877_v44  ;;  %4612 = vmatpush.bf16.msra.mxu1 %v7185_v63  ;;  %v7033_v44 = vor.u32 %v7943_v5, %v7032_v34  ;;  %v7264_v63 = vld [vmem:[%s12060_s5 + $0x350] sm:$0xf]  ;;  %v7912_v34 = vld [vmem:[%s12060_s5 + $0x94] sm:$0xf] }
 0x231   :  { %v7265_v50 = vor.u32 %v8001_v31, %v7264_v63 }
 0x232   :  { %3747 = vmatpush.bf16.msra.mxu3 %v6613_v38  ;;  %v3582_v4 = vpop.f32.mrf.mxu2  ;;  %v7169_v38 = vor.u32 %v7977_v51, %v7168_v1  ;;  %v7997_v1 = vld [vmem:[%s12060_s5 + $0x334] sm:$0xf0]  ;;  %v7916_v51 = vld [vmem:[%s12060_s5 + $0xb4] sm:$0xf] }
 0x233   :  { %v3541_v21 = vpop.f32.mrf.mxu3  ;;  %v6930_v4 = vld [vmem:[%s12060_s5 + $0xb8] sm:$0xf0] }
 0x234   :  { %4651 = vmatpush.bf16.msrb.mxu0 %v6869_v53  ;;  %4613 = vmatpush.bf16.msra.mxu1 %v7177_v54  ;;  %v3542_v28 = vadd.f32 %v3541_v21, %v3529_v14  ;;  %v6946_v53 = vld [vmem:[%s12060_s5 + $0xd8] sm:$0xf0]  ;;  %v7999_v54 = vld [vmem:[%s12060_s5 + $0x344] sm:$0xf0]  ;;  %v7993_v14 = vld [vmem:[%s12060_s5 + $0x314] sm:$0xf0] }
 0x235   :  { %3748 = vmatmul.bf16.vlgmr.msra.gmra.mxu3 %v10321_v23  ;;  %v7951_v23 = vld [vmem:[%s12060_s5 + $0x1c4] sm:$0xf0]  ;;  %v6949_v18 = vor.u32 %v7920_v7, %v6946_v53  ;;  %v7336_v7 = vld [vmem:[%s12060_s5 + $0x3e0] sm:$0xf] }
 0x236   :  { %4582 = vmatpush.bf16.msrb.mxu3 %v7089_v13  ;;  %v7065_v45 = vor.u32 %v7951_v23, %v7064_v42  ;;  %v7945_v13 = vld [vmem:[%s12060_s5 + $0x194] sm:$0xf0]  ;;  %v6954_v42 = vld [vmem:[%s12060_s5 + $0xe8] sm:$0xf0]  ;;  %v3756_v46 = vmax.f32 %v3542_v28, 0.0 }
 0x237   :  { %v7041_v57 = vor.u32 %v7945_v13, %v7040_v12  ;;  %v2048_v12 = vperm.slane %v11338_v29, 7  ;;  %v8019_v53 = vld [vmem:[%s12060_s5 + $0x3e4] sm:$0xf0] }
 0x238   :  { %4652 = vmatpush.bf16.msrb.mxu0 %v6861_v62  ;;  %4614 = vmatpush.bf16.msra.mxu1 %v7169_v38  ;;  %v11566_v52 = vpack.c.bf16 %v3756_v46, %v3756_v46  ;;  %v7248_v62 = vld [vmem:[%s12060_s5 + $0x330] sm:$0xf]  ;;  %v7240_v38 = vld [vmem:[%s12060_s5 + $0x320] sm:$0xf] }
 0x239   :  { %v7241_v21 = vor.u32 %v7995_v8, %v7240_v38  ;;  %v7966_v38 = vld [vmem:[%s12060_s5 + $0x244] sm:$0xf]  ;;  %v7130_v8 = vld [vmem:[%s12060_s5 + $0x248] sm:$0xf0] }
 0x23a   :  { %4583 = vmatpush.bf16.msrb.mxu3 %v7081_v40  ;;  %v6842_v40 = vld [vmem:[%s12060_s5 + $0x8] sm:$0xf0] }
 0x23b   :  { %v6845_v37 = vor.u32 %v7894_v11, %v6842_v40  ;;  %v3543_v17 = vpop.f32.mrf.mxu3 }
 0x23c   :  { %4653 = vmatpush.bf16.msrb.mxu0 %v6853_v0  ;;  %4615 = vmatpush.bf16.msra.mxu1 %v7161_v25  ;;  %v7232_v0 = vld [vmem:[%s12060_s5 + $0x310] sm:$0xf] }
 0x23d   :  { %v7233_v29 = vor.u32 %v7993_v14, %v7232_v0  ;;  %v7002_v0 = vld [vmem:[%s12060_s5 + $0x148] sm:$0xf0]  ;;  %v7133_v14 = vor.u32 %v7966_v38, %v7130_v8  ;;  %v7986_v38 = vld [vmem:[%s12060_s5 + $0x2e4] sm:$0xf] }
 0x23e   :  { %4584 = vmatpush.bf16.msrb.mxu3 %v7073_v39  ;;  %v8003_v39 = vld [vmem:[%s12060_s5 + $0x364] sm:$0xf0]  ;;  %v7210_v8 = vld [vmem:[%s12060_s5 + $0x2e8] sm:$0xf0] }
 0x23f   :  { %v7273_v48 = vor.u32 %v8003_v39, %v7272_v58  ;;  %v6906_v58 = vld [vmem:[%s12060_s5 + $0x88] sm:$0xf0] }
 0x240   :  { %v3658_v3 = vpop.f32.mrf.mxu0  ;;  %4654 = vmatpush.bf16.msrb.mxu0 %v6845_v37  ;;  %4660 = vmatpush.bf16.msrb.mxu1 %v6965_v35  ;;  %v7972_v37 = vld [vmem:[%s12060_s5 + $0x274] sm:$0xf]  ;;  %v7225_v35 = vor.u32 %v7991_v16, %v7224_v43  ;;  %v7304_v16 = vld [vmem:[%s12060_s5 + $0x3a0] sm:$0xf] }
 0x241   :  { %v3659_v9 = vadd.f32 %v3658_v3, %v2047_v55  ;;  %v3671_v10 = vpop.f32.mrf.mxu1  ;;  %4622 = vmatpush.bf16.msra.mxu2 %v7273_v48  ;;  %v6938_v55 = vld [vmem:[%s12060_s5 + $0xc8] sm:$0xf0]  ;;  %v7249_v3 = vor.u32 %v7997_v1, %v7248_v62  ;;  %v7157_v39 = vor.u32 %v7972_v37, %v7154_v24  ;;  %v7940_v48 = vld [vmem:[%s12060_s5 + $0x174] sm:$0xf]  ;;  %v7328_v1 = vld [vmem:[%s12060_s5 + $0x3d0] sm:$0xf] }
 0x242   :  { %4585 = vmatpush.bf16.msrb.mxu3 %v7065_v45  ;;  %v6957_v45 = vor.u32 %v7922_v36, %v6954_v42  ;;  %v6941_v20 = vor.u32 %v7918_v56, %v6938_v55  ;;  %v7970_v36 = vld [vmem:[%s12060_s5 + $0x264] sm:$0xf]  ;;  %v6909_v42 = vor.u32 %v7910_v30, %v6906_v58  ;;  %v7018_v56 = vld [vmem:[%s12060_s5 + $0x168] sm:$0xf0]  ;;  %v7968_v55 = vld [vmem:[%s12060_s5 + $0x254] sm:$0xf] }
 0x243   :  { %v11510_v15 = vadd.f32 %v3671_v10, %v3659_v9  ;;  %v7914_v9 = vld [vmem:[%s12060_s5 + $0xa4] sm:$0xf]  ;;  %v6922_v10 = vld [vmem:[%s12060_s5 + $0xa8] sm:$0xf0]  ;;  %v8011_v30 = vld [vmem:[%s12060_s5 + $0x3a4] sm:$0xf0] }
 0x244   :  { %4661 = vmatpush.bf16.msrb.mxu1 %v6957_v45  ;;  %v6925_v13 = vor.u32 %v7914_v9, %v6922_v10  ;;  %v7026_v45 = vld [vmem:[%s12060_s5 + $0x178] sm:$0xf0]  ;;  %v7114_v37 = vld [vmem:[%s12060_s5 + $0x228] sm:$0xf0] }
 0x245   :  { %4623 = vmatpush.bf16.msra.mxu2 %v7265_v50  ;;  %v7029_v63 = vor.u32 %v7940_v48, %v7026_v45  ;;  %v7938_v50 = vld [vmem:[%s12060_s5 + $0x164] sm:$0xf] }
 0x246   :  { %4586 = vmatpush.bf16.msrb.mxu3 %v7057_v19  ;;  %v7256_v19 = vld [vmem:[%s12060_s5 + $0x340] sm:$0xf]  ;;  %v7021_v62 = vor.u32 %v7938_v50, %v7018_v56  ;;  %v8007_v56 = vld [vmem:[%s12060_s5 + $0x384] sm:$0xf0] }
 0x247   :  { %v7257_v59 = vor.u32 %v7999_v54, %v7256_v19 }
 0x248   :  { %v3660_v23 = vpop.f32.mrf.mxu0  ;;  %4662 = vmatpush.bf16.msrb.mxu1 %v6949_v18 }
 0x249   :  { %v3673_v47 = vpop.f32.mrf.mxu1  ;;  %4624 = vmatpush.bf16.msra.mxu2 %v7257_v59  ;;  %v7344_v23 = vld [vmem:[%s12060_s5 + $0x3f0] sm:$0xf]  ;;  %v7138_v59 = vld [vmem:[%s12060_s5 + $0x258] sm:$0xf0] }
 0x24a   :  { %4587 = vmatpush.bf16.msrb.mxu3 %v7049_v6  ;;  %v11590_v2 = vpop.f32.mrf.mxu2  ;;  %v6933_v6 = vor.u32 %v7916_v51, %v6930_v4  ;;  %v7146_v47 = vld [vmem:[%s12060_s5 + $0x268] sm:$0xf0]  ;;  %v8017_v51 = vld [vmem:[%s12060_s5 + $0x3d4] sm:$0xf0]  ;;  %v7141_v4 = vor.u32 %v7968_v55, %v7138_v59  ;;  %v7926_v55 = vld [vmem:[%s12060_s5 + $0x104] sm:$0xf] }
 0x24b   :  { %v7149_v54 = vor.u32 %v7970_v36, %v7146_v47  ;;  %v7329_v9 = vor.u32 %v8017_v51, %v7328_v1  ;;  %v7106_v36 = vld [vmem:[%s12060_s5 + $0x218] sm:$0xf0]  ;;  %v7928_v47 = vld [vmem:[%s12060_s5 + $0x114] sm:$0xf] }
 0x24c   :  { %4663 = vmatpush.bf16.msrb.mxu1 %v6941_v20  ;;  %v7337_v20 = vor.u32 %v8019_v53, %v7336_v7  ;;  %v7958_v7 = vld [vmem:[%s12060_s5 + $0x204] sm:$0xf]  ;;  %v7098_v53 = vld [vmem:[%s12060_s5 + $0x208] sm:$0xf0] }
 0x24d   :  { %4625 = vmatpush.bf16.msra.mxu2 %v7249_v3  ;;  %v7936_v3 = vld [vmem:[%s12060_s5 + $0x154] sm:$0xf] }
 0x24e   :  { %4588 = vmatpush.bf16.msrb.mxu3 %v7041_v57  ;;  %v6914_v57 = vld [vmem:[%s12060_s5 + $0x98] sm:$0xf0] }
 0x24f   :  { %v6917_v41 = vor.u32 %v7912_v34, %v6914_v57  ;;  %v7964_v34 = vld [vmem:[%s12060_s5 + $0x234] sm:$0xf]  ;;  %v8013_v57 = vld [vmem:[%s12060_s5 + $0x3b4] sm:$0xf0] }
 0x250   :  { %4664 = vmatpush.bf16.msrb.mxu1 %v6933_v6  ;;  %v7010_v6 = vld [vmem:[%s12060_s5 + $0x158] sm:$0xf0] }
 0x251   :  { %4626 = vmatpush.bf16.msra.mxu2 %v7241_v21  ;;  %v7013_v10 = vor.u32 %v7936_v3, %v7010_v6  ;;  %v7320_v21 = vld [vmem:[%s12060_s5 + $0x3c0] sm:$0xf]  ;;  %v7956_v3 = vld [vmem:[%s12060_s5 + $0x1f4] sm:$0xf] }
 0x252   :  { %4589 = vmatpush.bf16.msrb.mxu3 %v7033_v44  ;;  %v3634_v11 = vpop.f32.mrf.mxu2  ;;  %v8021_v44 = vld [vmem:[%s12060_s5 + $0x3f4] sm:$0xf0] }
 0x253   :  { %v3593_v40 = vpop.f32.mrf.mxu3  ;;  %v7345_v17 = vor.u32 %v8021_v44, %v7344_v23  ;;  %v7296_v44 = vld [vmem:[%s12060_s5 + $0x390] sm:$0xf] }
 0x254   :  { %4665 = vmatpush.bf16.msrb.mxu1 %v6925_v13  ;;  %v3594_v28 = vadd.f32 %v3593_v40, %v3581_v33  ;;  %v7934_v13 = vld [vmem:[%s12060_s5 + $0x144] sm:$0xf]  ;;  %v7122_v33 = vld [vmem:[%s12060_s5 + $0x238] sm:$0xf0] }
 0x255   :  { %4590 = vmatmul.bf16.vlgmr.msrb.gmra.mxu3 %v11566_v52  ;;  %4627 = vmatpush.bf16.msra.mxu2 %v7233_v29  ;;  %v7005_v11 = vor.u32 %v7934_v13, %v7002_v0  ;;  %v7312_v29 = vld [vmem:[%s12060_s5 + $0x3b0] sm:$0xf]  ;;  %v7125_v40 = vor.u32 %v7964_v34, %v7122_v33  ;;  %v7213_v0 = vor.u32 %v7986_v38, %v7210_v8  ;;  %v7202_v34 = vld [vmem:[%s12060_s5 + $0x2d8] sm:$0xf0] }
 0x256   :  { %v3757_v32 = vmax.f32 %v3594_v28, 0.0  ;;  %4634 = vmatpush.bf16.msra.mxu3 %v7345_v17  ;;  %v7962_v28 = vld [vmem:[%s12060_s5 + $0x224] sm:$0xf]  ;;  %v7313_v24 = vor.u32 %v8013_v57, %v7312_v29  ;;  %v3633_v17 = vadd.f32 %v11590_v2, %v11361_v22 }
 0x257   :  { %v7117_v58 = vor.u32 %v7962_v28, %v7114_v37  ;;  %v7066_v28 = vld [vmem:[%s12060_s5 + $0x1c8] sm:$0xf0] }
 0x258   :  { %4666 = vmatpush.bf16.msrb.mxu1 %v6917_v41  ;;  %v11651_v46 = vpack.c.bf16 %v3757_v32, %v3757_v32  ;;  %v6994_v41 = vld [vmem:[%s12060_s5 + $0x138] sm:$0xf0]  ;;  %v7930_v32 = vld [vmem:[%s12060_s5 + $0x124] sm:$0xf] }
 0x259   :  { %4628 = vmatpush.bf16.msra.mxu2 %v7225_v35  ;;  %v6986_v35 = vld [vmem:[%s12060_s5 + $0x128] sm:$0xf0] }
 0x25a   :  { %4603 = vmatmul.bf16.vlgmr.msra.gmra.mxu0 %v11651_v46  ;;  %4635 = vmatpush.bf16.msra.mxu3 %v7337_v20  ;;  %v6989_v23 = vor.u32 %v7930_v32, %v6986_v35  ;;  %v7101_v20 = vor.u32 %v7958_v7, %v7098_v53  ;;  %v7058_v32 = vld [vmem:[%s12060_s5 + $0x1b8] sm:$0xf0]  ;;  %v7944_v7 = vld [vmem:[%s12060_s5 + $0x194] sm:$0xf] }
 0x25b   :  { %v3595_v19 = vpop.f32.mrf.mxu3  ;;  %4699 = vmatpush.bf16.msra.mxu0 %v7157_v39  ;;  %v7960_v39 = vld [vmem:[%s12060_s5 + $0x214] sm:$0xf] }
 0x25c   :  { %4667 = vmatpush.bf16.msrb.mxu1 %v6909_v42  ;;  %v7305_v42 = vor.u32 %v8011_v30, %v7304_v16  ;;  %v7109_v45 = vor.u32 %v7960_v39, %v7106_v36  ;;  %v7218_v19 = vld [vmem:[%s12060_s5 + $0x2f8] sm:$0xf0]  ;;  %v7948_v30 = vld [vmem:[%s12060_s5 + $0x1b4] sm:$0xf]  ;;  %v11857_v39 = vld [vmem:[%s12061_s6] sm:$0x3] }
 0x25d   :  { %4673 = vmatpush.bf16.msrb.mxu2 %v7029_v63  ;;  %v6978_v63 = vld [vmem:[%s12060_s5 + $0x118] sm:$0xf0] }
 0x25e   :  { %4636 = vmatpush.bf16.msra.mxu3 %v7329_v9  ;;  %v6981_v22 = vor.u32 %v7928_v47, %v6978_v63  ;;  %v7050_v47 = vld [vmem:[%s12060_s5 + $0x1a8] sm:$0xf0]  ;;  %v7170_v63 = vld [vmem:[%s12060_s5 + $0x298] sm:$0xf0] }
 0x25f   :  { %4700 = vmatpush.bf16.msra.mxu0 %v7149_v54  ;;  %v7288_v54 = vld [vmem:[%s12060_s5 + $0x380] sm:$0xf] }
 0x260   :  { %v3710_v61 = vpop.f32.mrf.mxu0  ;;  %v7289_v51 = vor.u32 %v8007_v56, %v7288_v54  ;;  %v7974_v54 = vld [vmem:[%s12060_s5 + $0x284] sm:$0xf]  ;;  %v7162_v56 = vld [vmem:[%s12060_s5 + $0x288] sm:$0xf0] }
 0x261   :  { %v3711_v5 = vadd.f32 %v3710_v61, %v2048_v12  ;;  %v3723_v25 = vpop.f32.mrf.mxu1  ;;  %4674 = vmatpush.bf16.msrb.mxu2 %v7021_v62  ;;  %v8015_v12 = vld [vmem:[%s12060_s5 + $0x3c4] sm:$0xf0]  ;;  %v6970_v62 = vld [vmem:[%s12060_s5 + $0x108] sm:$0xf0] }
 0x262   :  { %v7321_v61 = vor.u32 %v8015_v12, %v7320_v21  ;;  %v6973_v9 = vor.u32 %v7926_v55, %v6970_v62  ;;  %v7954_v21 = vld [vmem:[%s12060_s5 + $0x1e4] sm:$0xf]  ;;  %v7082_v12 = vld [vmem:[%s12060_s5 + $0x1e8] sm:$0xf0] }
 0x263   :  { %v11628_v49 = vadd.f32 %v3723_v25, %v3711_v5  ;;  %4701 = vmatpush.bf16.msra.mxu0 %v7141_v4  ;;  %v7932_v5 = vld [vmem:[%s12060_s5 + $0x134] sm:$0xf]  ;;  %v7090_v4 = vld [vmem:[%s12060_s5 + $0x1f8] sm:$0xf0]  ;;  %v7085_v33 = vor.u32 %v7954_v21, %v7082_v12  ;;  %v7942_v62 = vld [vmem:[%s12060_s5 + $0x184] sm:$0xf] }
 0x264   :  { %4637 = vmatpush.bf16.msra.mxu3 %v7321_v61  ;;  %v6997_v43 = vor.u32 %v7932_v5, %v6994_v41  ;;  %v7952_v61 = vld [vmem:[%s12060_s5 + $0x1d4] sm:$0xf]  ;;  %v7982_v5 = vld [vmem:[%s12060_s5 + $0x2c4] sm:$0xf] }
 0x265   :  { %4675 = vmatpush.bf16.msrb.mxu2 %v7013_v10  ;;  %v7093_v10 = vor.u32 %v7956_v3, %v7090_v4  ;;  %v7950_v41 = vld [vmem:[%s12060_s5 + $0x1c4] sm:$0xf]  ;;  %v7165_v3 = vor.u32 %v7974_v54, %v7162_v56  ;;  %v7306_v54 = vld [vmem:[%s12060_s5 + $0x3a8] sm:$0xf0] }
 0x266   :  { %v7069_v16 = vor.u32 %v7950_v41, %v7066_v28 }
 0x267   :  { %4702 = vmatpush.bf16.msra.mxu0 %v7133_v14  ;;  %v7984_v14 = vld [vmem:[%s12060_s5 + $0x2d4] sm:$0xf] }
 0x268   :  { %v3712_v31 = vpop.f32.mrf.mxu0  ;;  %v11726_v25 = vpop.f32.mrf.mxu2  ;;  %4638 = vmatpush.bf16.msra.mxu3 %v7313_v24  ;;  %v7205_v29 = vor.u32 %v7984_v14, %v7202_v34  ;;  %v7980_v24 = vld [vmem:[%s12060_s5 + $0x2b4] sm:$0xf]  ;;  %v7266_v14 = vld [vmem:[%s12060_s5 + $0x358] sm:$0xf0] }
 0x269   :  { %v3725_v18 = vpop.f32.mrf.mxu1  ;;  %4676 = vmatpush.bf16.msrb.mxu2 %v7005_v11  ;;  %v7074_v11 = vld [vmem:[%s12060_s5 + $0x1d8] sm:$0xf0]  ;;  %v3685_v53 = vadd.f32 %v11726_v25, %v11510_v15  ;;  %v8004_v15 = vld [vmem:[%s12060_s5 + $0x374] sm:$0xf] }
 0x26a   :  { %4655 = vmatmul.bf16.vlgmr.msrb.gmra.mxu0 %v11213_v26  ;;  %v8009_v26 = vld [vmem:[%s12060_s5 + $0x394] sm:$0xf0]  ;;  %v7988_v18 = vld [vmem:[%s12060_s5 + $0x2f4] sm:$0xf]  ;;  %v7282_v25 = vld [vmem:[%s12060_s5 + $0x378] sm:$0xf0] }
 0x26b   :  { %4703 = vmatpush.bf16.msra.mxu0 %v7125_v40  ;;  %v7297_v50 = vor.u32 %v8009_v26, %v7296_v44  ;;  %v7221_v1 = vor.u32 %v7988_v18, %v7218_v19  ;;  %v7194_v40 = vld [vmem:[%s12060_s5 + $0x2c8] sm:$0xf0]  ;;  %v7061_v44 = vor.u32 %v7948_v30, %v7058_v32  ;;  %v7946_v26 = vld [vmem:[%s12060_s5 + $0x1a4] sm:$0xf]  ;;  %v7285_v4 = vor.u32 %v8004_v15, %v7282_v25 }
 0x26c   :  { %4639 = vmatpush.bf16.msra.mxu3 %v7305_v42  ;;  %v7197_v37 = vor.u32 %v7982_v5, %v7194_v40  ;;  %v7978_v42 = vld [vmem:[%s12060_s5 + $0x2a4] sm:$0xf]  ;;  %v7242_v40 = vld [vmem:[%s12060_s5 + $0x328] sm:$0xf0] }
 0x26d   :  { %4677 = vmatpush.bf16.msrb.mxu2 %v6997_v43  ;;  %v7186_v43 = vld [vmem:[%s12060_s5 + $0x2b8] sm:$0xf0]  ;;  %v7994_v5 = vld [vmem:[%s12060_s5 + $0x324] sm:$0xf]  ;;  %v7226_v32 = vld [vmem:[%s12060_s5 + $0x308] sm:$0xf0] }
 0x26e   :  { %v7245_v28 = vor.u32 %v7994_v5, %v7242_v40  ;;  %v8006_v25 = vld [vmem:[%s12060_s5 + $0x384] sm:$0xf]  ;;  %v8024_v5 = vld [vmem:[%s12063_s7 + $0x10] sm:$0xff]  ;;  %v8023_v40 = vld [vmem:[%s12063_s7 + $0x8] sm:$0xff] }
 0x26f   :  { %4704 = vmatpush.bf16.msra.mxu0 %v7117_v58  ;;  %v7189_v58 = vor.u32 %v7980_v24, %v7186_v43  ;;  %v7234_v24 = vld [vmem:[%s12060_s5 + $0x318] sm:$0xf0] }
 0x270   :  { %v3686_v48 = vpop.f32.mrf.mxu2  ;;  %4640 = vmatpush.bf16.msra.mxu3 %v7297_v50 }
 0x271   :  { %4678 = vmatpush.bf16.msrb.mxu2 %v6989_v23  ;;  %v7178_v23 = vld [vmem:[%s12060_s5 + $0x2a8] sm:$0xf0] }
 0x272   :  { %v7181_v48 = vor.u32 %v7978_v42, %v7178_v23  ;;  %v8020_v42 = vld [vmem:[%s12060_s5 + $0x3f4] sm:$0xf] }
 0x273   :  { %4705 = vmatpush.bf16.msra.mxu0 %v7109_v45  ;;  %v7976_v45 = vld [vmem:[%s12060_s5 + $0x294] sm:$0xf] }
 0x274   :  { %4641 = vmatpush.bf16.msra.mxu3 %v7289_v51 }
 0x275   :  { %4679 = vmatpush.bf16.msrb.mxu2 %v6981_v22 }
 0x277   :  { %4706 = vmatpush.bf16.msra.mxu0 %v7101_v20 }
 0x278   :  { %v3645_v31 = vpop.f32.mrf.mxu3  ;;  %4686 = vmatpush.bf16.msrb.mxu3 %v7093_v10  ;;  %v7274_v10 = vld [vmem:[%s12060_s5 + $0x368] sm:$0xf0] }
 0x279   :  { %v3646_v2 = vadd.f32 %v3645_v31, %v3633_v17  ;;  %4680 = vmatpush.bf16.msrb.mxu2 %v6973_v9  ;;  %v3899_v17 = vperm.slane %v11857_v39, 0  ;;  %v7053_v31 = vor.u32 %v7946_v26, %v7050_v47  ;;  %v8002_v9 = vld [vmem:[%s12060_s5 + $0x364] sm:$0xf] }
 0x27a   :  { %4707 = vmatmul.bf16.vlgmr.msra.gmra.mxu0 %v11651_v46  ;;  %v7077_v46 = vor.u32 %v7952_v61, %v7074_v11  ;;  %v7258_v61 = vld [vmem:[%s12060_s5 + $0x348] sm:$0xf0]  ;;  %v8018_v47 = vld [vmem:[%s12060_s5 + $0x3e4] sm:$0xf] }
 0x27b   :  { %v3758_v59 = vmax.f32 %v3646_v2, 0.0  ;;  %v7173_v2 = vor.u32 %v7976_v45, %v7170_v63  ;;  %v8016_v63 = vld [vmem:[%s12060_s5 + $0x3d4] sm:$0xf] }
 0x27c   :  { %4687 = vmatpush.bf16.msrb.mxu3 %v7085_v33  ;;  %v7998_v33 = vld [vmem:[%s12060_s5 + $0x344] sm:$0xf] }
 0x27d   :  { %v11800_v6 = vpack.c.bf16 %v3758_v59, %v3758_v59  ;;  %v7261_v11 = vor.u32 %v7998_v33, %v7258_v61  ;;  %v8027_v33 = vld [vmem:[%s12063_s7 + $0x28] sm:$0xff] }
 0x27f   :  { %4616 = vmatmul.bf16.vlgmr.msra.gmra.mxu1 %v11800_v6 }
 0x280   :  { %v3647_v13 = vpop.f32.mrf.mxu3  ;;  %4712 = vmatpush.bf16.msra.mxu1 %v7221_v1  ;;  %v4552_v57 = vpop.f32.mrf.mxu0  ;;  %4688 = vmatpush.bf16.msrb.mxu3 %v7077_v46  ;;  %v7034_v1 = vld [vmem:[%s12060_s5 + $0x188] sm:$0xf0] }
 0x281   :  { %v4553_v50 = vadd.f32 %v4552_v57, %v3899_v17  ;;  %v7037_v38 = vor.u32 %v7942_v62, %v7034_v1  ;;  %v7277_v13 = vor.u32 %v8002_v9, %v7274_v10  ;;  %v7338_v17 = vld [vmem:[%s12060_s5 + $0x3e8] sm:$0xf0] }
 0x282   :  { %v7341_v45 = vor.u32 %v8018_v47, %v7338_v17 }
 0x284   :  { %4713 = vmatpush.bf16.msra.mxu1 %v7213_v0  ;;  %4689 = vmatpush.bf16.msrb.mxu3 %v7069_v16  ;;  %v8000_v0 = vld [vmem:[%s12060_s5 + $0x354] sm:$0xf] }
 0x285   :  { %v7269_v34 = vor.u32 %v8000_v0, %v7266_v14  ;;  %v3900_v0 = vperm.slane %v11857_v39, 1  ;;  %v8025_v39 = vld [vmem:[%s12063_s7 + $0x18] sm:$0xff] }
 0x286   :  { %v4565_v19 = vpop.f32.mrf.mxu1 }
 0x287   :  { %v4566_v20 = vadd.f32 %v4565_v19, %v4553_v50  ;;  %v8010_v19 = vld [vmem:[%s12060_s5 + $0x3a4] sm:$0xf] }
 0x288   :  { %4714 = vmatpush.bf16.msra.mxu1 %v7205_v29  ;;  %v11852_v35 = vpop.f32.mrf.mxu2  ;;  %v4554_v36 = vpop.f32.mrf.mxu0  ;;  %4690 = vmatpush.bf16.msrb.mxu3 %v7061_v44  ;;  %v7996_v29 = vld [vmem:[%s12060_s5 + $0x334] sm:$0xf]  ;;  %v7309_v56 = vor.u32 %v8010_v19, %v7306_v54 }
 0x289   :  { %v3737_v43 = vadd.f32 %v11852_v35, %v11628_v49  ;;  %v7346_v49 = vld [vmem:[%s12060_s5 + $0x3f8] sm:$0xf0] }
 0x28a   :  { %v7349_v44 = vor.u32 %v8020_v42, %v7346_v49 }
 0x28c   :  { %4715 = vmatpush.bf16.msra.mxu1 %v7197_v37  ;;  %4691 = vmatpush.bf16.msrb.mxu3 %v7053_v31  ;;  %v7992_v37 = vld [vmem:[%s12060_s5 + $0x314] sm:$0xf]  ;;  %v7330_v31 = vld [vmem:[%s12060_s5 + $0x3d8] sm:$0xf0] }
 0x28d   :  { %v7237_v16 = vor.u32 %v7992_v37, %v7234_v24  ;;  %v8037_v37 = vld [vmem:[%s12063_s7 + $0x78] sm:$0xff] }
 0x28e   :  { %v4567_v12 = vpop.f32.mrf.mxu1 }
 0x28f   :  { %4668 = vmatmul.bf16.vlgmr.msrb.gmra.mxu1 %v11300_v27  ;;  %v7042_v27 = vld [vmem:[%s12060_s5 + $0x198] sm:$0xf0] }
 0x290   :  { %4716 = vmatpush.bf16.msra.mxu1 %v7189_v58  ;;  %v3738_v22 = vpop.f32.mrf.mxu2  ;;  %v7045_v55 = vor.u32 %v7944_v7, %v7042_v27  ;;  %v7333_v7 = vor.u32 %v8016_v63, %v7330_v31  ;;  %v8014_v27 = vld [vmem:[%s12060_s5 + $0x3c4] sm:$0xf]  ;;  %v8029_v12 = vld [vmem:[%s12063_s7 + $0x38] sm:$0xff] }
 0x291   :  { %v8012_v22 = vld [vmem:[%s12060_s5 + $0x3b4] sm:$0xf]  ;;  %4887 = vmatpush.bf16.msrb.mxu0 %v8029_v12 }
 0x292   :  { %4692 = vmatpush.bf16.msrb.mxu3 %v7045_v55  ;;  %v8008_v55 = vld [vmem:[%s12060_s5 + $0x394] sm:$0xf] }
 0x294   :  { %4717 = vmatpush.bf16.msra.mxu1 %v7181_v48 }
 0x296   :  { %4693 = vmatpush.bf16.msrb.mxu3 %v7037_v38 }
 0x298   :  { %v3697_v18 = vpop.f32.mrf.mxu3  ;;  %4718 = vmatpush.bf16.msra.mxu1 %v7173_v2  ;;  %v7314_v2 = vld [vmem:[%s12060_s5 + $0x3b8] sm:$0xf0] }
 0x299   :  { %v3698_v59 = vadd.f32 %v3697_v18, %v3685_v53  ;;  %v7322_v53 = vld [vmem:[%s12060_s5 + $0x3c8] sm:$0xf0]  ;;  %v7317_v18 = vor.u32 %v8012_v22, %v7314_v2 }
 0x29a   :  { %v7325_v50 = vor.u32 %v8014_v27, %v7322_v53 }
 0x29b   :  { %v3759_v51 = vmax.f32 %v3698_v59, 0.0  ;;  %v7298_v59 = vld [vmem:[%s12060_s5 + $0x398] sm:$0xf0] }
 0x29c   :  { %4719 = vmatpush.bf16.msra.mxu1 %v7165_v3 }
 0x29d   :  { %v3767_v8 = vpack.c.bf16 %v3759_v51, %v3759_v51 }
 0x29f   :  { %4629 = vmatmul.bf16.vlgmr.msra.gmra.mxu2 %v3767_v8  ;;  %4720 = vmatmul.bf16.vlgmr.msra.gmra.mxu1 %v11800_v6  ;;  %v7250_v6 = vld [vmem:[%s12060_s5 + $0x338] sm:$0xf0] }
 0x2a0   :  { %v3699_v21 = vpop.f32.mrf.mxu3  ;;  %4725 = vmatpush.bf16.msra.mxu2 %v7285_v4  ;;  %v7253_v57 = vor.u32 %v7996_v29, %v7250_v6  ;;  %v8026_v6 = vld [vmem:[%s12063_s7 + $0x20] sm:$0xff]  ;;  %4900 = vmatpush.bf16.msrb.mxu1 %v8037_v37 }
 0x2a4   :  { %4726 = vmatpush.bf16.msra.mxu2 %v7277_v13 }
 0x2a8   :  { %4727 = vmatpush.bf16.msra.mxu2 %v7269_v34  ;;  %v4578_v46 = vpop.f32.mrf.mxu2  ;;  %v8028_v34 = vld [vmem:[%s12063_s7 + $0x30] sm:$0xff] }
 0x2a9   :  { %v4579_v41 = vadd.f32 %v4578_v46, %v4566_v20  ;;  %v7301_v20 = vor.u32 %v8008_v55, %v7298_v59  ;;  %4888 = vmatpush.bf16.msrb.mxu0 %v8028_v34 }
 0x2ac   :  { %4728 = vmatpush.bf16.msra.mxu2 %v7261_v11 }
 0x2ad   :  { %4889 = vmatpush.bf16.msrb.mxu0 %v8027_v33 }
 0x2af   :  { %4681 = vmatmul.bf16.vlgmr.msrb.gmra.mxu2 %v11387_v60  ;;  %v7990_v60 = vld [vmem:[%s12060_s5 + $0x304] sm:$0xf] }
 0x2b0   :  { %4729 = vmatpush.bf16.msra.mxu2 %v7253_v57  ;;  %v4580_v36 = vpop.f32.mrf.mxu2  ;;  %v7229_v23 = vor.u32 %v7990_v60, %v7226_v32  ;;  %v8034_v32 = vld [vmem:[%s12063_s7 + $0x60] sm:$0xff] }
 0x2b1   :  { %4890 = vmatpush.bf16.msrb.mxu0 %v8026_v6  ;;  %v8032_v36 = vld [vmem:[%s12063_s7 + $0x50] sm:$0xff] }
 0x2b4   :  { %4730 = vmatpush.bf16.msra.mxu2 %v7245_v28  ;;  %v8022_v28 = vld [vmem:[%s12063_s7] sm:$0xff] }
 0x2b5   :  { %4891 = vmatpush.bf16.msrb.mxu0 %v8025_v39 }
 0x2b8   :  { %v3749_v30 = vpop.f32.mrf.mxu3  ;;  %4731 = vmatpush.bf16.msra.mxu2 %v7237_v16  ;;  %v8036_v16 = vld [vmem:[%s12063_s7 + $0x70] sm:$0xff] }
 0x2b9   :  { %v3750_v58 = vadd.f32 %v3749_v30, %v3737_v43  ;;  %4892 = vmatpush.bf16.msrb.mxu0 %v8024_v5  ;;  %4901 = vmatpush.bf16.msrb.mxu1 %v8036_v16  ;;  %v8035_v30 = vld [vmem:[%s12063_s7 + $0x68] sm:$0xff] }
 0x2bb   :  { %v3760_v35 = vmax.f32 %v3750_v58, 0.0  ;;  %v8033_v58 = vld [vmem:[%s12063_s7 + $0x58] sm:$0xff] }
 0x2bc   :  { %4732 = vmatpush.bf16.msra.mxu2 %v7229_v23  ;;  %v8031_v23 = vld [vmem:[%s12063_s7 + $0x48] sm:$0xff] }
 0x2bd   :  { %v3768_v26 = vpack.c.bf16 %v3760_v35, %v3760_v35  ;;  %4893 = vmatpush.bf16.msrb.mxu0 %v8023_v40  ;;  %4902 = vmatpush.bf16.msrb.mxu1 %v8035_v30 }
 0x2bf   :  { %4642 = vmatmul.bf16.vlgmr.msra.gmra.mxu3 %v3768_v26  ;;  %4733 = vmatmul.bf16.vlgmr.msra.gmra.mxu2 %v3767_v8 }
 0x2c0   :  { %v3751_v48 = vpop.f32.mrf.mxu3  ;;  %4738 = vmatpush.bf16.msra.mxu3 %v7349_v44 }
 0x2c1   :  { %4894 = vmatpush.bf16.msrb.mxu0 %v8022_v28  ;;  %4903 = vmatpush.bf16.msrb.mxu1 %v8034_v32  ;;  %v8030_v48 = vld [vmem:[%s12063_s7 + $0x40] sm:$0xff] }
 0x2c4   :  { %4739 = vmatpush.bf16.msra.mxu3 %v7341_v45 }
 0x2c5   :  { %4904 = vmatpush.bf16.msrb.mxu1 %v8033_v58 }
 0x2c8   :  { %4740 = vmatpush.bf16.msra.mxu3 %v7333_v7 }
 0x2c9   :  { %4905 = vmatpush.bf16.msrb.mxu1 %v8032_v36 }
 0x2cc   :  { %4741 = vmatpush.bf16.msra.mxu3 %v7325_v50 }
 0x2cd   :  { %4906 = vmatpush.bf16.msrb.mxu1 %v8031_v23 }
 0x2cf   :  { %4694 = vmatmul.bf16.vlgmr.msrb.gmra.mxu3 %v11566_v52  ;;  %v7290_v52 = vld [vmem:[%s12060_s5 + $0x388] sm:$0xf0] }
 0x2d0   :  { %4742 = vmatpush.bf16.msra.mxu3 %v7317_v18  ;;  %v7293_v1 = vor.u32 %v8006_v25, %v7290_v52  ;;  %v8038_v25 = vld [vmem:[%s12062_s8] ss:$0 sm:$0xff] }
 0x2d1   :  { %4907 = vmatpush.bf16.msrb.mxu1 %v8030_v48 }
 0x2d4   :  { %4743 = vmatpush.bf16.msra.mxu3 %v7309_v56 }
 0x2d7   :  { %v4604_v3 = vpop.f32.mrf.mxu0 }
 0x2d8   :  { %v4591_v15 = vpop.f32.mrf.mxu3  ;;  %4744 = vmatpush.bf16.msra.mxu3 %v7301_v20 }
 0x2d9   :  { %v4592_v62 = vadd.f32 %v4591_v15, %v4579_v41 }
 0x2db   :  { %v4605_v4 = vadd.f32 %v4604_v3, %v4592_v62 }
 0x2dc   :  { %4745 = vmatpush.bf16.msra.mxu3 %v7293_v1 }
 0x2df   :  { %4746 = vmatmul.bf16.vlgmr.msra.gmra.mxu3 %v3768_v26  ;;  %v4606_v38 = vpop.f32.mrf.mxu0 }
 0x2e0   :  { %v4593_v51 = vpop.f32.mrf.mxu3 }
 0x2e7   :  { %v4656_v8 = vpop.f32.mrf.mxu0 }
 0x2e8   :  { %v4657_v61 = vadd.f32 %v4656_v8, %v3900_v0 }
 0x2ef   :  { %v4658_v9 = vpop.f32.mrf.mxu0 }
 0x2f7   :  { %v4708_v21 = vpop.f32.mrf.mxu0 }
 0x2fc   :  { %v4617_v10 = vpop.f32.mrf.mxu1 }
 0x2fd   :  { %v4618_v49 = vadd.f32 %v4617_v10, %v4605_v4 }
 0x2ff   :  { %v4710_v14 = vpop.f32.mrf.mxu0 }
 0x304   :  { %v4619_v13 = vpop.f32.mrf.mxu1 }
 0x30c   :  { %v4669_v11 = vpop.f32.mrf.mxu1 }
 0x30d   :  { %v4670_v29 = vadd.f32 %v4669_v11, %v4657_v61 }
 0x314   :  { %v4671_v57 = vpop.f32.mrf.mxu1 }
 0x31c   :  { %v4721_v46 = vpop.f32.mrf.mxu1 }
 0x322   :  { %v4630_v41 = vpop.f32.mrf.mxu2 }
 0x323   :  { %v4631_v35 = vadd.f32 %v4630_v41, %v4618_v49 }
 0x324   :  { %v4723_v24 = vpop.f32.mrf.mxu1 }
 0x32a   :  { %v4632_v43 = vpop.f32.mrf.mxu2 }
 0x332   :  { %v4682_v60 = vpop.f32.mrf.mxu2 }
 0x333   :  { %v4683_v27 = vadd.f32 %v4682_v60, %v4670_v29 }
 0x33a   :  { %v4684_v42 = vpop.f32.mrf.mxu2 }
 0x342   :  { %v4643_v44 = vpop.f32.mrf.mxu3  ;;  %v4734_v17 = vpop.f32.mrf.mxu2 }
 0x343   :  { %v4644_v26 = vadd.f32 %v4643_v44, %v4631_v35 }
 0x345   :  { %v4751_v47 = vmax.f32 %v4644_v26, 0.0 }
 0x347   :  { %v4753_v45 = vpack.c.bf16 %v4751_v47, %v4751_v47 }
 0x349   :  { %4895 = vmatmul.bf16.vlgmr.msrb.gmra.mxu0 %v4753_v45 }
 0x34a   :  { %v4645_v63 = vpop.f32.mrf.mxu3  ;;  %v4736_v31 = vpop.f32.mrf.mxu2 }
 0x352   :  { %v4695_v7 = vpop.f32.mrf.mxu3 }
 0x353   :  { %v4696_v53 = vadd.f32 %v4695_v7, %v4683_v27 }
 0x355   :  { %v4709_v50 = vadd.f32 %v4708_v21, %v4696_v53 }
 0x357   :  { %v4722_v2 = vadd.f32 %v4721_v46, %v4709_v50 }
 0x359   :  { %v4735_v18 = vadd.f32 %v4734_v17, %v4722_v2 }
 0x35a   :  { %v4697_v22 = vpop.f32.mrf.mxu3 }
 0x362   :  { %v4747_v19 = vpop.f32.mrf.mxu3 }
 0x363   :  { %v4748_v54 = vadd.f32 %v4747_v19, %v4735_v18 }
 0x365   :  { %v4752_v56 = vmax.f32 %v4748_v54, 0.0 }
 0x367   :  { %v4754_v55 = vpack.c.bf16 %v4752_v56, %v4752_v56 }
 0x369   :  { %4908 = vmatmul.bf16.vlgmr.msrb.gmra.mxu1 %v4754_v55 }
 0x36a   :  { %v4749_v59 = vpop.f32.mrf.mxu3 }
 0x3c6   :  { %v4896_v20 = vpop.f32.mrf.mxu0 }
 0x3c7   :  { %v4897_v52 = vadd.f32 %v8038_v25, %v4896_v20 }
 0x3ce   :  { %v4898_v15 = vpop.f32.mrf.mxu0 }
 0x3e6   :  { %v4909_v62 = vpop.f32.mrf.mxu1 }
 0x3e7   :  { %v4910_v1 = vadd.f32 %v4909_v62, %v4897_v52 }
 0x3e9   :  { %4913 = vst [vmem:[%s12064_s9] sm:$0xff] %v4910_v1 }
 0x3ee   :  { %v4911_v51 = vpop.f32.mrf.mxu1 }

</bundles_post_ra>
